<compile_context>
chip_gen: v5e
topology: v5e:2x2
jax: 0.10.0
libtpu: 0.0.40
codegen_flags: <defaults>
</compile_context>

<pallas_src>
import math
import numpy as np
import jax
import jax.numpy as jnp
from jax.experimental import pallas as pl
from jax.experimental.pallas import tpu as pltpu

# ---------------- config (small synthetic shapes) ----------------
B, L, E, H, DEPTH = 2, 16, 64, 2, 2
D = E // H // 2            # differential-attention head dim = 16
R = B * L                  # fused row count = 32
EPS_LN = 1e-5
EPS_RMS = 1e-8

assert H == 2, "roll-based head pairing assumes H == 2"
assert 2 * E == 128, "roll-based rotary / pairing assumes the q|k slab is exactly 128 lanes"
assert E == 2 * H * D


# ---------------- Pallas kernel ----------------
def transformer_block_kernel(
    x_ref, emb_ref, sel_ref, wk64_ref, wn64_ref,
    segcat_ref, bdiff_ref, segh_ref, bcasth_ref, rc_ref, rot_ref,
    out_ref,
):
    f32 = jnp.float32
    bf16 = jnp.bfloat16
    E2, E4, E6 = 2 * E, 4 * E, 6 * E

    x = x_ref[...]                                  # [R, E] f32

    def sigmoid(z):                                 # routed through EUP tanh
        return 0.5 * (jnp.tanh(0.5 * z) + 1.0)

    # ---- packed row constants (one [13, 6E] slab, one row per small vector) ----
    ln1w, ln1b = rc_ref[0:1, :E], rc_ref[1:2, :E]
    ln2w, ln2b = rc_ref[2:3, :E], rc_ref[3:4, :E]
    rmsw, rmsb = rc_ref[4:5, :E2], rc_ref[5:6, :E2]
    b2 = rc_ref[6:7, :E]
    bada = rc_ref[7:8, :]
    b1 = rc_ref[8:9, :E4]
    alpha = rc_ref[9:10, :E4]
    invbeta = rc_ref[10:11, :E4]
    lamv = rc_ref[11:12, :2 * H]
    coff = rc_ref[12:13, :E2]

    # ---- adaLN: one fused [B,E]x[E,6E] dot, broadcast to B*L rows with a tiny selector dot ----
    wada = wk64_ref[:, 0:E6]                                                    # [E, 6E] bf16
    ada_b = jnp.dot(emb_ref[...].astype(bf16), wada, preferred_element_type=f32)   # [B, 6E]
    ada = jnp.dot(sel_ref[...], ada_b.astype(bf16), preferred_element_type=f32) + bada   # [R, 6E]
    scale_msa, shift_msa = ada[:, 0:E], ada[:, E:E2]            # = 1 + scale_msa (folded), shift
    scale_mlp, shift_mlp = ada[:, E2:E2 + E], ada[:, E2 + E:E4]
    gate_msa, gate_mlp = ada[:, E4:E4 + E], ada[:, E4 + E:E6]   # = 1 - gate (folded)

    def layer_norm(z, w, b):
        mu = jnp.mean(z, axis=-1, keepdims=True)
        var = jnp.mean((z - mu) * (z - mu), axis=-1, keepdims=True)
        return (z - mu) * jax.lax.rsqrt(var + EPS_LN) * w + b

    # ---------- attention branch ----------
    xm = layer_norm(x, ln1w, ln1b) * scale_msa + shift_msa                      # [R, E]

    # fused q|k|v|vs projection -> one lane-dense [R, 4E] = [R, 256] slab
    proj = jnp.dot(xm.astype(bf16), wk64_ref[:, E6:E6 + E4], preferred_element_type=f32)
    qk = proj[:, 0:E2]                   # [R, 2E]   q | k          (tile-aligned slice)
    vvs = proj[:, E2:E4]                 # [R, 2E]   v | v(head-pairs swapped)

    # rotary via +-1 lane rolls (XLU) against precomputed cos/sin tables
    cosT, sinU, sinW = rot_ref[:, 0:E2], rot_ref[:, E2:E4], rot_ref[:, E4:E6]
    qk = (qk * cosT
          + pltpu.roll(qk, 1, axis=1) * sinU            # lane c <- c-1 (odd rotary lanes)
          + pltpu.roll(qk, E2 - 1, axis=1) * sinW)      # == roll(-1): lane c <- c+1 (even lanes)

    # per-position scores over the head axis: diag (g==h) and off (g!=h) pairings fused into
    # one segment-sum dot (scale folded into segcat)
    prod_diag = qk * pltpu.roll(qk, E, axis=1)           # aligns q_j with k_j
    prod_off = qk * pltpu.roll(qk, E2 - 2 * D, axis=1)   # q_j with k of the other head, same stream
    prod = jnp.concatenate([prod_diag, prod_off], axis=1)                       # [R, 4E]
    s8 = jnp.dot(prod.astype(bf16), segcat_ref[...], preferred_element_type=f32)  # [R, 4H]
    s_d, s_o = s8[:, 0:2 * H], s8[:, 2 * H:4 * H]

    # 2-way softmax over {g==h, g!=h}; the "off" combined weight is recovered as
    # (1-lambda) - diag via the +-1 block matrix bdiff plus the constant coff,
    # so a single broadcast dot produces the full [R, 2E] coefficient slab.
    m = jnp.maximum(s_d, s_o)
    e_d = jnp.exp(s_d - m)
    e_o = jnp.exp(s_o - m)
    p_d = e_d * pl.reciprocal(e_d + e_o, approx=True)
    wpd = p_d * lamv                                                            # [R, 2H]
    wcomb = jnp.dot(wpd.astype(bf16), bdiff_ref[...], preferred_element_type=f32) + coff  # [R, 2E]

    t = wcomb * vvs
    d128 = t + pltpu.roll(t, E, axis=1)   # both 64-lane halves now hold d = a1 - lambda*a2

    # per-head RMSNorm over 2D channels; (1 - lambda_init) pre-folded into rmsw/rmsb,
    # whose zero upper halves keep everything 128-lane dense.
    ms = jnp.dot((d128 * d128).astype(bf16), segh_ref[...], preferred_element_type=f32)   # [R, H]
    rinv = jax.lax.rsqrt(ms + EPS_RMS)
    rinvb = jnp.dot(rinv.astype(bf16), bcasth_ref[...], preferred_element_type=f32)       # [R, 2E]
    a = d128 * rinvb * rmsw + rmsb        # upper 64 lanes zeroed by rmsw/rmsb padding

    attn_out = jnp.dot(a.astype(bf16), wn64_ref[0:E2, :], preferred_element_type=f32)     # [R, E]
    x1 = attn_out * sigmoid(gate_msa) + x

    # ---------- feed-forward branch ----------
    xm2 = layer_norm(x1, ln2w, ln2b) * scale_mlp + shift_mlp
    h1 = jnp.dot(xm2.astype(bf16), wk64_ref[:, E6 + E4:E6 + 2 * E4],
                 preferred_element_type=f32) + b1                                         # [R, 4E]
    sn = jnp.sin(h1 * alpha)
    snake = h1 + invbeta * sn * sn
    y = jnp.dot(snake.astype(bf16), wn64_ref[E2:E2 + E4, :], preferred_element_type=f32) + b2
    out_ref[...] = y * sigmoid(gate_mlp) + x1


# ---------------- host-side rotary tables (per-head, interleaved pairs) ----------------
def rotary_tables(seq_len, head_dim):
    rot = head_dim // 2
    inv_freq = 1.0 / (10000.0 ** (np.arange(0, rot, 2)[: rot // 2] / rot))
    t = np.arange(seq_len, dtype=np.float64)
    ang = np.repeat(t[:, None] * inv_freq[None, :], 2, axis=-1)          # [L, rot]
    cos_h = np.concatenate([np.cos(ang), np.ones((seq_len, head_dim - rot))], axis=-1)
    sin_rep = np.sin(ang)
    sinu_h = np.zeros((seq_len, head_dim))
    sinu_h[:, 1:rot:2] = sin_rep[:, 1::2]       # odd channels: +sin (multiplies roll(+1))
    sinw_h = np.zeros((seq_len, head_dim))
    sinw_h[:, 0:rot:2] = -sin_rep[:, 0::2]      # even channels: -sin (multiplies roll(-1))
    return (cos_h.astype(np.float32), sinu_h.astype(np.float32),
            sinw_h.astype(np.float32), ang.astype(np.float32))


# ---------------- one-time (init-style) host-side parameter folding / constants ----------------
def fold_params(p):
    f32 = np.float32
    E2, E4, E6 = 2 * E, 4 * E, 6 * E

    # attention projection: q | k | v | v_swapped fused into one [E, 4E] weight
    wqkv = np.asarray(p["wqkv"], f32)
    wq, wk, wv = wqkv[:, :E], wqkv[:, E:2 * E], wqkv[:, 2 * E:]
    perm = [(c + 2 * D) % E for c in range(E)]
    wvs = wv[:, perm]                                            # head-pair blocks swapped
    wqkvvs = np.concatenate([wq, wk, wv, wvs], axis=1)           # [E, 4E]

    # adaLN: fold +1 / (1-gate) into the bias, gate sign into the weight
    wada = np.asarray(p["wada"], f32).copy()
    wada[:, 4 * E:6 * E] *= -1.0
    bada_orig = np.asarray(p["bada"], f32)
    bada = bada_orig.copy()
    bada[0:E] += 1.0
    bada[2 * E:3 * E] += 1.0
    bada[4 * E:5 * E] = 1.0 - bada_orig[4 * E:5 * E]
    bada[5 * E:6 * E] = 1.0 - bada_orig[5 * E:6 * E]

    w1 = np.asarray(p["w1"], f32)
    wk64 = np.concatenate([wada, wqkvvs, w1], axis=1)            # [E, 6E+4E+4E]

    wout = np.asarray(p["wout"], f32)
    wout128 = np.concatenate([wout, np.zeros((E, E), f32)], axis=0)   # [2E, E]
    w2 = np.asarray(p["w2"], f32)
    wn64 = np.concatenate([wout128, w2], axis=0)                 # [2E+4E, E]

    # per-position head-axis attention: segment-sum / broadcast constants
    scale = D ** -0.5
    nH2 = 2 * H
    nblk = 4 * H
    seg_diag = np.zeros((E2, nH2), f32)
    for j in range(nH2):
        seg_diag[j * D:(j + 1) * D, j] = scale
    seg_off = np.zeros((E2, nH2), f32)
    for j in range(nH2):
        want = {j, nH2 + (j + 2) % nH2}          # {q_j, k_(other head, same stream)}
        for blk in range(nblk):
            if {blk, (blk + 2) % nblk} == want:
                seg_off[blk * D:(blk + 1) * D, j] = scale
                break
    seg_cat = np.zeros((2 * E2, 2 * nH2), f32)                   # block-diag(diag, off)
    seg_cat[:E2, :nH2] = seg_diag
    seg_cat[E2:, nH2:] = seg_off

    bdiff = np.zeros((nH2, E2), f32)                             # +1 lower-half blocks, -1 upper
    for j in range(nH2):
        h = j // 2
        bdiff[j, h * 2 * D:(h + 1) * 2 * D] = 1.0
        bdiff[j, E + h * 2 * D:E + (h + 1) * 2 * D] = -1.0

    segh = np.zeros((E2, H), f32)
    bcasth = np.zeros((H, E2), f32)
    for h in range(H):
        segh[h * 2 * D:(h + 1) * 2 * D, h] = 1.0 / (2 * D)
        bcasth[h, h * 2 * D:(h + 1) * 2 * D] = 1.0

    lam_init = float(p["lam_init"])
    lam_full = float(np.exp(np.sum(np.asarray(p["lq1"]) * np.asarray(p["lk1"])))
                     - np.exp(np.sum(np.asarray(p["lq2"]) * np.asarray(p["lk2"]))) + lam_init)
    lamv = np.array([1.0, -lam_full] * H, f32)                   # [2H]
    coff = np.zeros((E2,), f32)
    coff[E:] = 1.0 - lam_full                                    # constant for the "off" weights

    one_m = 1.0 - lam_init
    rmsw128 = np.zeros((E2,), f32)
    rmsb128 = np.zeros((E2,), f32)
    rmsw128[:E] = np.tile(np.asarray(p["rmsw"], f32), H) * one_m
    rmsb128[:E] = np.tile(np.asarray(p["rmsb"], f32), H) * one_m

    # rotary tables tiled across the 4H head blocks of the q|k slab and over batch
    cos_h, sinu_h, sinw_h, _ = rotary_tables(L, D)
    cosT = np.tile(np.tile(cos_h, (1, nblk)), (B, 1))
    sinU = np.tile(np.tile(sinu_h, (1, nblk)), (B, 1))
    sinW = np.tile(np.tile(sinw_h, (1, nblk)), (B, 1))
    rottab = np.concatenate([cosT, sinU, sinW], axis=1).astype(f32)   # [R, 6E]

    # packed row constants: one row per small vector, zero-padded to 6E lanes
    def pad_row(v):
        r = np.zeros((E6,), f32)
        r[:v.shape[0]] = v
        return r

    rc = np.stack([
        pad_row(np.asarray(p["ln1w"], f32)), pad_row(np.asarray(p["ln1b"], f32)),
        pad_row(np.asarray(p["ln2w"], f32)), pad_row(np.asarray(p["ln2b"], f32)),
        pad_row(rmsw128), pad_row(rmsb128),
        pad_row(np.asarray(p["b2"], f32)),
        pad_row(bada),
        pad_row(np.asarray(p["b1"], f32)),
        pad_row(np.asarray(p["alpha"], f32)),
        pad_row(1.0 / (np.asarray(p["beta"], f32) + 1e-9)),
        pad_row(lamv),
        pad_row(coff),
    ], axis=0)                                                   # [13, 6E]

    sel = np.zeros((R, B), f32)                                  # 0/1 row->batch selector
    for r in range(R):
        sel[r, r // L] = 1.0

    bf = jnp.bfloat16
    return dict(
        sel=jnp.asarray(sel, bf),
        wk64=jnp.asarray(wk64, bf), wn64=jnp.asarray(wn64, bf),
        seg_cat=jnp.asarray(seg_cat, bf), bdiff=jnp.asarray(bdiff, bf),
        segh=jnp.asarray(segh, bf), bcasth=jnp.asarray(bcasth, bf),
        rc=jnp.asarray(rc, jnp.float32), rottab=jnp.asarray(rottab, jnp.float32),
    )


# ---------------- wrapper ----------------
def run_pallas(x, emb, consts):
    xf = x.reshape(R, E)
    arrs = [
        xf, emb, consts["sel"], consts["wk64"], consts["wn64"],
        consts["seg_cat"], consts["bdiff"], consts["segh"], consts["bcasth"],
        consts["rc"], consts["rottab"],
    ]

    def full_spec(a):
        nd = a.ndim
        return pl.BlockSpec(a.shape, lambda i, _nd=nd: (0,) * _nd)

    out = pl.pallas_call(
        transformer_block_kernel,
        out_shape=jax.ShapeDtypeStruct((R, E), jnp.float32),
        grid=(1,),                           # whole [B*L, E] problem in a single grid step
        in_specs=[full_spec(a) for a in arrs],
        out_specs=pl.BlockSpec((R, E), lambda i: (0, 0)),
        compiler_params=pltpu.CompilerParams(dimension_semantics=("arbitrary",)),
    )(*arrs)
    return out.reshape(B, L, E)


# ---------------- pure-JAX reference (independent check) ----------------
def ref_rotate_half(t):
    shp = t.shape
    t2 = t.reshape(shp[:-1] + (shp[-1] // 2, 2))
    x1, x2 = t2[..., 0], t2[..., 1]
    return jnp.stack((-x2, x1), axis=-1).reshape(shp)


def ref_apply_rotary(t, ang):   # t [B, L, 2H, D], ang [L, rot]
    rot = ang.shape[-1]
    cos = jnp.cos(ang)[None, :, None, :]
    sin = jnp.sin(ang)[None, :, None, :]
    t_rot, t_pass = t[..., :rot], t[..., rot:]
    t_rot = t_rot * cos + ref_rotate_half(t_rot) * sin
    return jnp.concatenate([t_rot, t_pass], axis=-1)


def ref_forward(x, emb, p):
    ada = (emb @ p["wada"] + p["bada"])[:, None, :]
    scale_msa, shift_msa, scale_mlp, shift_mlp, gate_msa, gate_mlp = jnp.split(ada, 6, axis=-1)

    def layernorm(z, w, b):
        mu = z.mean(-1, keepdims=True)
        var = ((z - mu) ** 2).mean(-1, keepdims=True)
        return (z - mu) / jnp.sqrt(var + EPS_LN) * w + b

    res = x
    xm = layernorm(x, p["ln1w"], p["ln1b"]) * (1 + scale_msa) + shift_msa
    qkv = xm @ p["wqkv"]
    q, k, v = jnp.split(qkv, 3, axis=-1)
    b, l, _ = x.shape
    q = q.reshape(b, l, 2 * H, D)
    k = k.reshape(b, l, 2 * H, D)
    v = v.reshape(b, l, H, 2, D)
    q = ref_apply_rotary(q, p["ang"]).reshape(b, l, H, 2, D)
    k = ref_apply_rotary(k, p["ang"]).reshape(b, l, H, 2, D)
    q1, q2 = q[..., 0, :], q[..., 1, :]
    k1, k2 = k[..., 0, :], k[..., 1, :]
    v1, v2 = v[..., 0, :], v[..., 1, :]

    def qkv_attn(qq, kk, vv):
        scores = jnp.einsum("blhd,blgd->blhg", qq, kk) * (D ** -0.5)
        w = jax.nn.softmax(scores, axis=-1)
        return jnp.einsum("blhg,blgd->blhd", w, vv)

    a1 = jnp.concatenate([qkv_attn(q1, k1, v1), qkv_attn(q1, k1, v2)], axis=-1)
    a2 = jnp.concatenate([qkv_attn(q2, k2, v1), qkv_attn(q2, k2, v2)], axis=-1)
    lam_full = (jnp.exp(jnp.sum(p["lq1"] * p["lk1"]))
                - jnp.exp(jnp.sum(p["lq2"] * p["lk2"])) + p["lam_init"])
    d = a1 - lam_full * a2
    rms = 1.0 / jnp.sqrt(jnp.mean(d * d, axis=-1, keepdims=True) + EPS_RMS)
    a = (d * rms * p["rmsw"] + p["rmsb"]) * (1 - p["lam_init"])
    attn_out = a.reshape(b, l, E) @ p["wout"]
    x1 = attn_out * jax.nn.sigmoid(1 - gate_msa) + res

    res2 = x1
    xm2 = layernorm(x1, p["ln2w"], p["ln2b"]) * (1 + scale_mlp) + shift_mlp
    h1 = xm2 @ p["w1"] + p["b1"]
    snake = h1 + (1.0 / (p["beta"] + 1e-9)) * jnp.sin(h1 * p["alpha"]) ** 2
    y = snake @ p["w2"] + p["b2"]
    return y * jax.nn.sigmoid(1 - gate_mlp) + res2


# ---------------- main ----------------
if __name__ == "__main__":
    key = jax.random.PRNGKey(0)
    ks = list(jax.random.split(key, 32))

    def nrm(k, shape, std):
        return jax.random.normal(k, shape, dtype=jnp.float32) * std

    lam_init = 0.8 - 0.6 * math.exp(-0.3 * DEPTH)
    _, _, _, ang = rotary_tables(L, D)

    p = {
        # NOTE: the module zero-inits adaln; small random values used to exercise the path.
        "wada": nrm(ks[0], (E, 6 * E), 0.02), "bada": nrm(ks[1], (6 * E,), 0.02),
        "ln1w": 1.0 + nrm(ks[2], (E,), 0.1), "ln1b": nrm(ks[3], (E,), 0.05),
        "ln2w": 1.0 + nrm(ks[4], (E,), 0.1), "ln2b": nrm(ks[5], (E,), 0.05),
        "wqkv": nrm(ks[6], (E, 3 * E), 0.05),
        "lq1": nrm(ks[7], (D,), 0.1), "lk1": nrm(ks[8], (D,), 0.1),
        "lq2": nrm(ks[9], (D,), 0.1), "lk2": nrm(ks[10], (D,), 0.1),
        "rmsw": 1.0 + nrm(ks[11], (2 * D,), 0.1), "rmsb": nrm(ks[12], (2 * D,), 0.05),
        "wout": nrm(ks[13], (E, E), 0.05),
        "w1": nrm(ks[14], (E, 4 * E), 0.05), "b1": nrm(ks[15], (4 * E,), 0.02),
        "alpha": jnp.ones((4 * E,), jnp.float32), "beta": jnp.ones((4 * E,), jnp.float32),
        "w2": nrm(ks[16], (4 * E, E), 0.05), "b2": nrm(ks[17], (E,), 0.02),
        "lam_init": jnp.float32(lam_init),
        "ang": jnp.asarray(ang),
    }

    x = nrm(ks[18], (B, L, E), 1.0)
    emb = nrm(ks[19], (B, E), 1.0)

    consts = fold_params(p)   # init-time folding, hoisted out of the forward wrapper

    out = jax.block_until_ready(run_pallas(x, emb, consts))
    ref = jax.block_until_ready(ref_forward(x, emb, p))

    # bf16 weights + bf16 dot operands (f32 accumulation) vs an f32 default-precision reference:
    # compare at bf16-level tolerance; structural bugs would give O(1) errors and still be caught.
    np.testing.assert_allclose(np.asarray(out), np.asarray(ref), rtol=5e-2, atol=5e-2)

    print("KERNEL_OK")
</pallas_src>

<mosaic_0001>
module attributes {stable_mosaic.version = 11 : i64} {
  func.func @transformer_block_kernel(%arg0: i32, %arg1: memref<32x64xf32, #tpu.memory_space<vmem>>, %arg2: memref<2x64xf32, #tpu.memory_space<vmem>>, %arg3: memref<32x2xbf16, #tpu.memory_space<vmem>>, %arg4: memref<64x896xbf16, #tpu.memory_space<vmem>>, %arg5: memref<384x64xbf16, #tpu.memory_space<vmem>>, %arg6: memref<256x8xbf16, #tpu.memory_space<vmem>>, %arg7: memref<4x128xbf16, #tpu.memory_space<vmem>>, %arg8: memref<128x2xbf16, #tpu.memory_space<vmem>>, %arg9: memref<2x128xbf16, #tpu.memory_space<vmem>>, %arg10: memref<13x384xf32, #tpu.memory_space<vmem>>, %arg11: memref<32x384xf32, #tpu.memory_space<vmem>>, %arg12: memref<32x64xf32, #tpu.memory_space<vmem>>) attributes {dimension_semantics = [#tpu.dimension_semantics<arbitrary>], iteration_bounds = array<i64: 1>, scalar_prefetch = 0 : i64, scratch_operands = 0 : i64, tpu.core_type = #tpu.core_type<tc>, window_params = [{pipeline_mode = #tpu.pipeline_mode<synchronous>, transform_indices = @transform_0, window_bounds = array<i64: 32, 64>}, {pipeline_mode = #tpu.pipeline_mode<synchronous>, transform_indices = @transform_1, window_bounds = array<i64: 2, 64>}, {pipeline_mode = #tpu.pipeline_mode<synchronous>, transform_indices = @transform_2, window_bounds = array<i64: 32, 2>}, {pipeline_mode = #tpu.pipeline_mode<synchronous>, transform_indices = @transform_3, window_bounds = array<i64: 64, 896>}, {pipeline_mode = #tpu.pipeline_mode<synchronous>, transform_indices = @transform_4, window_bounds = array<i64: 384, 64>}, {pipeline_mode = #tpu.pipeline_mode<synchronous>, transform_indices = @transform_5, window_bounds = array<i64: 256, 8>}, {pipeline_mode = #tpu.pipeline_mode<synchronous>, transform_indices = @transform_6, window_bounds = array<i64: 4, 128>}, {pipeline_mode = #tpu.pipeline_mode<synchronous>, transform_indices = @transform_7, window_bounds = array<i64: 128, 2>}, {pipeline_mode = #tpu.pipeline_mode<synchronous>, transform_indices = @transform_8, window_bounds = array<i64: 2, 128>}, {pipeline_mode = #tpu.pipeline_mode<synchronous>, transform_indices = @transform_9, window_bounds = array<i64: 13, 384>}, {pipeline_mode = #tpu.pipeline_mode<synchronous>, transform_indices = @transform_10, window_bounds = array<i64: 32, 384>}, {pipeline_mode = #tpu.pipeline_mode<synchronous>, transform_indices = @transform_11, window_bounds = array<i64: 32, 64>}]} {
    %c0 = arith.constant 0 : index
    %c0_0 = arith.constant 0 : index
    %0 = vector.load %arg1[%c0, %c0_0] : memref<32x64xf32, #tpu.memory_space<vmem>>, vector<32x64xf32>
    %c0_1 = arith.constant 0 : index
    %c0_2 = arith.constant 0 : index
    %1 = vector.load %arg10[%c0_1, %c0_2] : memref<13x384xf32, #tpu.memory_space<vmem>>, vector<1x64xf32>
    %c1 = arith.constant 1 : index
    %c0_3 = arith.constant 0 : index
    %2 = vector.load %arg10[%c1, %c0_3] : memref<13x384xf32, #tpu.memory_space<vmem>>, vector<1x64xf32>
    %c2 = arith.constant 2 : index
    %c0_4 = arith.constant 0 : index
    %3 = vector.load %arg10[%c2, %c0_4] : memref<13x384xf32, #tpu.memory_space<vmem>>, vector<1x64xf32>
    %c3 = arith.constant 3 : index
    %c0_5 = arith.constant 0 : index
    %4 = vector.load %arg10[%c3, %c0_5] : memref<13x384xf32, #tpu.memory_space<vmem>>, vector<1x64xf32>
    %c4 = arith.constant 4 : index
    %c0_6 = arith.constant 0 : index
    %5 = vector.load %arg10[%c4, %c0_6] : memref<13x384xf32, #tpu.memory_space<vmem>>, vector<1x128xf32>
    %c5 = arith.constant 5 : index
    %c0_7 = arith.constant 0 : index
    %6 = vector.load %arg10[%c5, %c0_7] : memref<13x384xf32, #tpu.memory_space<vmem>>, vector<1x128xf32>
    %c6 = arith.constant 6 : index
    %c0_8 = arith.constant 0 : index
    %7 = vector.load %arg10[%c6, %c0_8] : memref<13x384xf32, #tpu.memory_space<vmem>>, vector<1x64xf32>
    %c7 = arith.constant 7 : index
    %c0_9 = arith.constant 0 : index
    %8 = vector.load %arg10[%c7, %c0_9] : memref<13x384xf32, #tpu.memory_space<vmem>>, vector<1x384xf32>
    %c8 = arith.constant 8 : index
    %c0_10 = arith.constant 0 : index
    %9 = vector.load %arg10[%c8, %c0_10] : memref<13x384xf32, #tpu.memory_space<vmem>>, vector<1x256xf32>
    %c9 = arith.constant 9 : index
    %c0_11 = arith.constant 0 : index
    %10 = vector.load %arg10[%c9, %c0_11] : memref<13x384xf32, #tpu.memory_space<vmem>>, vector<1x256xf32>
    %c10 = arith.constant 10 : index
    %c0_12 = arith.constant 0 : index
    %11 = vector.load %arg10[%c10, %c0_12] : memref<13x384xf32, #tpu.memory_space<vmem>>, vector<1x256xf32>
    %c11 = arith.constant 11 : index
    %c0_13 = arith.constant 0 : index
    %12 = vector.load %arg10[%c11, %c0_13] : memref<13x384xf32, #tpu.memory_space<vmem>>, vector<1x4xf32>
    %c12 = arith.constant 12 : index
    %c0_14 = arith.constant 0 : index
    %13 = vector.load %arg10[%c12, %c0_14] : memref<13x384xf32, #tpu.memory_space<vmem>>, vector<1x128xf32>
    %c0_15 = arith.constant 0 : index
    %c0_16 = arith.constant 0 : index
    %14 = vector.load %arg4[%c0_15, %c0_16] : memref<64x896xbf16, #tpu.memory_space<vmem>>, vector<64x384xbf16>
    %c0_17 = arith.constant 0 : index
    %c0_18 = arith.constant 0 : index
    %15 = vector.load %arg2[%c0_17, %c0_18] : memref<2x64xf32, #tpu.memory_space<vmem>>, vector<2x64xf32>
    %16 = arith.truncf %15 : vector<2x64xf32> to vector<2x64xbf16>
    %cst = arith.constant dense<0.000000e+00> : vector<2x384xf32>
    %17 = tpu.matmul %16, %14, %cst {dimension_numbers = #tpu.dot_dimension_numbers<[1], [0], [0], [1], [0, 0, 1, 1], [], []>} : vector<2x64xbf16>, vector<64x384xbf16>, vector<2x384xf32> -> vector<2x384xf32>
    %c0_19 = arith.constant 0 : index
    %c0_20 = arith.constant 0 : index
    %18 = vector.load %arg3[%c0_19, %c0_20] : memref<32x2xbf16, #tpu.memory_space<vmem>>, vector<32x2xbf16>
    %19 = arith.truncf %17 : vector<2x384xf32> to vector<2x384xbf16>
    %cst_21 = arith.constant dense<0.000000e+00> : vector<32x384xf32>
    %20 = tpu.matmul %18, %19, %cst_21 {dimension_numbers = #tpu.dot_dimension_numbers<[1], [0], [0], [1], [0, 0, 1, 1], [], []>} : vector<32x2xbf16>, vector<2x384xbf16>, vector<32x384xf32> -> vector<32x384xf32>
    %21 = vector.broadcast %8 : vector<1x384xf32> to vector<32x384xf32>
    %22 = arith.addf %20, %21 : vector<32x384xf32>
    %23 = vector.extract_strided_slice %22 {offsets = [0, 0], sizes = [32, 64], strides = [1, 1]} : vector<32x384xf32> to vector<32x64xf32>
    %24 = vector.extract_strided_slice %22 {offsets = [0, 64], sizes = [32, 64], strides = [1, 1]} : vector<32x384xf32> to vector<32x64xf32>
    %25 = vector.extract_strided_slice %22 {offsets = [0, 128], sizes = [32, 64], strides = [1, 1]} : vector<32x384xf32> to vector<32x64xf32>
    %26 = vector.extract_strided_slice %22 {offsets = [0, 192], sizes = [32, 64], strides = [1, 1]} : vector<32x384xf32> to vector<32x64xf32>
    %27 = vector.extract_strided_slice %22 {offsets = [0, 256], sizes = [32, 64], strides = [1, 1]} : vector<32x384xf32> to vector<32x64xf32>
    %28 = vector.extract_strided_slice %22 {offsets = [0, 320], sizes = [32, 64], strides = [1, 1]} : vector<32x384xf32> to vector<32x64xf32>
    %cst_22 = arith.constant dense<0.000000e+00> : vector<32xf32>
    %29 = vector.multi_reduction <add>, %0, %cst_22 [1] : vector<32x64xf32> to vector<32xf32>
    %30 = vector.shape_cast %29 : vector<32xf32> to vector<32x1xf32>
    %cst_23 = arith.constant 6.400000e+01 : f32
    %31 = vector.broadcast %cst_23 : f32 to vector<32x1xf32>
    %32 = arith.divf %30, %31 : vector<32x1xf32>
    %33 = vector.broadcast %32 : vector<32x1xf32> to vector<32x64xf32>
    %34 = arith.subf %0, %33 : vector<32x64xf32>
    %35 = vector.broadcast %32 : vector<32x1xf32> to vector<32x64xf32>
    %36 = arith.subf %0, %35 : vector<32x64xf32>
    %37 = arith.mulf %34, %36 : vector<32x64xf32>
    %cst_24 = arith.constant dense<0.000000e+00> : vector<32xf32>
    %38 = vector.multi_reduction <add>, %37, %cst_24 [1] : vector<32x64xf32> to vector<32xf32>
    %39 = vector.shape_cast %38 : vector<32xf32> to vector<32x1xf32>
    %cst_25 = arith.constant 6.400000e+01 : f32
    %40 = vector.broadcast %cst_25 : f32 to vector<32x1xf32>
    %41 = arith.divf %39, %40 : vector<32x1xf32>
    %42 = vector.broadcast %32 : vector<32x1xf32> to vector<32x64xf32>
    %43 = arith.subf %0, %42 : vector<32x64xf32>
    %cst_26 = arith.constant 9.99999974E-6 : f32
    %44 = vector.broadcast %cst_26 : f32 to vector<32x1xf32>
    %45 = arith.addf %41, %44 : vector<32x1xf32>
    %46 = math.rsqrt %45 : vector<32x1xf32>
    %47 = vector.broadcast %46 : vector<32x1xf32> to vector<32x64xf32>
    %48 = arith.mulf %43, %47 : vector<32x64xf32>
    %49 = vector.broadcast %1 : vector<1x64xf32> to vector<32x64xf32>
    %50 = arith.mulf %48, %49 : vector<32x64xf32>
    %51 = vector.broadcast %2 : vector<1x64xf32> to vector<32x64xf32>
    %52 = arith.addf %50, %51 : vector<32x64xf32>
    %53 = arith.mulf %52, %23 : vector<32x64xf32>
    %54 = arith.addf %53, %24 : vector<32x64xf32>
    %55 = arith.truncf %54 : vector<32x64xf32> to vector<32x64xbf16>
    %c0_27 = arith.constant 0 : index
    %c384 = arith.constant 384 : index
    %56 = vector.load %arg4[%c0_27, %c384] : memref<64x896xbf16, #tpu.memory_space<vmem>>, vector<64x256xbf16>
    %cst_28 = arith.constant dense<0.000000e+00> : vector<32x256xf32>
    %57 = tpu.matmul %55, %56, %cst_28 {dimension_numbers = #tpu.dot_dimension_numbers<[1], [0], [0], [1], [0, 0, 1, 1], [], []>} : vector<32x64xbf16>, vector<64x256xbf16>, vector<32x256xf32> -> vector<32x256xf32>
    %58 = vector.extract_strided_slice %57 {offsets = [0, 0], sizes = [32, 128], strides = [1, 1]} : vector<32x256xf32> to vector<32x128xf32>
    %59 = vector.extract_strided_slice %57 {offsets = [0, 128], sizes = [32, 128], strides = [1, 1]} : vector<32x256xf32> to vector<32x128xf32>
    %c0_29 = arith.constant 0 : index
    %c0_30 = arith.constant 0 : index
    %60 = vector.load %arg11[%c0_29, %c0_30] : memref<32x384xf32, #tpu.memory_space<vmem>>, vector<32x128xf32>
    %c0_31 = arith.constant 0 : index
    %c128 = arith.constant 128 : index
    %61 = vector.load %arg11[%c0_31, %c128] : memref<32x384xf32, #tpu.memory_space<vmem>>, vector<32x128xf32>
    %c0_32 = arith.constant 0 : index
    %c256 = arith.constant 256 : index
    %62 = vector.load %arg11[%c0_32, %c256] : memref<32x384xf32, #tpu.memory_space<vmem>>, vector<32x128xf32>
    %63 = arith.mulf %58, %60 : vector<32x128xf32>
    %c1_i32 = arith.constant 1 : i32
    %64 = tpu.dynamic_rotate %58 by %c1_i32 dim 1 : vector<32x128xf32>, i32 -> vector<32x128xf32>
    %65 = arith.mulf %64, %61 : vector<32x128xf32>
    %66 = arith.addf %63, %65 : vector<32x128xf32>
    %c127_i32 = arith.constant 127 : i32
    %67 = tpu.dynamic_rotate %58 by %c127_i32 dim 1 : vector<32x128xf32>, i32 -> vector<32x128xf32>
    %68 = arith.mulf %67, %62 : vector<32x128xf32>
    %69 = arith.addf %66, %68 : vector<32x128xf32>
    %c64_i32 = arith.constant 64 : i32
    %70 = tpu.dynamic_rotate %69 by %c64_i32 dim 1 : vector<32x128xf32>, i32 -> vector<32x128xf32>
    %71 = arith.mulf %69, %70 : vector<32x128xf32>
    %c96_i32 = arith.constant 96 : i32
    %72 = tpu.dynamic_rotate %69 by %c96_i32 dim 1 : vector<32x128xf32>, i32 -> vector<32x128xf32>
    %73 = arith.mulf %69, %72 : vector<32x128xf32>
    %74 = tpu.concatenate %71, %73 in 1 : vector<32x128xf32>, vector<32x128xf32> -> vector<32x256xf32>
    %75 = arith.truncf %74 : vector<32x256xf32> to vector<32x256xbf16>
    %c0_33 = arith.constant 0 : index
    %c0_34 = arith.constant 0 : index
    %76 = vector.load %arg6[%c0_33, %c0_34] : memref<256x8xbf16, #tpu.memory_space<vmem>>, vector<256x8xbf16>
    %cst_35 = arith.constant dense<0.000000e+00> : vector<32x8xf32>
    %77 = tpu.matmul %75, %76, %cst_35 {dimension_numbers = #tpu.dot_dimension_numbers<[1], [0], [0], [1], [0, 0, 1, 1], [], []>} : vector<32x256xbf16>, vector<256x8xbf16>, vector<32x8xf32> -> vector<32x8xf32>
    %78 = vector.extract_strided_slice %77 {offsets = [0, 0], sizes = [32, 4], strides = [1, 1]} : vector<32x8xf32> to vector<32x4xf32>
    %79 = vector.extract_strided_slice %77 {offsets = [0, 4], sizes = [32, 4], strides = [1, 1]} : vector<32x8xf32> to vector<32x4xf32>
    %80 = arith.maximumf %78, %79 : vector<32x4xf32>
    %81 = arith.subf %78, %80 : vector<32x4xf32>
    %82 = math.exp %81 : vector<32x4xf32>
    %83 = arith.subf %79, %80 : vector<32x4xf32>
    %84 = math.exp %83 : vector<32x4xf32>
    %85 = arith.addf %82, %84 : vector<32x4xf32>
    %86 = tpu.reciprocal %85 {approx = true} : vector<32x4xf32> -> vector<32x4xf32>
    %87 = arith.mulf %82, %86 : vector<32x4xf32>
    %88 = vector.broadcast %12 : vector<1x4xf32> to vector<32x4xf32>
    %89 = arith.mulf %87, %88 : vector<32x4xf32>
    %90 = arith.truncf %89 : vector<32x4xf32> to vector<32x4xbf16>
    %c0_36 = arith.constant 0 : index
    %c0_37 = arith.constant 0 : index
    %91 = vector.load %arg7[%c0_36, %c0_37] : memref<4x128xbf16, #tpu.memory_space<vmem>>, vector<4x128xbf16>
    %cst_38 = arith.constant dense<0.000000e+00> : vector<32x128xf32>
    %92 = tpu.matmul %90, %91, %cst_38 {dimension_numbers = #tpu.dot_dimension_numbers<[1], [0], [0], [1], [0, 0, 1, 1], [], []>} : vector<32x4xbf16>, vector<4x128xbf16>, vector<32x128xf32> -> vector<32x128xf32>
    %93 = vector.broadcast %13 : vector<1x128xf32> to vector<32x128xf32>
    %94 = arith.addf %92, %93 : vector<32x128xf32>
    %95 = arith.mulf %94, %59 : vector<32x128xf32>
    %c64_i32_39 = arith.constant 64 : i32
    %96 = tpu.dynamic_rotate %95 by %c64_i32_39 dim 1 : vector<32x128xf32>, i32 -> vector<32x128xf32>
    %97 = arith.addf %95, %96 : vector<32x128xf32>
    %98 = arith.mulf %97, %97 : vector<32x128xf32>
    %99 = arith.truncf %98 : vector<32x128xf32> to vector<32x128xbf16>
    %c0_40 = arith.constant 0 : index
    %c0_41 = arith.constant 0 : index
    %100 = vector.load %arg8[%c0_40, %c0_41] : memref<128x2xbf16, #tpu.memory_space<vmem>>, vector<128x2xbf16>
    %cst_42 = arith.constant dense<0.000000e+00> : vector<32x2xf32>
    %101 = tpu.matmul %99, %100, %cst_42 {dimension_numbers = #tpu.dot_dimension_numbers<[1], [0], [0], [1], [0, 0, 1, 1], [], []>} : vector<32x128xbf16>, vector<128x2xbf16>, vector<32x2xf32> -> vector<32x2xf32>
    %cst_43 = arith.constant 9.99999993E-9 : f32
    %102 = vector.broadcast %cst_43 : f32 to vector<32x2xf32>
    %103 = arith.addf %101, %102 : vector<32x2xf32>
    %104 = math.rsqrt %103 : vector<32x2xf32>
    %105 = arith.truncf %104 : vector<32x2xf32> to vector<32x2xbf16>
    %c0_44 = arith.constant 0 : index
    %c0_45 = arith.constant 0 : index
    %106 = vector.load %arg9[%c0_44, %c0_45] : memref<2x128xbf16, #tpu.memory_space<vmem>>, vector<2x128xbf16>
    %cst_46 = arith.constant dense<0.000000e+00> : vector<32x128xf32>
    %107 = tpu.matmul %105, %106, %cst_46 {dimension_numbers = #tpu.dot_dimension_numbers<[1], [0], [0], [1], [0, 0, 1, 1], [], []>} : vector<32x2xbf16>, vector<2x128xbf16>, vector<32x128xf32> -> vector<32x128xf32>
    %108 = arith.mulf %97, %107 : vector<32x128xf32>
    %109 = vector.broadcast %5 : vector<1x128xf32> to vector<32x128xf32>
    %110 = arith.mulf %108, %109 : vector<32x128xf32>
    %111 = vector.broadcast %6 : vector<1x128xf32> to vector<32x128xf32>
    %112 = arith.addf %110, %111 : vector<32x128xf32>
    %113 = arith.truncf %112 : vector<32x128xf32> to vector<32x128xbf16>
    %c0_47 = arith.constant 0 : index
    %c0_48 = arith.constant 0 : index
    %114 = vector.load %arg5[%c0_47, %c0_48] : memref<384x64xbf16, #tpu.memory_space<vmem>>, vector<128x64xbf16>
    %cst_49 = arith.constant dense<0.000000e+00> : vector<32x64xf32>
    %115 = tpu.matmul %113, %114, %cst_49 {dimension_numbers = #tpu.dot_dimension_numbers<[1], [0], [0], [1], [0, 0, 1, 1], [], []>} : vector<32x128xbf16>, vector<128x64xbf16>, vector<32x64xf32> -> vector<32x64xf32>
    %cst_50 = arith.constant 5.000000e-01 : f32
    %116 = vector.broadcast %cst_50 : f32 to vector<32x64xf32>
    %117 = arith.mulf %116, %27 : vector<32x64xf32>
    %118 = math.tanh %117 : vector<32x64xf32>
    %cst_51 = arith.constant 1.000000e+00 : f32
    %119 = vector.broadcast %cst_51 : f32 to vector<32x64xf32>
    %120 = arith.addf %118, %119 : vector<32x64xf32>
    %cst_52 = arith.constant 5.000000e-01 : f32
    %121 = vector.broadcast %cst_52 : f32 to vector<32x64xf32>
    %122 = arith.mulf %121, %120 : vector<32x64xf32>
    %123 = arith.mulf %115, %122 : vector<32x64xf32>
    %124 = arith.addf %123, %0 : vector<32x64xf32>
    %cst_53 = arith.constant dense<0.000000e+00> : vector<32xf32>
    %125 = vector.multi_reduction <add>, %124, %cst_53 [1] : vector<32x64xf32> to vector<32xf32>
    %126 = vector.shape_cast %125 : vector<32xf32> to vector<32x1xf32>
    %cst_54 = arith.constant 6.400000e+01 : f32
    %127 = vector.broadcast %cst_54 : f32 to vector<32x1xf32>
    %128 = arith.divf %126, %127 : vector<32x1xf32>
    %129 = vector.broadcast %128 : vector<32x1xf32> to vector<32x64xf32>
    %130 = arith.subf %124, %129 : vector<32x64xf32>
    %131 = vector.broadcast %128 : vector<32x1xf32> to vector<32x64xf32>
    %132 = arith.subf %124, %131 : vector<32x64xf32>
    %133 = arith.mulf %130, %132 : vector<32x64xf32>
    %cst_55 = arith.constant dense<0.000000e+00> : vector<32xf32>
    %134 = vector.multi_reduction <add>, %133, %cst_55 [1] : vector<32x64xf32> to vector<32xf32>
    %135 = vector.shape_cast %134 : vector<32xf32> to vector<32x1xf32>
    %cst_56 = arith.constant 6.400000e+01 : f32
    %136 = vector.broadcast %cst_56 : f32 to vector<32x1xf32>
    %137 = arith.divf %135, %136 : vector<32x1xf32>
    %138 = vector.broadcast %128 : vector<32x1xf32> to vector<32x64xf32>
    %139 = arith.subf %124, %138 : vector<32x64xf32>
    %cst_57 = arith.constant 9.99999974E-6 : f32
    %140 = vector.broadcast %cst_57 : f32 to vector<32x1xf32>
    %141 = arith.addf %137, %140 : vector<32x1xf32>
    %142 = math.rsqrt %141 : vector<32x1xf32>
    %143 = vector.broadcast %142 : vector<32x1xf32> to vector<32x64xf32>
    %144 = arith.mulf %139, %143 : vector<32x64xf32>
    %145 = vector.broadcast %3 : vector<1x64xf32> to vector<32x64xf32>
    %146 = arith.mulf %144, %145 : vector<32x64xf32>
    %147 = vector.broadcast %4 : vector<1x64xf32> to vector<32x64xf32>
    %148 = arith.addf %146, %147 : vector<32x64xf32>
    %149 = arith.mulf %148, %25 : vector<32x64xf32>
    %150 = arith.addf %149, %26 : vector<32x64xf32>
    %151 = arith.truncf %150 : vector<32x64xf32> to vector<32x64xbf16>
    %c0_58 = arith.constant 0 : index
    %c640 = arith.constant 640 : index
    %152 = vector.load %arg4[%c0_58, %c640] : memref<64x896xbf16, #tpu.memory_space<vmem>>, vector<64x256xbf16>
    %cst_59 = arith.constant dense<0.000000e+00> : vector<32x256xf32>
    %153 = tpu.matmul %151, %152, %cst_59 {dimension_numbers = #tpu.dot_dimension_numbers<[1], [0], [0], [1], [0, 0, 1, 1], [], []>} : vector<32x64xbf16>, vector<64x256xbf16>, vector<32x256xf32> -> vector<32x256xf32>
    %154 = vector.broadcast %9 : vector<1x256xf32> to vector<32x256xf32>
    %155 = arith.addf %153, %154 : vector<32x256xf32>
    %156 = vector.broadcast %10 : vector<1x256xf32> to vector<32x256xf32>
    %157 = arith.mulf %155, %156 : vector<32x256xf32>
    %158 = math.sin %157 : vector<32x256xf32>
    %159 = vector.broadcast %11 : vector<1x256xf32> to vector<32x256xf32>
    %160 = arith.mulf %159, %158 : vector<32x256xf32>
    %161 = arith.mulf %160, %158 : vector<32x256xf32>
    %162 = arith.addf %155, %161 : vector<32x256xf32>
    %163 = arith.truncf %162 : vector<32x256xf32> to vector<32x256xbf16>
    %c128_60 = arith.constant 128 : index
    %c0_61 = arith.constant 0 : index
    %164 = vector.load %arg5[%c128_60, %c0_61] : memref<384x64xbf16, #tpu.memory_space<vmem>>, vector<256x64xbf16>
    %cst_62 = arith.constant dense<0.000000e+00> : vector<32x64xf32>
    %165 = tpu.matmul %163, %164, %cst_62 {dimension_numbers = #tpu.dot_dimension_numbers<[1], [0], [0], [1], [0, 0, 1, 1], [], []>} : vector<32x256xbf16>, vector<256x64xbf16>, vector<32x64xf32> -> vector<32x64xf32>
    %166 = vector.broadcast %7 : vector<1x64xf32> to vector<32x64xf32>
    %167 = arith.addf %165, %166 : vector<32x64xf32>
    %cst_63 = arith.constant 5.000000e-01 : f32
    %168 = vector.broadcast %cst_63 : f32 to vector<32x64xf32>
    %169 = arith.mulf %168, %28 : vector<32x64xf32>
    %170 = math.tanh %169 : vector<32x64xf32>
    %cst_64 = arith.constant 1.000000e+00 : f32
    %171 = vector.broadcast %cst_64 : f32 to vector<32x64xf32>
    %172 = arith.addf %170, %171 : vector<32x64xf32>
    %cst_65 = arith.constant 5.000000e-01 : f32
    %173 = vector.broadcast %cst_65 : f32 to vector<32x64xf32>
    %174 = arith.mulf %173, %172 : vector<32x64xf32>
    %175 = arith.mulf %167, %174 : vector<32x64xf32>
    %176 = arith.addf %175, %124 : vector<32x64xf32>
    %c0_66 = arith.constant 0 : index
    %c0_67 = arith.constant 0 : index
    %177 = vector.load %arg12[%c0_66, %c0_67] : memref<32x64xf32, #tpu.memory_space<vmem>>, vector<32x64xf32>
    tpu.vector_store %arg12[%c0_66, %c0_67], %176 {strides = array<i32>} : memref<32x64xf32, #tpu.memory_space<vmem>>, vector<32x64xf32>,
    return
  }
  func.func @transform_0(%arg0: i32) -> (i32, i32) {
    %c0_i32 = arith.constant 0 : i32
    %c0_i32_0 = arith.constant 0 : i32
    %c0_i32_1 = arith.constant 0 : i32
    return %c0_i32, %c0_i32_0 : i32, i32
  }
  func.func @transform_1(%arg0: i32) -> (i32, i32) {
    %c0_i32 = arith.constant 0 : i32
    %c0_i32_0 = arith.constant 0 : i32
    %c0_i32_1 = arith.constant 0 : i32
    return %c0_i32, %c0_i32_0 : i32, i32
  }
  func.func @transform_2(%arg0: i32) -> (i32, i32) {
    %c0_i32 = arith.constant 0 : i32
    %c0_i32_0 = arith.constant 0 : i32
    %c0_i32_1 = arith.constant 0 : i32
    return %c0_i32, %c0_i32_0 : i32, i32
  }
  func.func @transform_3(%arg0: i32) -> (i32, i32) {
    %c0_i32 = arith.constant 0 : i32
    %c0_i32_0 = arith.constant 0 : i32
    %c0_i32_1 = arith.constant 0 : i32
    return %c0_i32, %c0_i32_0 : i32, i32
  }
  func.func @transform_4(%arg0: i32) -> (i32, i32) {
    %c0_i32 = arith.constant 0 : i32
    %c0_i32_0 = arith.constant 0 : i32
    %c0_i32_1 = arith.constant 0 : i32
    return %c0_i32, %c0_i32_0 : i32, i32
  }
  func.func @transform_5(%arg0: i32) -> (i32, i32) {
    %c0_i32 = arith.constant 0 : i32
    %c0_i32_0 = arith.constant 0 : i32
    %c0_i32_1 = arith.constant 0 : i32
    return %c0_i32, %c0_i32_0 : i32, i32
  }
  func.func @transform_6(%arg0: i32) -> (i32, i32) {
    %c0_i32 = arith.constant 0 : i32
    %c0_i32_0 = arith.constant 0 : i32
    %c0_i32_1 = arith.constant 0 : i32
    return %c0_i32, %c0_i32_0 : i32, i32
  }
  func.func @transform_7(%arg0: i32) -> (i32, i32) {
    %c0_i32 = arith.constant 0 : i32
    %c0_i32_0 = arith.constant 0 : i32
    %c0_i32_1 = arith.constant 0 : i32
    return %c0_i32, %c0_i32_0 : i32, i32
  }
  func.func @transform_8(%arg0: i32) -> (i32, i32) {
    %c0_i32 = arith.constant 0 : i32
    %c0_i32_0 = arith.constant 0 : i32
    %c0_i32_1 = arith.constant 0 : i32
    return %c0_i32, %c0_i32_0 : i32, i32
  }
  func.func @transform_9(%arg0: i32) -> (i32, i32) {
    %c0_i32 = arith.constant 0 : i32
    %c0_i32_0 = arith.constant 0 : i32
    %c0_i32_1 = arith.constant 0 : i32
    return %c0_i32, %c0_i32_0 : i32, i32
  }
  func.func @transform_10(%arg0: i32) -> (i32, i32) {
    %c0_i32 = arith.constant 0 : i32
    %c0_i32_0 = arith.constant 0 : i32
    %c0_i32_1 = arith.constant 0 : i32
    return %c0_i32, %c0_i32_0 : i32, i32
  }
  func.func @transform_11(%arg0: i32) -> (i32, i32) {
    %c0_i32 = arith.constant 0 : i32
    %c0_i32_0 = arith.constant 0 : i32
    %c0_i32_1 = arith.constant 0 : i32
    return %c0_i32, %c0_i32_0 : i32, i32
  }
}

</mosaic_0001>

<bundles_post_ra>
// kernel: tpu_custom_call.1
= control target key start
LH: loop header
LB: loop body
LE: loop exit
PB: predicated region body
PF: predicated region fallthrough
CT: control target
= control target key end

     0   :  { %16 = vsyncpa [#allocation3], 0  ;;  %s5566_s0 = inlined_call_operand.vmem [shape: f32[32,64], index: 0, kind: input, shape index: {}]   ;;  %s5567_s1 = inlined_call_operand.hbm [shape: f32[2,64], index: 1, kind: input, shape index: {}]   ;;  %s5568_s2 = inlined_call_operand.vmem [shape: bf16[32,2], index: 2, kind: input, shape index: {}]   ;;  %s5569_s3 = inlined_call_operand.vmem [shape: bf16[64,896], index: 3, kind: input, shape index: {}]   ;;  %s5570_s4 = inlined_call_operand.vmem [shape: bf16[384,64], index: 4, kind: input, shape index: {}]   ;;  %s5571_s5 = inlined_call_operand.vmem [shape: bf16[256,8], index: 5, kind: input, shape index: {}]   ;;  %s5572_s6 = inlined_call_operand.vmem [shape: bf16[4,128], index: 6, kind: input, shape index: {}]   ;;  %s5573_s7 = inlined_call_operand.vmem [shape: bf16[128,2], index: 7, kind: input, shape index: {}]   ;;  %s5574_s8 = inlined_call_operand.vmem [shape: bf16[2,128], index: 8, kind: input, shape index: {}]   ;;  %s5575_s9 = inlined_call_operand.vmem [shape: f32[13,384], index: 9, kind: input, shape index: {}]   ;;  %s5576_s10 = inlined_call_operand.vmem [shape: f32[32,384], index: 10, kind: input, shape index: {}]   ;;  %s5577_s11 = inlined_call_operand.hbm [shape: f32[32,64], index: 11, kind: output, shape index: {}]  }
   0x1   :  { %17 = vsyncpa [#allocation4], 0  ;;  %s25_s19 = sshll.u32 %s5567_s1, 4  ;;  %s3482_s20 = smov [#allocation2]   ;;  %s26_s19 = int_to_ptr.hbm [resolvable:$true] %s25_s19 }
   0x2   :  { %s27_s21 = sshll.u32 %s3482_s20, 4  ;;  %s28_s21 = int_to_ptr.vmem [resolvable:$true] %s27_s21 }
   0x3   :  { %30 = dma.hbm_to_vmem [thread:$0]  %s26_s19, 32, %s28_s21, [#allocation3]  }
   0x4   :  { %3478 = dma.done.wait [#allocation3], 32  }
   0x5   :  { %3479 = vsyncadd [#allocation3], 4294967264  ;;  %vm157_vm0 = vcmask 523264   ;;  %v54_v0 = vld [vmem:[%s5566_s0] sm:$0xff]  ;;  %v2943_v1 = vld [vmem:[%s5569_s3 + $0xa8] sm:$0xf] }
   0x6   :  { %v3272_v2 = vld [vmem:[%s5569_s3 + $0xc0] sm:$0xf0]  ;;  %v298_v3 = vsel %vm157_vm0, %v54_v0, 0.0  ;;  %v2931_v5 = vld [vmem:[%s5569_s3 + $0x70] sm:$0xf]  ;;  %v55_v10 = vld [vmem:[%s5566_s0 + $0x8] sm:$0xff] }
   0x7   :  { %v2944_v4 = vor.u32 %v3272_v2, %v2943_v1  ;;  %v3269_v6 = vld [vmem:[%s5569_s3 + $0x88] sm:$0xf0]  ;;  %299 = vadd.xlane.f32.xlu0 %v298_v3  ;;  %v56_v7 = vld [vmem:[%s5566_s0 + $0x10] sm:$0xff]  ;;  %v2919_v11 = vld [vmem:[%s5569_s3 + $0x38] sm:$0xf]  ;;  %v301_v14 = vsel %vm157_vm0, %v55_v10, 0.0 }
   0x8   :  { %v2932_v8 = vor.u32 %v3269_v6, %v2931_v5  ;;  %v304_v9 = vsel %vm157_vm0, %v56_v7, 0.0  ;;  %v3266_v12 = vld [vmem:[%s5569_s3 + $0x50] sm:$0xf0]  ;;  %v57_v13 = vld [vmem:[%s5566_s0 + $0x18] sm:$0xff]  ;;  %v2907_v16 = vld [vmem:[%s5569_s3] sm:$0xf] }
   0x9   :  { %165 = vmatpush.bf16.msra.mxu2 %v2944_v4  ;;  %305 = vadd.xlane.f32.xlu1 %v304_v9  ;;  %v2920_v15 = vor.u32 %v3266_v12, %v2919_v11  ;;  %v3263_v17 = vld [vmem:[%s5569_s3 + $0x18] sm:$0xf0]  ;;  %v307_v18 = vsel %vm157_vm0, %v57_v13, 0.0  ;;  %v91_v20 = vld [vmem:[#allocation2] sm:$0x3]  ;;  %v3483_v22 = vmov 64.0  }
   0xa   :  { %v2908_v19 = vor.u32 %v3263_v17, %v2907_v16  ;;  %v3603_v21 = vpack.c.bf16 %v91_v20, %v91_v20  ;;  %3366 = vrcp.f32 %v3483_v22  ;;  %vm231_vm2 = vcmask 1040384   ;;  %v3637_v52 = vld [vmem:[%s5568_s2] sm:$0xff]  ;;  %v3644_v54 = vld [vmem:[%s5568_s2 + $0x8] sm:$0xff]  ;;  %v2951_v56 = vld [vmem:[%s5569_s3 + $0xb0] sm:$0xf]  ;;  %s3484_s2 = smov 64  }
   0xb   :  { %vm224_vm3 = vcmask 15360   ;;  %v2901_v55 = vld [vmem:[%s5575_s9 + $0x7] ss:$8 sm:$0x7]  ;;  %v2939_v4 = vld [vmem:[%s5569_s3 + $0x78] sm:$0xf] }
   0xc   :  { %v3273_v57 = vld [vmem:[%s5569_s3 + $0xc8] sm:$0xf0]  ;;  %v208_v59 = vperm.slane %v2901_v55, 0  ;;  %v3270_v5 = vld [vmem:[%s5569_s3 + $0x90] sm:$0xf0]  ;;  %s3485_s20 = smov 127  }
   0xd   :  { %166 = vmatpush.bf16.msra.mxu2 %v2932_v8  ;;  %v2952_v58 = vor.u32 %v3273_v57, %v2951_v56  ;;  %v2927_v8 = vld [vmem:[%s5569_s3 + $0x40] sm:$0xf]  ;;  %v3267_v9 = vld [vmem:[%s5569_s3 + $0x58] sm:$0xf0]  ;;  %v2915_v11 = vld [vmem:[%s5569_s3 + $0x8] sm:$0xf] }
   0xe   :  { %v3264_v12 = vld [vmem:[%s5569_s3 + $0x20] sm:$0xf0]  ;;  %v3283_v16 = vld [vmem:[%s5569_s3 + $0xcc] sm:$0xf0]  ;;  %v2972_v55 = vld [vmem:[%s5569_s3 + $0xc] sm:$0xf] }
   0xf   :  { %302 = vadd.xlane.f32.xlu0 %v301_v14  ;;  %v2998_v14 = vld [vmem:[%s5569_s3 + $0xd0] sm:$0xf0]  ;;  %v3277_v56 = vld [vmem:[%s5569_s3 + $0x24] sm:$0xf0]  ;;  %v3276_v57 = vld [vmem:[%s5569_s3 + $0x10] sm:$0xf] }
  0x10   :  { %v3367_v23 = vpop.eup %3366  ;;  %s3486_s21 = smov 1   ;;  %s3487_s14 = smov 96  }
  0x11   :  { %167 = vmatpush.bf16.msra.mxu2 %v2920_v15  ;;  %308 = vadd.xlane.f32.xlu1 %v307_v18  ;;  %v311_v24 = vmul.f32 64.0, %v3367_v23  ;;  %vm315_vm1 = vweird.f32 %v3367_v23  ;;  %v2996_v15 = vld [vmem:[%s5569_s3 + $0xb4] sm:$0xf]  ;;  %v2916_v18 = vor.u32 %v3264_v12, %v2915_v11  ;;  %s3489_s17 = smov 4   ;;  %s2888_s19 = sshll.u32 %s5577_s11, 4  ;;  %s2889_s19 = int_to_ptr.hbm [resolvable:$true] %s2888_s19 }
  0x13   :  { %v312_v25 = vsub.f32 1.0, %v311_v24 }
  0x15   :  { %168 = vmatpush.bf16.msra.mxu2 %v2908_v19  ;;  %v313_v26 = vmul.f32 %v3367_v23, %v312_v25  ;;  %v2997_v19 = vor.u32 %v3283_v16, %v2996_v15 }
  0x17   :  { %v314_v27 = vadd.f32 %v3367_v23, %v313_v26 }
  0x18   :  { %2953 = vmatmul.msk.bf16.vlgmr.msra.gmra.mxu2 %vm157_vm0, %v3603_v21 }
  0x19   :  { %v3607_v28 = vsel %vm315_vm1, %v3367_v23, %v314_v27  ;;  %191 = vmatpush.bf16.msrb.mxu2 %v2952_v58  ;;  %v2973_v58 = vor.u32 %v3277_v56, %v2972_v55  ;;  %vm863_vm1 = vcmask 1041408  }
  0x7a   :  { %v300_v29 = vpop.xlane.xlu0 %299 }
  0x7b   :  { %v317_v30 = vmul.f32 %v3607_v28, %v300_v29 }
  0x7c   :  { %v306_v31 = vpop.xlane.xlu1 %305 }
  0x7d   :  { %v3610_v32 = vsub.f32 %v54_v0, %v317_v30  ;;  %v319_v33 = vmul.f32 %v3607_v28, %v306_v31  ;;  %v2988_v31 = vld [vmem:[%s5569_s3 + $0x7c] sm:$0xf] }
  0x7f   :  { %v325_v34 = vmul.f32 %v3610_v32, %v3610_v32  ;;  %v3615_v35 = vsub.f32 %v56_v7, %v319_v33  ;;  %v2940_v7 = vor.u32 %v3270_v5, %v2939_v4  ;;  %v3281_v33 = vld [vmem:[%s5569_s3 + $0x94] sm:$0xf0] }
  0x81   :  { %v329_v36 = vsel %vm157_vm0, %v325_v34, 0.0  ;;  %v327_v37 = vmul.f32 %v3615_v35, %v3615_v35  ;;  %192 = vmatpush.bf16.msrb.mxu2 %v2940_v7  ;;  %v3280_v34 = vld [vmem:[%s5569_s3 + $0x80] sm:$0xf] }
  0x82   :  { %330 = vadd.xlane.f32.xlu2 %v329_v36  ;;  %v303_v38 = vpop.xlane.xlu0 %302 }
  0x83   :  { %v318_v39 = vmul.f32 %v3607_v28, %v303_v38  ;;  %v335_v40 = vsel %vm157_vm0, %v327_v37, 0.0  ;;  %v2989_v38 = vor.u32 %v3281_v33, %v2988_v31 }
  0x84   :  { %336 = vadd.xlane.f32.xlu0 %v335_v40  ;;  %v309_v41 = vpop.xlane.xlu1 %308 }
  0x85   :  { %v3622_v42 = vsub.f32 %v55_v10, %v318_v39  ;;  %v320_v43 = vmul.f32 %v3607_v28, %v309_v41  ;;  %v2928_v10 = vor.u32 %v3267_v9, %v2927_v8  ;;  %v2990_v39 = vld [vmem:[%s5569_s3 + $0x98] sm:$0xf0]  ;;  %v2980_v41 = vld [vmem:[%s5569_s3 + $0x44] sm:$0xf] }
  0x86   :  { %v2993_v40 = vor.u32 %v3280_v34, %v2990_v39  ;;  %v59_v34 = vld [vmem:[%s5575_s9 + $0x1] ss:$0 sm:$0xff] }
  0x87   :  { %v326_v44 = vmul.f32 %v3622_v42, %v3622_v42  ;;  %v3627_v45 = vsub.f32 %v57_v13, %v320_v43  ;;  %v3282_v13 = vld [vmem:[%s5569_s3 + $0xb8] sm:$0xf]  ;;  %193 = vmatpush.bf16.msrb.mxu2 %v2928_v10  ;;  %v3279_v43 = vld [vmem:[%s5569_s3 + $0x5c] sm:$0xf0] }
  0x88   :  { %v3001_v17 = vor.u32 %v3282_v13, %v2998_v14 }
  0x89   :  { %v332_v46 = vsel %vm157_vm0, %v326_v44, 0.0  ;;  %v328_v47 = vmul.f32 %v3627_v45, %v3627_v45  ;;  %v3278_v44 = vld [vmem:[%s5569_s3 + $0x48] sm:$0xf] }
  0x8a   :  { %333 = vadd.xlane.f32.xlu2 %v332_v46 }
  0x8b   :  { %v338_v48 = vsel %vm157_vm0, %v328_v47, 0.0  ;;  %194 = vmatpush.bf16.msrb.mxu2 %v2916_v18  ;;  %v2981_v47 = vor.u32 %v3279_v43, %v2980_v41 }
  0x8c   :  { %339 = vadd.xlane.f32.xlu1 %v338_v48  ;;  %v2982_v48 = vld [vmem:[%s5569_s3 + $0x60] sm:$0xf0] }
  0x8e   :  { %2955 = vmatmul.msk.bf16.vlgmr.msrb.gmra.mxu2 %vm157_vm0, %v3603_v21 }
  0x8f   :  { %485 = vmatpush.bf16.msra.mxu2 %v2997_v19 }
  0x93   :  { %486 = vmatpush.bf16.msra.mxu2 %v2989_v38 }
  0x97   :  { %487 = vmatpush.bf16.msra.mxu2 %v2981_v47 }
  0x9b   :  { %v170_v49 = vpop.f32.mrf.mxu2  ;;  %488 = vmatpush.bf16.msra.mxu2 %v2973_v58  ;;  %v3268_v58 = vld [vmem:[%s5569_s3 + $0x74] sm:$0xf] }
  0x9c   :  { %v204_v50 = vpack.c.bf16 %v170_v49, %v170_v49 }
  0x9e   :  { %v233_v51 = vsel %vm231_vm2, %v204_v50, 0  ;;  %v2985_v50 = vor.u32 %v3278_v44, %v2982_v48 }
  0x9f   :  { %248 = vmatpush.bf16.msra.mxu3 %v233_v51 }
  0xa2   :  { %2964 = vmatmul.msk.bf16.vlgmr.msra.gmra.mxu3 %vm224_vm3, %v3637_v52 }
  0xa3   :  { %v172_v53 = vpop.f32.mrf.mxu2  ;;  %504 = vmatpush.bf16.msrb.mxu3 %v3001_v17 }
  0xa7   :  { %505 = vmatpush.bf16.msrb.mxu3 %v2993_v40 }
  0xab   :  { %506 = vmatpush.bf16.msrb.mxu3 %v2985_v50 }
  0xb2   :  { %2965 = vmatmul.msk.bf16.gmra.mxu3 %vm224_vm3, %v3644_v54 }
  0xf5   :  { %v331_v6 = vpop.xlane.xlu2 %330 }
  0xf6   :  { %v341_v22 = vmul.f32 %v331_v6, %v3607_v28 }
  0xf7   :  { %v337_v26 = vpop.xlane.xlu0 %336 }
  0xf8   :  { %v345_v24 = vadd.f32 1e-05, %v341_v22  ;;  %v343_v29 = vmul.f32 %v337_v26, %v3607_v28 }
  0xfa   :  { %3368 = vrsqrt.f32 %v345_v24  ;;  %v3718_v36 = vadd.f32 1e-05, %v343_v29  ;;  %vm355_vm4 = vweird.f32 %v345_v24  ;;  %v58_v29 = vld [vmem:[%s5575_s9] ss:$0 sm:$0xff] }
  0xfc   :  { %vm375_vm10 = vweird.f32 %v3718_v36 }
  0xfd   :  { %v334_v20 = vpop.xlane.xlu2 %333 }
  0xfe   :  { %v342_v23 = vmul.f32 %v334_v20, %v3607_v28 }
  0xff   :  { %v340_v27 = vpop.xlane.xlu1 %339 }
 0x100   :  { %v346_v25 = vadd.f32 1e-05, %v342_v23  ;;  %v344_v30 = vmul.f32 %v340_v27, %v3607_v28  ;;  %v3369_v46 = vpop.eup %3368 }
 0x101   :  { %v350_v51 = vmul.f32 %v3369_v46, %v345_v24  ;;  %vm356_vm5 = vweird.f32 %v3369_v46  ;;  %v3271_v24 = vld [vmem:[%s5569_s3 + $0xac] sm:$0xf] }
 0x102   :  { %3370 = vrsqrt.f32 %v346_v25  ;;  %v3720_v37 = vadd.f32 1e-05, %v344_v30  ;;  %vm365_vm6 = vweird.f32 %v346_v25  ;;  %vm357_vm8 = vmor %vm355_vm4, %vm356_vm5  ;;  %vm856_vm4 = vcmask 31744  }
 0x103   :  { %3372 = vrsqrt.f32 %v3718_v36 }
 0x104   :  { %3374 = vrsqrt.f32 %v3720_v37  ;;  %vm385_vm12 = vweird.f32 %v3720_v37 }
 0x108   :  { %v3371_v49 = vpop.eup %3370 }
 0x109   :  { %v360_v53 = vmul.f32 %v3371_v49, %v346_v25  ;;  %vm366_vm7 = vweird.f32 %v3371_v49  ;;  %v2945_v25 = vld [vmem:[%s5569_s3 + $0xc4] sm:$0xf0] }
 0x10a   :  { %vm367_vm9 = vmor %vm365_vm6, %vm366_vm7  ;;  %v2948_v30 = vor.u32 %v3271_v24, %v2945_v25 }
 0x10c   :  { %178 = vmatpush.bf16.msra.mxu1 %v2948_v30 }
 0x125   :  { %v250_v60 = vpop.f32.mrf.mxu3 }
 0x126   :  { %v3657_v61 = vadd.f32 %v250_v60, %v208_v59 }
 0x128   :  { %409 = vrot.lane.b32.xlu2 %v3657_v61, %s3484_s2 }
 0x12d   :  { %v252_v62 = vpop.f32.mrf.mxu3 }
 0x12e   :  { %v3661_v63 = vadd.f32 %v252_v62, %v208_v59  ;;  %v3373_v62 = vpop.eup %3372 }
 0x12f   :  { %v3375_v4 = vpop.eup %3374  ;;  %v370_v7 = vmul.f32 %v3373_v62, %v3718_v36  ;;  %vm376_vm11 = vweird.f32 %v3373_v62 }
 0x130   :  { %411 = vrot.lane.b32.xlu0 %v3661_v63, %s3484_s2  ;;  %v380_v8 = vmul.f32 %v3375_v4, %v3720_v37  ;;  %vm386_vm13 = vweird.f32 %v3375_v4  ;;  %vm377_vm14 = vmor %vm375_vm10, %vm376_vm11 }
 0x131   :  { %v371_v11 = vmul.f32 %v3373_v62, %v370_v7  ;;  %vm387_vm15 = vmor %vm385_vm12, %vm386_vm13 }
 0x132   :  { %v381_v12 = vmul.f32 %v3375_v4, %v380_v8 }
 0x133   :  { %v372_v15 = vmul.f32 0.5, %v371_v11 }
 0x134   :  { %v382_v16 = vmul.f32 0.5, %v381_v12  ;;  %v519_v12 = vld [vmem:[%s5576_s10] sm:$0xff] }
 0x135   :  { %v255_v0 = vpop.f32.mrf.mxu3  ;;  %v373_v19 = vsub.f32 1.5, %v372_v15 }
 0x136   :  { %v3665_v1 = vadd.f32 %v255_v0, %v208_v59  ;;  %v351_v0 = vmul.f32 %v3369_v46, %v350_v51  ;;  %v383_v20 = vsub.f32 1.5, %v382_v16  ;;  %v527_v16 = vld [vmem:[%s5576_s10 + $0x10] sm:$0xff] }
 0x137   :  { %v374_v26 = vmul.f32 %v3373_v62, %v373_v19 }
 0x138   :  { %413 = vrot.lane.b32.xlu1 %v3665_v1, %s3484_s2  ;;  %v352_v5 = vmul.f32 0.5, %v351_v0  ;;  %v384_v27 = vmul.f32 %v3375_v4, %v383_v20  ;;  %v3262_v0 = vld [vmem:[%s5569_s3 + $0x4] sm:$0xf] }
 0x139   :  { %v378_v31 = vsel %vm377_vm14, %v3373_v62, %v374_v26 }
 0x13a   :  { %v353_v9 = vsub.f32 1.5, %v352_v5  ;;  %v388_v33 = vsel %vm387_vm15, %v3375_v4, %v384_v27  ;;  %v391_v39 = vmul.f32 %v378_v31, %v3615_v35  ;;  %v196_v5 = vpop.f32.mrf.mxu2  ;;  %v520_v27 = vld [vmem:[%s5576_s10 + $0x18] sm:$0xff] }
 0x13b   :  { %v392_v37 = vmul.f32 %v388_v33, %v3627_v45 }
 0x13c   :  { %v354_v13 = vmul.f32 %v3369_v46, %v353_v9 }
 0x13d   :  { %v257_v2 = vpop.f32.mrf.mxu3  ;;  %v396_v47 = vmul.f32 %v392_v37, %v58_v29  ;;  %v525_v37 = vld [vmem:[%s5576_s10 + $0x38] sm:$0xff] }
 0x13e   :  { %v3669_v3 = vadd.f32 %v257_v2, %v208_v59  ;;  %v2974_v59 = vld [vmem:[%s5569_s3 + $0x28] sm:$0xf0]  ;;  %v361_v2 = vmul.f32 %v3371_v49, %v360_v53  ;;  %v358_v17 = vsel %vm357_vm8, %v3369_v46, %v354_v13 }
 0x13f   :  { %v2977_v60 = vor.u32 %v3276_v57, %v2974_v59  ;;  %v389_v22 = vmul.f32 %v358_v17, %v3610_v32  ;;  %v400_v51 = vadd.f32 %v396_v47, %v59_v34  ;;  %v2933_v59 = vld [vmem:[%s5569_s3 + $0x8c] sm:$0xf0]  ;;  %v523_v13 = vld [vmem:[%s5576_s10 + $0x8] sm:$0xff] }
 0x140   :  { %415 = vrot.lane.b32.xlu2 %v3669_v3, %s3484_s2  ;;  %v362_v6 = vmul.f32 0.5, %v361_v2  ;;  %v2909_v2 = vld [vmem:[%s5569_s3 + $0x1c] sm:$0xf0] }
 0x141   :  { %507 = vmatpush.bf16.msrb.mxu3 %v2977_v60  ;;  %v393_v32 = vmul.f32 %v389_v22, %v58_v29  ;;  %v404_v35 = vmul.f32 %v400_v51, %v3669_v3  ;;  %v2936_v3 = vor.u32 %v3268_v58, %v2933_v59  ;;  %v2921_v60 = vld [vmem:[%s5569_s3 + $0x54] sm:$0xf0]  ;;  %v2912_v4 = vor.u32 %v3262_v0, %v2909_v2  ;;  %v3290_v58 = vld [vmem:[%s5571_s5 + $0x30] sm:$0xff] }
 0x142   :  { %v363_v10 = vsub.f32 1.5, %v362_v6  ;;  %v206_v6 = vpack.c.bf16 %v196_v5, %v196_v5  ;;  %v198_v8 = vpop.f32.mrf.mxu2  ;;  %v530_v51 = vld [vmem:[%s5576_s10 + $0x58] sm:$0xff]  ;;  %v3298_v59 = vld [vmem:[%s5571_s5 + $0x70] sm:$0xff] }
 0x143   :  { %v397_v36 = vadd.f32 %v393_v32, %v59_v34  ;;  %179 = vmatpush.bf16.msra.mxu1 %v2936_v3  ;;  %v528_v32 = vld [vmem:[%s5576_s10 + $0x28] sm:$0xff]  ;;  %v3287_v0 = vld [vmem:[%s5571_s5 + $0x18] sm:$0xff]  ;;  %v3294_v5 = vld [vmem:[%s5571_s5 + $0x50] sm:$0xff] }
 0x144   :  { %v364_v14 = vmul.f32 %v3371_v49, %v363_v10  ;;  %v239_v7 = vsel %vm231_vm2, %v206_v6, 0  ;;  %v3297_v3 = vld [vmem:[%s5571_s5 + $0x68] sm:$0xff]  ;;  %v3295_v2 = vld [vmem:[%s5571_s5 + $0x58] sm:$0xff]  ;;  %v3284_v8 = vld [vmem:[%s5571_s5] sm:$0xff] }
 0x145   :  { %v401_v41 = vmul.f32 %v397_v36, %v3657_v61  ;;  %v3285_v6 = vld [vmem:[%s5571_s5 + $0x8] sm:$0xff] }
 0x146   :  { %v368_v18 = vsel %vm367_vm9, %v3371_v49, %v364_v14  ;;  %v395_v49 = vmul.f32 %v391_v39, %v58_v29 }
 0x147   :  { %v390_v23 = vmul.f32 %v368_v18, %v3622_v42 }
 0x148   :  { %v399_v45 = vadd.f32 %v395_v49, %v59_v34  ;;  %v522_v49 = vld [vmem:[%s5576_s10 + $0x48] sm:$0xff] }
 0x149   :  { %v394_v42 = vmul.f32 %v390_v23, %v58_v29  ;;  %v524_v23 = vld [vmem:[%s5576_s10 + $0x20] sm:$0xff] }
 0x14a   :  { %v403_v55 = vmul.f32 %v399_v45, %v3665_v1  ;;  %v3265_v1 = vld [vmem:[%s5569_s3 + $0x3c] sm:$0xf] }
 0x14b   :  { %v398_v38 = vadd.f32 %v394_v42, %v59_v34  ;;  %v2924_v62 = vor.u32 %v3265_v1, %v2921_v60  ;;  %v3289_v1 = vld [vmem:[%s5571_s5 + $0x28] sm:$0xff]  ;;  %v3288_v60 = vld [vmem:[%s5571_s5 + $0x20] sm:$0xff] }
 0x14d   :  { %v402_v43 = vmul.f32 %v398_v38, %v3661_v63  ;;  %180 = vmatpush.bf16.msra.mxu1 %v2924_v62  ;;  %v3296_v62 = vld [vmem:[%s5571_s5 + $0x60] sm:$0xff] }
 0x151   :  { %181 = vmatpush.bf16.msra.mxu1 %v2912_v4  ;;  %v3286_v4 = vld [vmem:[%s5571_s5 + $0x10] sm:$0xff] }
 0x154   :  { %2954 = vmatmul.msk.bf16.vlgmr.msra.gmra.mxu1 %vm157_vm0, %v3603_v21 }
 0x155   :  { %286 = vmatpush.bf16.msrb.mxu1 %v239_v7  ;;  %v3293_v7 = vld [vmem:[%s5571_s5 + $0x48] sm:$0xff] }
 0x164   :  { %2968 = vmatmul.msk.bf16.vlgmr.msrb.gmra.mxu1 %vm224_vm3, %v3637_v52 }
 0x174   :  { %2969 = vmatmul.msk.bf16.gmra.mxu1 %vm224_vm3, %v3644_v54 }
 0x182   :  { %v410_v40 = vpop.permute.xlu2 %409 }
 0x183   :  { %v421_v46 = vadd.f32 %v410_v40, %v401_v41  ;;  %v529_v41 = vld [vmem:[%s5576_s10 + $0x40] sm:$0xff] }
 0x19a   :  { %v416_v53 = vpop.permute.xlu2 %415 }
 0x19b   :  { %v424_v56 = vadd.f32 %v416_v53, %v404_v35 }
 0x1a2   :  { %v412_v44 = vpop.permute.xlu0 %411 }
 0x1a3   :  { %v422_v48 = vadd.f32 %v412_v44, %v402_v43 }
 0x1a5   :  { %v425_v50 = vpack.c.bf16 %v422_v48, %v421_v46 }
 0x1a7   :  { %3002 = vmatmul.msk.bf16.vlgmr.msra.gmra.mxu2 %vm157_vm0, %v425_v50  ;;  %3004 = vmatmul.msk.bf16.vlgmr.msrb.gmra.mxu3 %vm157_vm0, %v425_v50  ;;  %v526_v50 = vld [vmem:[%s5576_s10 + $0x50] sm:$0xff] }
 0x1aa   :  { %v414_v61 = vpop.permute.xlu1 %413 }
 0x1ab   :  { %v423_v63 = vadd.f32 %v414_v61, %v403_v55 }
 0x1ad   :  { %v426_v57 = vpack.c.bf16 %v424_v56, %v423_v63 }
 0x1b7   :  { %3003 = vmatmul.msk.bf16.gmra.mxu2 %vm157_vm0, %v426_v57  ;;  %3005 = vmatmul.msk.bf16.gmra.mxu3 %vm157_vm0, %v426_v57  ;;  %v3299_v57 = vld [vmem:[%s5571_s5 + $0x78] sm:$0xff] }
 0x1b8   :  { %742 = vmatpush.bf16.msra.mxu1 %v3299_v57 }
 0x1bc   :  { %743 = vmatpush.bf16.msra.mxu1 %v3298_v59 }
 0x1c0   :  { %744 = vmatpush.bf16.msra.mxu1 %v3297_v3  ;;  %v855_v3 = vld [vmem:[%s5572_s6] sm:$0x3]  ;;  %s3498_s6 = smov 128  }
 0x1c4   :  { %745 = vmatpush.bf16.msra.mxu1 %v3296_v62 }
 0x1c8   :  { %746 = vmatpush.bf16.msra.mxu1 %v3295_v2 }
 0x1cc   :  { %747 = vmatpush.bf16.msra.mxu1 %v3294_v5 }
 0x1d0   :  { %748 = vmatpush.bf16.msra.mxu1 %v3293_v7 }
 0x1d1   :  { %v183_v15 = vpop.f32.mrf.mxu1 }
 0x1d2   :  { %v205_v19 = vpack.c.bf16 %v183_v15, %v183_v15 }
 0x1d4   :  { %v236_v24 = vsel %vm231_vm2, %v205_v19, 0 }
 0x1d5   :  { %267 = vmatpush.bf16.msra.mxu0 %v236_v24 }
 0x1d8   :  { %2966 = vmatmul.msk.bf16.vlgmr.msra.gmra.mxu0 %vm224_vm3, %v3637_v52  ;;  %v521_v52 = vld [vmem:[%s5576_s10 + $0x30] sm:$0xff] }
 0x1d9   :  { %v185_v31 = vpop.f32.mrf.mxu1 }
 0x1e8   :  { %2967 = vmatmul.msk.bf16.gmra.mxu0 %vm224_vm3, %v3644_v54  ;;  %v3291_v54 = vld [vmem:[%s5571_s5 + $0x38] sm:$0xff] }
 0x1e9   :  { %723 = vmatpush.bf16.msrb.mxu0 %v3291_v54 }
 0x1ed   :  { %724 = vmatpush.bf16.msrb.mxu0 %v3290_v58 }
 0x1f1   :  { %725 = vmatpush.bf16.msrb.mxu0 %v3289_v1 }
 0x1f5   :  { %726 = vmatpush.bf16.msrb.mxu0 %v3288_v60  ;;  %v865_v60 = vsel %vm863_vm1, %v855_v3, 0 }
 0x1f6   :  { %874 = vmatpush.bf16.msrb.mxu2 %v865_v60 }
 0x1f9   :  { %727 = vmatpush.bf16.msrb.mxu0 %v3287_v0 }
 0x1fd   :  { %728 = vmatpush.bf16.msrb.mxu0 %v3286_v4 }
 0x201   :  { %729 = vmatpush.bf16.msrb.mxu0 %v3285_v6 }
 0x205   :  { %730 = vmatpush.bf16.msrb.mxu0 %v3284_v8 }
 0x22a   :  { %v490_v9 = vpop.f32.mrf.mxu2 }
 0x22b   :  { %551 = vrot.lane.b32.xlu1 %v490_v9, %s3485_s20  ;;  %535 = vrot.lane.b32.xlu0 %v490_v9, %s3486_s21  ;;  %v531_v20 = vmul.f32 %v519_v12, %v490_v9  ;;  %v3292_v9 = vld [vmem:[%s5571_s5 + $0x40] sm:$0xff]  ;;  %s3488_s5 = smov 124  }
 0x22c   :  { %749 = vmatpush.bf16.msra.mxu1 %v3292_v9 }
 0x232   :  { %v492_v10 = vpop.f32.mrf.mxu2 }
 0x233   :  { %553 = vrot.lane.b32.xlu0 %v492_v10, %s3485_s20  ;;  %537 = vrot.lane.b32.xlu2 %v492_v10, %s3486_s21  ;;  %v532_v42 = vmul.f32 %v520_v27, %v492_v10 }
 0x23a   :  { %v495_v21 = vpop.f32.mrf.mxu2 }
 0x23b   :  { %555 = vrot.lane.b32.xlu0 %v495_v21, %s3485_s20  ;;  %539 = vrot.lane.b32.xlu2 %v495_v21, %s3486_s21  ;;  %v533_v43 = vmul.f32 %v521_v52, %v495_v21 }
 0x242   :  { %v497_v11 = vpop.f32.mrf.mxu2 }
 0x243   :  { %557 = vrot.lane.b32.xlu2 %v497_v11, %s3485_s20  ;;  %541 = vrot.lane.b32.xlu1 %v497_v11, %s3486_s21  ;;  %v534_v35 = vmul.f32 %v522_v49, %v497_v11  ;;  %s3499_s20 = smov 8  }
 0x28d   :  { %v538_v14 = vpop.permute.xlu2 %537 }
 0x28e   :  { %v544_v29 = vmul.f32 %v538_v14, %v524_v23 }
 0x290   :  { %v548_v34 = vadd.f32 %v544_v29, %v532_v42  ;;  %v3921_v42 = vpop.f32.mrf.mxu1 }
 0x295   :  { %v540_v38 = vpop.permute.xlu2 %539 }
 0x296   :  { %v545_v40 = vmul.f32 %v540_v38, %v525_v37 }
 0x298   :  { %v549_v46 = vadd.f32 %v545_v40, %v533_v43 }
 0x29d   :  { %v552_v17 = vpop.permute.xlu1 %551  ;;  %v536_v18 = vpop.permute.xlu0 %535 }
 0x29e   :  { %v543_v22 = vmul.f32 %v536_v18, %v523_v13  ;;  %v559_v25 = vmul.f32 %v552_v17, %v527_v16  ;;  %v558_v45 = vpop.permute.xlu2 %557 }
 0x29f   :  { %v562_v61 = vmul.f32 %v558_v45, %v530_v51 }
 0x2a0   :  { %v547_v26 = vadd.f32 %v543_v22, %v531_v20 }
 0x2a2   :  { %v3820_v30 = vadd.f32 %v559_v25, %v547_v26 }
 0x2a4   :  { %579 = vrot.lane.b32.xlu2 %v3820_v30, %s3487_s14  ;;  %567 = vrot.lane.b32.xlu1 %v3820_v30, %s3484_s2 }
 0x2a5   :  { %v554_v33 = vpop.permute.xlu0 %553 }
 0x2a6   :  { %v560_v36 = vmul.f32 %v554_v33, %v528_v32  ;;  %v3925_v33 = vpop.f32.mrf.mxu1 }
 0x2a8   :  { %v3834_v39 = vadd.f32 %v560_v36, %v548_v34 }
 0x2aa   :  { %569 = vrot.lane.b32.xlu0 %v3834_v39, %s3484_s2 }
 0x2ac   :  { %581 = vrot.lane.b32.xlu1 %v3834_v39, %s3487_s14 }
 0x2ad   :  { %v556_v44 = vpop.permute.xlu0 %555 }
 0x2ae   :  { %v561_v47 = vmul.f32 %v556_v44, %v529_v41  ;;  %v3929_v36 = vpop.f32.mrf.mxu1 }
 0x2b0   :  { %v3846_v48 = vadd.f32 %v561_v47, %v549_v46 }
 0x2b2   :  { %571 = vrot.lane.b32.xlu0 %v3846_v48, %s3484_s2 }
 0x2b4   :  { %583 = vrot.lane.b32.xlu1 %v3846_v48, %s3487_s14 }
 0x2b5   :  { %v542_v53 = vpop.permute.xlu1 %541 }
 0x2b6   :  { %v546_v55 = vmul.f32 %v542_v53, %v526_v50  ;;  %v3933_v38 = vpop.f32.mrf.mxu1 }
 0x2b8   :  { %v550_v56 = vadd.f32 %v546_v55, %v534_v35 }
 0x2ba   :  { %v566_v63 = vadd.f32 %v562_v61, %v550_v56 }
 0x2bc   :  { %585 = vrot.lane.b32.xlu0 %v566_v63, %s3487_s14  ;;  %573 = vrot.lane.b32.xlu2 %v566_v63, %s3484_s2 }
 0x2fe   :  { %v580_v21 = vpop.permute.xlu2 %579 }
 0x2ff   :  { %v587_v15 = vmul.f32 %v580_v21, %v3820_v30 }
 0x316   :  { %v568_v10 = vpop.permute.xlu1 %567  ;;  %v574_v20 = vpop.permute.xlu2 %573 }
 0x317   :  { %v575_v12 = vmul.f32 %v568_v10, %v3820_v30  ;;  %v578_v24 = vmul.f32 %v574_v20, %v566_v63  ;;  %v3919_v30 = vpop.f32.mrf.mxu0 }
 0x31c   :  { %v570_v11 = vpop.permute.xlu0 %569 }
 0x31d   :  { %v576_v13 = vmul.f32 %v570_v11, %v3834_v39 }
 0x31e   :  { %v582_v14 = vpop.permute.xlu1 %581 }
 0x31f   :  { %v591_v16 = vpack.c.bf16 %v576_v13, %v575_v12  ;;  %v588_v17 = vmul.f32 %v582_v14, %v3834_v39  ;;  %v3923_v31 = vpop.f32.mrf.mxu0 }
 0x321   :  { %v592_v18 = vpack.c.bf16 %v588_v17, %v587_v15  ;;  %731 = vmatmul.bf16.vlgmr.msrb.gmra.mxu0 %v591_v16 }
 0x323   :  { %750 = vmatmul.bf16.vlgmr.msra.gmra.mxu1 %v592_v18 }
 0x324   :  { %v572_v19 = vpop.permute.xlu0 %571 }
 0x325   :  { %v577_v22 = vmul.f32 %v572_v19, %v3846_v48 }
 0x326   :  { %v584_v23 = vpop.permute.xlu1 %583 }
 0x327   :  { %v589_v26 = vmul.f32 %v584_v23, %v3846_v48  ;;  %v593_v29 = vpack.c.bf16 %v578_v24, %v577_v22  ;;  %v3927_v34 = vpop.f32.mrf.mxu0 }
 0x32e   :  { %v586_v25 = vpop.permute.xlu0 %585 }
 0x32f   :  { %v590_v27 = vmul.f32 %v586_v25, %v566_v63  ;;  %v3931_v37 = vpop.f32.mrf.mxu0 }
 0x331   :  { %736 = vmatmul.bf16.gmra.mxu0 %v593_v29  ;;  %v594_v32 = vpack.c.bf16 %v590_v27, %v589_v26 }
 0x333   :  { %755 = vmatmul.bf16.gmra.mxu1 %v594_v32 }
 0x39e   :  { %v732_v39 = vpop.f32.mrf.mxu0 }
 0x3a0   :  { %v751_v52 = vpop.f32.mrf.mxu1 }
 0x3a1   :  { %v752_v40 = vadd.f32 %v751_v52, %v732_v39  ;;  %v73_v52 = vld [vmem:[%s5575_s9 + $0x1b] ss:$0 sm:$0xff] }
 0x3a3   :  { %765 = vrot.lane.b32.xlu2 %v752_v40, %s3488_s5 }
 0x3a6   :  { %v734_v41 = vpop.f32.mrf.mxu0 }
 0x3a8   :  { %v753_v43 = vpop.f32.mrf.mxu1 }
 0x3a9   :  { %v754_v44 = vadd.f32 %v753_v43, %v734_v41 }
 0x3ab   :  { %767 = vrot.lane.b32.xlu1 %v754_v44, %s3488_s5 }
 0x3ae   :  { %v737_v46 = vpop.f32.mrf.mxu0 }
 0x3b0   :  { %v756_v47 = vpop.f32.mrf.mxu1 }
 0x3b1   :  { %v757_v48 = vadd.f32 %v756_v47, %v737_v46 }
 0x3b3   :  { %769 = vrot.lane.b32.xlu0 %v757_v48, %s3488_s5 }
 0x3b6   :  { %v739_v49 = vpop.f32.mrf.mxu0 }
 0x3b8   :  { %v758_v50 = vpop.f32.mrf.mxu1 }
 0x3b9   :  { %v759_v51 = vadd.f32 %v758_v50, %v739_v49 }
 0x3bb   :  { %771 = vrot.lane.b32.xlu2 %v759_v51, %s3488_s5 }
 0x3fd   :  { %v766_v45 = vpop.permute.xlu2 %765 }
 0x3fe   :  { %v777_v53 = vmax.f32 %v752_v40, %v766_v45 }
 0x400   :  { %797 = vrot.lane.b32.xlu1 %v777_v53, %s3489_s17  ;;  %v781_v12 = vsub.f32 %v752_v40, %v777_v53 }
 0x402   :  { %v785_v13 = vmul.f32 1.442695, %v781_v12  ;;  %v3304_v12 = vld [vmem:[%s5573_s7 + $0x20] sm:$0xff] }
 0x415   :  { %v772_v35 = vpop.permute.xlu2 %771 }
 0x416   :  { %v780_v55 = vmax.f32 %v759_v51, %v772_v35 }
 0x418   :  { %803 = vrot.lane.b32.xlu1 %v780_v55, %s3489_s17  ;;  %v784_v25 = vsub.f32 %v759_v51, %v780_v55 }
 0x41a   :  { %v791_v27 = vmul.f32 1.442695, %v784_v25 }
 0x41d   :  { %v768_v61 = vpop.permute.xlu1 %767 }
 0x41e   :  { %v778_v56 = vmax.f32 %v754_v44, %v768_v61 }
 0x420   :  { %799 = vrot.lane.b32.xlu0 %v778_v56, %s3489_s17  ;;  %v782_v14 = vsub.f32 %v754_v44, %v778_v56 }
 0x422   :  { %v787_v15 = vmul.f32 1.442695, %v782_v14  ;;  %v3302_v14 = vld [vmem:[%s5573_s7 + $0x10] sm:$0xff] }
 0x425   :  { %v770_v63 = vpop.permute.xlu0 %769 }
 0x426   :  { %v779_v54 = vmax.f32 %v757_v48, %v770_v63  ;;  %v509_v63 = vpop.f32.mrf.mxu3 }
 0x428   :  { %801 = vrot.lane.b32.xlu2 %v779_v54, %s3489_s17  ;;  %v783_v19 = vsub.f32 %v757_v48, %v779_v54  ;;  %v74_v54 = vld [vmem:[%s5575_s9 + $0x1c] ss:$0 sm:$0xff] }
 0x42a   :  { %v789_v22 = vmul.f32 1.442695, %v783_v19 }
 0x472   :  { %v798_v57 = vpop.permute.xlu1 %797 }
 0x473   :  { %v809_v58 = vsub.f32 %v752_v40, %v798_v57 }
 0x475   :  { %v813_v59 = vmul.f32 1.442695, %v809_v58 }
 0x477   :  { %3376 = vpow2.f32 %v813_v59 }
 0x47d   :  { %v3377_v1 = vpop.eup %3376 }
 0x47e   :  { %825 = vrot.lane.b32.xlu0 %v3377_v1, %s3488_s5  ;;  %v511_v1 = vpop.f32.mrf.mxu3 }
 0x482   :  { %v802_v62 = vpop.permute.xlu2 %801 }
 0x483   :  { %v811_v0 = vsub.f32 %v757_v48, %v802_v62 }
 0x485   :  { %v817_v2 = vmul.f32 1.442695, %v811_v0 }
 0x486   :  { %v514_v0 = vpop.f32.mrf.mxu3 }
 0x487   :  { %3378 = vpow2.f32 %v817_v2 }
 0x48a   :  { %v804_v4 = vpop.permute.xlu1 %803 }
 0x48b   :  { %v812_v5 = vsub.f32 %v759_v51, %v804_v4 }
 0x48d   :  { %v3379_v6 = vpop.eup %3378  ;;  %v819_v7 = vmul.f32 1.442695, %v812_v5 }
 0x48e   :  { %829 = vrot.lane.b32.xlu1 %v3379_v6, %s3488_s5 }
 0x48f   :  { %3380 = vpow2.f32 %v819_v7 }
 0x492   :  { %v800_v8 = vpop.permute.xlu0 %799 }
 0x493   :  { %v810_v9 = vsub.f32 %v754_v44, %v800_v8  ;;  %v516_v8 = vpop.f32.mrf.mxu3 }
 0x495   :  { %v3381_v10 = vpop.eup %3380  ;;  %v815_v21 = vmul.f32 1.442695, %v810_v9 }
 0x496   :  { %831 = vrot.lane.b32.xlu0 %v3381_v10, %s3488_s5  ;;  %v3307_v10 = vld [vmem:[%s5573_s7 + $0x38] sm:$0xff] }
 0x497   :  { %3382 = vpow2.f32 %v815_v21  ;;  %972 = vmatpush.bf16.msra.mxu3 %v3307_v10  ;;  %v3306_v21 = vld [vmem:[%s5573_s7 + $0x30] sm:$0xff] }
 0x498   :  { %3384 = vpow2.f32 %v785_v13  ;;  %v3303_v13 = vld [vmem:[%s5573_s7 + $0x18] sm:$0xff] }
 0x499   :  { %3386 = vpow2.f32 %v787_v15  ;;  %v3301_v15 = vld [vmem:[%s5573_s7 + $0x8] sm:$0xff] }
 0x49b   :  { %973 = vmatpush.bf16.msra.mxu3 %v3306_v21 }
 0x49d   :  { %v3383_v11 = vpop.eup %3382 }
 0x49e   :  { %827 = vrot.lane.b32.xlu2 %v3383_v11, %s3488_s5  ;;  %v3385_v17 = vpop.eup %3384  ;;  %v3305_v11 = vld [vmem:[%s5573_s7 + $0x28] sm:$0xff] }
 0x49f   :  { %v3387_v20 = vpop.eup %3386  ;;  %974 = vmatpush.bf16.msra.mxu3 %v3305_v11 }
 0x4a3   :  { %975 = vmatpush.bf16.msra.mxu3 %v3304_v12 }
 0x4a7   :  { %976 = vmatpush.bf16.msra.mxu3 %v3303_v13 }
 0x4ab   :  { %977 = vmatpush.bf16.msra.mxu3 %v3302_v14 }
 0x4af   :  { %978 = vmatpush.bf16.msra.mxu3 %v3301_v15 }
 0x4f0   :  { %v826_v16 = vpop.permute.xlu0 %825 }
 0x4f1   :  { %v837_v18 = vadd.f32 %v3385_v17, %v826_v16  ;;  %v3300_v16 = vld [vmem:[%s5573_s7] sm:$0xff] }
 0x4f2   :  { %979 = vmatpush.bf16.msra.mxu3 %v3300_v16 }
 0x4f3   :  { %3388 = vrcp.f32 %v837_v18 }
 0x4f8   :  { %v828_v23 = vpop.permute.xlu2 %827 }
 0x4f9   :  { %v838_v24 = vadd.f32 %v3387_v20, %v828_v23  ;;  %v3389_v26 = vpop.eup %3388 }
 0x4fa   :  { %v845_v29 = vmul.f32 %v3389_v26, %v3385_v17  ;;  %v1033_v17 = vld [vmem:[%s5574_s8] sm:$0x1] }
 0x4fb   :  { %3390 = vrcp.f32 %v838_v24  ;;  %v1041_v18 = vsel %vm231_vm2, %v1033_v17, 0 }
 0x4fc   :  { %3392 = vpow2.f32 %v789_v22  ;;  %v849_v44 = vmul.f32 %v845_v29, %v73_v52  ;;  %1050 = vmatpush.bf16.msra.mxu0 %v1041_v18 }
 0x4fd   :  { %3394 = vpow2.f32 %v791_v27 }
 0x500   :  { %v830_v32 = vpop.permute.xlu1 %829 }
 0x501   :  { %v3391_v39 = vpop.eup %3390 }
 0x502   :  { %v3393_v40 = vpop.eup %3392  ;;  %v846_v41 = vmul.f32 %v3391_v39, %v3387_v20 }
 0x503   :  { %v839_v43 = vadd.f32 %v3393_v40, %v830_v32  ;;  %v3395_v48 = vpop.eup %3394 }
 0x504   :  { %v850_v46 = vmul.f32 %v846_v41, %v73_v52 }
 0x505   :  { %3396 = vrcp.f32 %v839_v43 }
 0x506   :  { %v853_v47 = vpack.c.bf16 %v850_v46, %v849_v44 }
 0x508   :  { %v832_v49 = vpop.permute.xlu0 %831  ;;  %3070 = vmatmul.msk.bf16.vlgmr.msrb.gmra.mxu2 %vm856_vm4, %v853_v47 }
 0x509   :  { %v840_v50 = vadd.f32 %v3395_v48, %v832_v49 }
 0x50b   :  { %3398 = vrcp.f32 %v840_v50  ;;  %v3397_v51 = vpop.eup %3396 }
 0x50c   :  { %v847_v45 = vmul.f32 %v3397_v51, %v3393_v40  ;;  %v3315_v51 = vld [vmem:[%s5570_s4 + $0x38] sm:$0xff] }
 0x50d   :  { %1140 = vmatpush.bf16.msrb.mxu1 %v3315_v51 }
 0x50e   :  { %v851_v55 = vmul.f32 %v847_v45, %v73_v52 }
 0x511   :  { %v3399_v53 = vpop.eup %3398 }
 0x512   :  { %v848_v35 = vmul.f32 %v3399_v53, %v3395_v48 }
 0x514   :  { %v852_v61 = vmul.f32 %v848_v35, %v73_v52 }
 0x516   :  { %v854_v56 = vpack.c.bf16 %v852_v61, %v851_v55  ;;  %v3314_v61 = vld [vmem:[%s5570_s4 + $0x30] sm:$0xff] }
 0x517   :  { %1141 = vmatpush.bf16.msrb.mxu1 %v3314_v61 }
 0x518   :  { %3071 = vmatmul.msk.bf16.gmra.mxu2 %vm856_vm4, %v854_v56 }
 0x58b   :  { %v876_v57 = vpop.f32.mrf.mxu2 }
 0x58c   :  { %v877_v58 = vadd.f32 %v876_v57, %v74_v54  ;;  %v3313_v57 = vld [vmem:[%s5570_s4 + $0x28] sm:$0xff] }
 0x58d   :  { %1142 = vmatpush.bf16.msrb.mxu1 %v3313_v57 }
 0x58e   :  { %v886_v59 = vmul.f32 %v877_v58, %v509_v63 }
 0x590   :  { %890 = vrot.lane.b32.xlu2 %v886_v59, %s3484_s2 }
 0x593   :  { %v878_v3 = vpop.f32.mrf.mxu2 }
 0x594   :  { %v879_v60 = vadd.f32 %v878_v3, %v74_v54 }
 0x596   :  { %v887_v62 = vmul.f32 %v879_v60, %v511_v1 }
 0x598   :  { %892 = vrot.lane.b32.xlu1 %v887_v62, %s3484_s2 }
 0x59b   :  { %v881_v2 = vpop.f32.mrf.mxu2 }
 0x59c   :  { %v882_v4 = vadd.f32 %v881_v2, %v74_v54 }
 0x59e   :  { %v888_v5 = vmul.f32 %v882_v4, %v514_v0  ;;  %v3312_v0 = vld [vmem:[%s5570_s4 + $0x20] sm:$0xff] }
 0x59f   :  { %1143 = vmatpush.bf16.msrb.mxu1 %v3312_v0 }
 0x5a0   :  { %894 = vrot.lane.b32.xlu0 %v888_v5, %s3484_s2 }
 0x5a3   :  { %v883_v6 = vpop.f32.mrf.mxu2 }
 0x5a4   :  { %v884_v7 = vadd.f32 %v883_v6, %v74_v54 }
 0x5a6   :  { %v889_v9 = vmul.f32 %v884_v7, %v516_v8 }
 0x5a8   :  { %896 = vrot.lane.b32.xlu2 %v889_v9, %s3484_s2 }
 0x5ea   :  { %v891_v19 = vpop.permute.xlu2 %890 }
 0x5eb   :  { %v3984_v20 = vadd.f32 %v891_v19, %v886_v59 }
 0x5ed   :  { %v902_v24 = vmul.f32 %v3984_v20, %v3984_v20 }
 0x602   :  { %v897_v29 = vpop.permute.xlu2 %896 }
 0x603   :  { %v3994_v39 = vadd.f32 %v897_v29, %v889_v9 }
 0x605   :  { %v905_v40 = vmul.f32 %v3994_v39, %v3994_v39 }
 0x60a   :  { %v893_v22 = vpop.permute.xlu1 %892 }
 0x60b   :  { %v3986_v23 = vadd.f32 %v893_v22, %v887_v62  ;;  %v3311_v22 = vld [vmem:[%s5570_s4 + $0x18] sm:$0xff] }
 0x60c   :  { %1144 = vmatpush.bf16.msrb.mxu1 %v3311_v22 }
 0x60d   :  { %v903_v25 = vmul.f32 %v3986_v23, %v3986_v23 }
 0x60f   :  { %v906_v26 = vpack.c.bf16 %v903_v25, %v902_v24  ;;  %v3310_v24 = vld [vmem:[%s5570_s4 + $0x10] sm:$0xff]  ;;  %v3309_v25 = vld [vmem:[%s5570_s4 + $0x8] sm:$0xff] }
 0x610   :  { %1145 = vmatpush.bf16.msrb.mxu1 %v3310_v24 }
 0x611   :  { %980 = vmatmul.bf16.vlgmr.msra.gmra.mxu3 %v906_v26  ;;  %v3308_v26 = vld [vmem:[%s5570_s4] sm:$0xff] }
 0x612   :  { %v895_v27 = vpop.permute.xlu0 %894 }
 0x613   :  { %v3992_v32 = vadd.f32 %v895_v27, %v888_v5 }
 0x614   :  { %1146 = vmatpush.bf16.msrb.mxu1 %v3309_v25 }
 0x615   :  { %v904_v52 = vmul.f32 %v3992_v32, %v3992_v32 }
 0x617   :  { %v907_v41 = vpack.c.bf16 %v905_v40, %v904_v52  ;;  %v62_v52 = vld [vmem:[%s5575_s9 + $0x4] ss:$0 sm:$0xff] }
 0x618   :  { %1147 = vmatpush.bf16.msrb.mxu1 %v3308_v26 }
 0x621   :  { %985 = vmatmul.bf16.gmra.mxu3 %v907_v41 }
 0x694   :  { %v981_v43 = vpop.f32.mrf.mxu3 }
 0x695   :  { %v982_v44 = vadd.f32 1e-08, %v981_v43 }
 0x697   :  { %3400 = vrsqrt.f32 %v982_v44  ;;  %vm997_vm6 = vweird.f32 %v982_v44 }
 0x69c   :  { %v983_v46 = vpop.f32.mrf.mxu3 }
 0x69d   :  { %v3401_v47 = vpop.eup %3400  ;;  %v984_v48 = vadd.f32 1e-08, %v983_v46 }
 0x69e   :  { %v992_v49 = vmul.f32 %v3401_v47, %v982_v44  ;;  %vm998_vm2 = vweird.f32 %v3401_v47  ;;  %v63_v44 = vld [vmem:[%s5575_s9 + $0x5] ss:$0 sm:$0xff] }
 0x69f   :  { %3402 = vrsqrt.f32 %v984_v48  ;;  %vm999_vm7 = vmor %vm997_vm6, %vm998_vm2  ;;  %vm1007_vm8 = vweird.f32 %v984_v48 }
 0x6a0   :  { %v993_v50 = vmul.f32 %v3401_v47, %v992_v49 }
 0x6a2   :  { %v994_v45 = vmul.f32 0.5, %v993_v50 }
 0x6a4   :  { %v986_v53 = vpop.f32.mrf.mxu3  ;;  %v995_v63 = vsub.f32 1.5, %v994_v45 }
 0x6a5   :  { %v3403_v35 = vpop.eup %3402  ;;  %v987_v55 = vadd.f32 1e-08, %v986_v53 }
 0x6a6   :  { %v1002_v56 = vmul.f32 %v3403_v35, %v984_v48  ;;  %v996_v59 = vmul.f32 %v3401_v47, %v995_v63  ;;  %vm1008_vm5 = vweird.f32 %v3403_v35 }
 0x6a7   :  { %3404 = vrsqrt.f32 %v987_v55  ;;  %vm1009_vm9 = vmor %vm1007_vm8, %vm1008_vm5  ;;  %vm1017_vm12 = vweird.f32 %v987_v55 }
 0x6a8   :  { %v1003_v54 = vmul.f32 %v3403_v35, %v1002_v56  ;;  %v1000_v5 = vsel %vm999_vm7, %v3401_v47, %v996_v59  ;;  %v4039_v56 = vld [vmem:[%s5575_s9 + $0x7] ss:$8 sm:$0x7] }
 0x6a9   :  { %v210_v63 = vperm.slane %v4039_v56, 2 }
 0x6aa   :  { %v1004_v58 = vmul.f32 0.5, %v1003_v54 }
 0x6ab   :  { %v289_v54 = vadd.f32 %v3921_v42, %v210_v63  ;;  %v294_v59 = vadd.f32 %v3929_v36, %v210_v63  ;;  %v296_v42 = vadd.f32 %v3933_v38, %v210_v63  ;;  %v3426_v38 = vld [vmem:[%s5566_s0 + $0x8] sm:$0xff] }
 0x6ac   :  { %v1005_v1 = vsub.f32 1.5, %v1004_v58  ;;  %v988_v3 = vpop.f32.mrf.mxu3 }
 0x6ad   :  { %v3405_v60 = vpop.eup %3404  ;;  %v989_v62 = vadd.f32 1e-08, %v988_v3  ;;  %v1159_v57 = vmul.f32 0.5, %v289_v54  ;;  %v1161_v3 = vmul.f32 0.5, %v294_v59 }
 0x6ae   :  { %v1006_v2 = vmul.f32 %v3403_v35, %v1005_v1  ;;  %v1012_v4 = vmul.f32 %v3405_v60, %v987_v55  ;;  %vm1018_vm10 = vweird.f32 %v3405_v60 }
 0x6af   :  { %3406 = vrsqrt.f32 %v989_v62  ;;  %vm1019_vm13 = vmor %vm1017_vm12, %vm1018_vm10  ;;  %vm1027_vm14 = vweird.f32 %v989_v62 }
 0x6b0   :  { %v1010_v6 = vsel %vm1009_vm9, %v3403_v35, %v1006_v2  ;;  %v1013_v7 = vmul.f32 %v3405_v60, %v1012_v4  ;;  %3408 = vtanh.f32 %v1159_v57 }
 0x6b1   :  { %v1031_v8 = vpack.c.bf16 %v1010_v6, %v1000_v5  ;;  %v1162_v6 = vmul.f32 0.5, %v296_v42 }
 0x6b2   :  { %v1014_v9 = vmul.f32 0.5, %v1013_v7 }
 0x6b3   :  { %3104 = vmatmul.msk.bf16.vlgmr.msra.gmra.mxu0 %vm224_vm3, %v1031_v8 }
 0x6b4   :  { %v1015_v11 = vsub.f32 1.5, %v1014_v9 }
 0x6b5   :  { %v3407_v10 = vpop.eup %3406 }
 0x6b6   :  { %v1022_v21 = vmul.f32 %v3407_v10, %v989_v62  ;;  %vm1028_vm11 = vweird.f32 %v3407_v10  ;;  %v1016_v15 = vmul.f32 %v3405_v60, %v1015_v11 }
 0x6b7   :  { %vm1029_vm15 = vmor %vm1027_vm14, %vm1028_vm11 }
 0x6b8   :  { %v1023_v12 = vmul.f32 %v3407_v10, %v1022_v21  ;;  %v1020_v17 = vsel %vm1019_vm13, %v3405_v60, %v1016_v15 }
 0x6ba   :  { %v1024_v13 = vmul.f32 0.5, %v1023_v12 }
 0x6bc   :  { %v1025_v14 = vsub.f32 1.5, %v1024_v13 }
 0x6be   :  { %v1026_v16 = vmul.f32 %v3407_v10, %v1025_v14 }
 0x6c0   :  { %v1030_v18 = vsel %vm1029_vm15, %v3407_v10, %v1026_v16 }
 0x6c1   :  { %v1032_v19 = vpack.c.bf16 %v1030_v18, %v1020_v17  ;;  %v3427_v17 = vld [vmem:[%s5566_s0 + $0x10] sm:$0xff] }
 0x6c3   :  { %3105 = vmatmul.msk.bf16.gmra.mxu0 %vm224_vm3, %v1032_v19 }
 0x730   :  { %v1052_v27 = vpop.f32.mrf.mxu0 }
 0x731   :  { %v1062_v29 = vmul.f32 %v1052_v27, %v3984_v20  ;;  %v3428_v27 = vld [vmem:[%s5566_s0 + $0x18] sm:$0xff] }
 0x733   :  { %v1066_v41 = vmul.f32 %v1062_v29, %v62_v52 }
 0x735   :  { %v1070_v47 = vadd.f32 %v1066_v41, %v63_v44 }
 0x738   :  { %v1054_v40 = vpop.f32.mrf.mxu0 }
 0x739   :  { %v1063_v43 = vmul.f32 %v1054_v40, %v3986_v23 }
 0x73b   :  { %v1067_v46 = vmul.f32 %v1063_v43, %v62_v52 }
 0x73d   :  { %v1071_v48 = vadd.f32 %v1067_v46, %v63_v44 }
 0x73f   :  { %v1074_v49 = vpack.c.bf16 %v1071_v48, %v1070_v47 }
 0x740   :  { %v1057_v50 = vpop.f32.mrf.mxu0 }
 0x741   :  { %1148 = vmatmul.bf16.vlgmr.msrb.gmra.mxu1 %v1074_v49  ;;  %v1064_v20 = vmul.f32 %v1057_v50, %v3992_v32  ;;  %v291_v32 = vadd.f32 %v3925_v33, %v210_v63  ;;  %v3425_v33 = vld [vmem:[%s5566_s0] sm:$0xff] }
 0x743   :  { %v1068_v45 = vmul.f32 %v1064_v20, %v62_v52  ;;  %v1160_v58 = vmul.f32 0.5, %v291_v32  ;;  %v209_v32 = vperm.slane %v4039_v56, 1 }
 0x745   :  { %v1072_v55 = vadd.f32 %v1068_v45, %v63_v44  ;;  %3410 = vtanh.f32 %v1160_v58  ;;  %v4107_v58 = vadd.f32 %v3919_v30, %v209_v32  ;;  %v4115_v59 = vadd.f32 %v3923_v31, %v209_v32  ;;  %v3164_v30 = vld [vmem:[%s5569_s3 + $0xbc] sm:$0xf]  ;;  %v3323_v31 = vld [vmem:[%s5569_s3 + $0xd4] sm:$0xf0] }
 0x746   :  { %3412 = vtanh.f32 %v1161_v3  ;;  %v4122_v56 = vadd.f32 %v3927_v34, %v209_v32  ;;  %v3322_v34 = vld [vmem:[%s5569_s3 + $0xc0] sm:$0xf] }
 0x747   :  { %3414 = vtanh.f32 %v1162_v6 }
 0x748   :  { %v1059_v51 = vpop.f32.mrf.mxu0 }
 0x749   :  { %v1065_v53 = vmul.f32 %v1059_v51, %v3994_v39  ;;  %v3409_v39 = vpop.eup %3408 }
 0x74a   :  { %v1167_v1 = vadd.f32 1.0, %v3409_v39  ;;  %v4112_v39 = vadd.f32 %v3931_v37, %v209_v32  ;;  %v3165_v37 = vor.u32 %v3323_v31, %v3164_v30 }
 0x74b   :  { %v1069_v35 = vmul.f32 %v1065_v53, %v62_v52  ;;  %v3411_v62 = vpop.eup %3410 }
 0x74c   :  { %v4045_v60 = vmul.f32 0.5, %v1167_v1  ;;  %v1168_v5 = vadd.f32 1.0, %v3411_v62  ;;  %v3413_v8 = vpop.eup %3412  ;;  %v3166_v1 = vld [vmem:[%s5569_s3 + $0xd8] sm:$0xf0]  ;;  %1368 = vmatpush.bf16.msra.mxu2 %v3165_v37  ;;  %v3156_v62 = vld [vmem:[%s5569_s3 + $0x84] sm:$0xf] }
 0x74d   :  { %v1073_v61 = vadd.f32 %v1069_v35, %v63_v44  ;;  %v1169_v11 = vadd.f32 1.0, %v3413_v8  ;;  %v3415_v14 = vpop.eup %3414  ;;  %v3169_v3 = vor.u32 %v3322_v34, %v3166_v1  ;;  %v3319_v8 = vld [vmem:[%s5569_s3 + $0x64] sm:$0xf0] }
 0x74e   :  { %v1172_v7 = vmul.f32 0.5, %v1168_v5  ;;  %v1170_v19 = vadd.f32 1.0, %v3415_v14  ;;  %v3158_v5 = vld [vmem:[%s5569_s3 + $0xa0] sm:$0xf0]  ;;  %v3317_v14 = vld [vmem:[%s5569_s3 + $0x2c] sm:$0xf0] }
 0x74f   :  { %v1075_v23 = vpack.c.bf16 %v1073_v61, %v1072_v55  ;;  %v1173_v13 = vmul.f32 0.5, %v1169_v11  ;;  %1387 = vmatpush.bf16.msrb.mxu3 %v3169_v3 }
 0x750   :  { %v1174_v24 = vmul.f32 0.5, %v1170_v19  ;;  %v3142_v19 = vld [vmem:[%s5569_s3 + $0x30] sm:$0xf0] }
 0x751   :  { %1153 = vmatmul.bf16.gmra.mxu1 %v1075_v23 }
 0x7be   :  { %v1149_v0 = vpop.f32.mrf.mxu1 }
 0x7bf   :  { %v1175_v2 = vmul.f32 %v4045_v60, %v1149_v0  ;;  %v3321_v0 = vld [vmem:[%s5569_s3 + $0x9c] sm:$0xf0] }
 0x7c1   :  { %v4052_v4 = vadd.f32 %v3425_v33, %v1175_v2  ;;  %v3320_v2 = vld [vmem:[%s5569_s3 + $0x88] sm:$0xf]  ;;  %v3157_v33 = vor.u32 %v3321_v0, %v3156_v62 }
 0x7c3   :  { %5627 = vst [vmem:[#allocation8_spill] sm:$0xff] %v4052_v4  ;;  %v1183_v36 = vsel %vm157_vm0, %v4052_v4, 0.0  ;;  %1369 = vmatpush.bf16.msra.mxu2 %v3157_v33 }
 0x7c4   :  { %1184 = vadd.xlane.f32.xlu1 %v1183_v36  ;;  %v3161_v36 = vor.u32 %v3320_v2, %v3158_v5 }
 0x7c6   :  { %v1151_v9 = vpop.f32.mrf.mxu1  ;;  %1388 = vmatpush.bf16.msrb.mxu3 %v3161_v36 }
 0x7c7   :  { %v1176_v10 = vmul.f32 %v1172_v7, %v1151_v9  ;;  %v3318_v9 = vld [vmem:[%s5569_s3 + $0x50] sm:$0xf] }
 0x7c9   :  { %v4059_v21 = vadd.f32 %v3426_v38, %v1176_v10  ;;  %v3150_v38 = vld [vmem:[%s5569_s3 + $0x68] sm:$0xf0] }
 0x7ca   :  { %v3153_v11 = vor.u32 %v3318_v9, %v3150_v38 }
 0x7cb   :  { %5628 = vst [vmem:[#allocation9_spill] sm:$0xff] %v4059_v21  ;;  %v1186_v12 = vsel %vm157_vm0, %v4059_v21, 0.0 }
 0x7cc   :  { %1187 = vadd.xlane.f32.xlu0 %v1186_v12  ;;  %1389 = vmatpush.bf16.msrb.mxu3 %v3153_v11 }
 0x7ce   :  { %v1154_v15 = vpop.f32.mrf.mxu1 }
 0x7cf   :  { %v1177_v16 = vmul.f32 %v1173_v13, %v1154_v15  ;;  %v3316_v15 = vld [vmem:[%s5569_s3 + $0x18] sm:$0xf] }
 0x7d1   :  { %v4066_v18 = vadd.f32 %v3427_v17, %v1177_v16 }
 0x7d3   :  { %5629 = vst [vmem:[#allocation10_spill] sm:$0xff] %v4066_v18  ;;  %v1189_v22 = vsel %vm157_vm0, %v4066_v18, 0.0 }
 0x7d4   :  { %1190 = vadd.xlane.f32.xlu2 %v1189_v22  ;;  %v3145_v22 = vor.u32 %v3316_v15, %v3142_v19 }
 0x7d6   :  { %v1156_v25 = vpop.f32.mrf.mxu1  ;;  %1390 = vmatpush.bf16.msrb.mxu3 %v3145_v22 }
 0x7d7   :  { %v1178_v26 = vmul.f32 %v1174_v24, %v1156_v25 }
 0x7d9   :  { %v4073_v29 = vadd.f32 %v3428_v27, %v1178_v26 }
 0x7db   :  { %5630 = vst [vmem:[#allocation11_spill] sm:$0xff] %v4073_v29  ;;  %v1192_v52 = vsel %vm157_vm0, %v4073_v29, 0.0 }
 0x7dc   :  { %1193 = vadd.xlane.f32.xlu1 %v1192_v52 }
 0x837   :  { %v1185_v40 = vpop.xlane.xlu1 %1184 }
 0x838   :  { %v1195_v41 = vmul.f32 %v1185_v40, %v3607_v28 }
 0x83a   :  { %v4079_v43 = vsub.f32 %v4052_v4, %v1195_v41 }
 0x83c   :  { %v1203_v44 = vmul.f32 %v4079_v43, %v4079_v43 }
 0x83e   :  { %v1207_v46 = vsel %vm157_vm0, %v1203_v44, 0.0 }
 0x83f   :  { %1208 = vadd.xlane.f32.xlu0 %v1207_v46  ;;  %v1188_v47 = vpop.xlane.xlu0 %1187 }
 0x840   :  { %v1196_v48 = vmul.f32 %v1188_v47, %v3607_v28 }
 0x842   :  { %v4086_v49 = vsub.f32 %v4059_v21, %v1196_v48 }
 0x844   :  { %v1204_v50 = vmul.f32 %v4086_v49, %v4086_v49 }
 0x846   :  { %v1210_v20 = vsel %vm157_vm0, %v1204_v50, 0.0 }
 0x847   :  { %1211 = vadd.xlane.f32.xlu2 %v1210_v20  ;;  %v1191_v51 = vpop.xlane.xlu2 %1190 }
 0x848   :  { %v1197_v45 = vmul.f32 %v1191_v51, %v3607_v28 }
 0x84a   :  { %v4093_v53 = vsub.f32 %v4066_v18, %v1197_v45 }
 0x84c   :  { %v1205_v35 = vmul.f32 %v4093_v53, %v4093_v53 }
 0x84e   :  { %v1213_v55 = vsel %vm157_vm0, %v1205_v35, 0.0 }
 0x84f   :  { %1214 = vadd.xlane.f32.xlu1 %v1213_v55  ;;  %v1194_v61 = vpop.xlane.xlu1 %1193 }
 0x850   :  { %v1198_v23 = vmul.f32 %v1194_v61, %v3607_v28 }
 0x852   :  { %v4100_v63 = vsub.f32 %v4073_v29, %v1198_v23  ;;  %v5638_v29 = vmov 0  }
 0x854   :  { %v1206_v54 = vmul.f32 %v4100_v63, %v4100_v63 }
 0x856   :  { %v1216_v57 = vsel %vm157_vm0, %v1206_v54, 0.0  ;;  %v60_v54 = vld [vmem:[%s5575_s9 + $0x2] ss:$0 sm:$0xff] }
 0x857   :  { %1217 = vadd.xlane.f32.xlu0 %v1216_v57 }
 0x85f   :  { %1287 = vrot.lane.b32.xlu2 %v4107_v58, %s3484_s2 }
 0x867   :  { %1293 = vrot.lane.b32.xlu2 %v4112_v39, %s3484_s2 }
 0x868   :  { %1289 = vrot.lane.b32.xlu1 %v4115_v59, %s3484_s2 }
 0x86b   :  { %1291 = vrot.lane.b32.xlu0 %v4122_v56, %s3484_s2 }
 0x86f   :  { %2862 = vrot.lane.b32.xlu2 %v1173_v13, %s3484_s2  ;;  %v3140_v13 = vld [vmem:[%s5569_s3 + $0x14] sm:$0xf] }
 0x870   :  { %2860 = vrot.lane.b32.xlu1 %v1172_v7, %s3484_s2  ;;  %v3148_v7 = vld [vmem:[%s5569_s3 + $0x4c] sm:$0xf]  ;;  %v3141_v17 = vor.u32 %v3317_v14, %v3140_v13 }
 0x871   :  { %v3149_v10 = vor.u32 %v3319_v8, %v3148_v7 }
 0x873   :  { %2858 = vrot.lane.b32.xlu0 %v4045_v60, %s3484_s2  ;;  %1370 = vmatpush.bf16.msra.mxu2 %v3149_v10 }
 0x877   :  { %1371 = vmatpush.bf16.msra.mxu2 %v3141_v17 }
 0x87b   :  { %2864 = vrot.lane.b32.xlu0 %v1174_v24, %s3484_s2 }
 0x8b2   :  { %v1209_v60 = vpop.xlane.xlu0 %1208 }
 0x8b3   :  { %v1219_v42 = vmul.f32 %v1209_v60, %v3607_v28 }
 0x8b5   :  { %v1223_v6 = vadd.f32 1e-05, %v1219_v42 }
 0x8b7   :  { %3416 = vrsqrt.f32 %v1223_v6  ;;  %vm1233_vm1 = vweird.f32 %v1223_v6 }
 0x8ba   :  { %v1212_v12 = vpop.xlane.xlu2 %1211 }
 0x8bb   :  { %v1220_v16 = vmul.f32 %v1212_v12, %v3607_v28 }
 0x8bd   :  { %v3417_v24 = vpop.eup %3416  ;;  %v1224_v25 = vadd.f32 1e-05, %v1220_v16 }
 0x8be   :  { %v1228_v26 = vmul.f32 %v3417_v24, %v1223_v6  ;;  %vm1234_vm3 = vweird.f32 %v3417_v24 }
 0x8bf   :  { %3418 = vrsqrt.f32 %v1224_v25  ;;  %vm1235_vm4 = vmor %vm1233_vm1, %vm1234_vm3  ;;  %vm1243_vm5 = vweird.f32 %v1224_v25 }
 0x8c0   :  { %v1229_v27 = vmul.f32 %v3417_v24, %v1228_v26 }
 0x8c2   :  { %v1230_v52 = vmul.f32 0.5, %v1229_v27  ;;  %v1215_v40 = vpop.xlane.xlu1 %1214  ;;  %v1288_v9 = vpop.permute.xlu2 %1287 }
 0x8c3   :  { %v1221_v41 = vmul.f32 %v1215_v40, %v3607_v28 }
 0x8c4   :  { %v1231_v44 = vsub.f32 1.5, %v1230_v52 }
 0x8c5   :  { %v3419_v46 = vpop.eup %3418  ;;  %v1225_v47 = vadd.f32 1e-05, %v1221_v41  ;;  %v2903_v41 = vld [vmem:[%s5575_s9 + $0x19] ss:$8 sm:$0x3] }
 0x8c6   :  { %v1232_v48 = vmul.f32 %v3417_v24, %v1231_v44  ;;  %v1238_v50 = vmul.f32 %v3419_v46, %v1224_v25  ;;  %vm1244_vm2 = vweird.f32 %v3419_v46 }
 0x8c7   :  { %3420 = vrsqrt.f32 %v1225_v47  ;;  %vm1245_vm6 = vmor %vm1243_vm5, %vm1244_vm2  ;;  %vm1253_vm8 = vweird.f32 %v1225_v47 }
 0x8c8   :  { %v1236_v20 = vsel %vm1235_vm4, %v3417_v24, %v1232_v48  ;;  %v1239_v51 = vmul.f32 %v3419_v46, %v1238_v50 }
 0x8c9   :  { %v1267_v55 = vmul.f32 %v1236_v20, %v4079_v43  ;;  %v61_v43 = vld [vmem:[%s5575_s9 + $0x3] ss:$0 sm:$0xff] }
 0x8ca   :  { %v1240_v45 = vmul.f32 0.5, %v1239_v51  ;;  %v1218_v35 = vpop.xlane.xlu0 %1217  ;;  %v1294_v25 = vpop.permute.xlu2 %1293 }
 0x8cb   :  { %v1222_v61 = vmul.f32 %v1218_v35, %v3607_v28  ;;  %v1271_v34 = vmul.f32 %v1267_v55, %v60_v54 }
 0x8cc   :  { %v1241_v23 = vsub.f32 1.5, %v1240_v45 }
 0x8cd   :  { %v3421_v57 = vpop.eup %3420  ;;  %v1226_v32 = vadd.f32 1e-05, %v1222_v61  ;;  %v1275_v60 = vadd.f32 %v1271_v34, %v61_v43 }
 0x8ce   :  { %v1242_v30 = vmul.f32 %v3419_v46, %v1241_v23  ;;  %v1248_v31 = vmul.f32 %v3421_v57, %v1225_v47  ;;  %vm1254_vm7 = vweird.f32 %v3421_v57  ;;  %v4224_v23 = vperm.slane %v2903_v41, 1 }
 0x8cf   :  { %3422 = vrsqrt.f32 %v1226_v32  ;;  %v1279_v36 = vmul.f32 %v1275_v60, %v4107_v58  ;;  %vm1255_vm9 = vmor %vm1253_vm8, %vm1254_vm7  ;;  %vm1263_vm11 = vweird.f32 %v1226_v32 }
 0x8d0   :  { %v1246_v37 = vsel %vm1245_vm6, %v3419_v46, %v1242_v30  ;;  %v1249_v28 = vmul.f32 %v3421_v57, %v1248_v31  ;;  %v5598_v31 = vmov 683565275  }
 0x8d1   :  { %v1268_v1 = vmul.f32 %v1246_v37, %v4086_v49  ;;  %v1299_v38 = vadd.f32 %v1288_v9, %v1279_v36  ;;  %v5589_v37 = vmov 2475754826  }
 0x8d2   :  { %v1250_v3 = vmul.f32 0.5, %v1249_v28 }
 0x8d3   :  { %v1272_v62 = vmul.f32 %v1268_v1, %v60_v54 }
 0x8d4   :  { %v1251_v0 = vsub.f32 1.5, %v1250_v3  ;;  %v5587_v3 = vmov 2131351028  }
 0x8d5   :  { %v3423_v2 = vpop.eup %3422  ;;  %v1276_v42 = vadd.f32 %v1272_v62, %v61_v43 }
 0x8d6   :  { %v1252_v33 = vmul.f32 %v3421_v57, %v1251_v0  ;;  %v1258_v5 = vmul.f32 %v3423_v2, %v1226_v32  ;;  %vm1264_vm10 = vweird.f32 %v3423_v2  ;;  %v5585_v0 = vmov 2102212464  }
 0x8d7   :  { %v1280_v8 = vmul.f32 %v1276_v42, %v4115_v59  ;;  %vm1265_vm12 = vmor %vm1263_vm11, %vm1264_vm10 }
 0x8d8   :  { %v1256_v6 = vsel %vm1255_vm9, %v3421_v57, %v1252_v33  ;;  %v1259_v7 = vmul.f32 %v3423_v2, %v1258_v5  ;;  %v5583_v33 = vmov 920167782  }
 0x8d9   :  { %v1269_v12 = vmul.f32 %v1256_v6, %v4093_v53  ;;  %v5581_v6 = vmov 1326507024  }
 0x8da   :  { %v1260_v10 = vmul.f32 0.5, %v1259_v7  ;;  %v1290_v49 = vpop.permute.xlu1 %1289 }
 0x8db   :  { %v1300_v11 = vadd.f32 %v1290_v49, %v1280_v8  ;;  %v1273_v16 = vmul.f32 %v1269_v12, %v60_v54 }
 0x8dc   :  { %v1261_v13 = vsub.f32 1.5, %v1260_v10 }
 0x8dd   :  { %v1303_v14 = vpack.c.bf16 %v1300_v11, %v1299_v38  ;;  %v1277_v19 = vadd.f32 %v1273_v16, %v61_v43  ;;  %v1292_v27 = vpop.permute.xlu0 %1291 }
 0x8de   :  { %v1262_v15 = vmul.f32 %v3423_v2, %v1261_v13 }
 0x8df   :  { %3170 = vmatmul.msk.bf16.vlgmr.msra.gmra.mxu2 %vm157_vm0, %v1303_v14  ;;  %3172 = vmatmul.msk.bf16.vlgmr.msrb.gmra.mxu3 %vm157_vm0, %v1303_v14  ;;  %v1281_v53 = vmul.f32 %v1277_v19, %v4122_v56  ;;  %v4209_v56 = vperm.slane %v2903_v41, 0 }
 0x8e0   :  { %v1266_v58 = vsel %vm1265_vm12, %v3423_v2, %v1262_v15 }
 0x8e1   :  { %v1270_v59 = vmul.f32 %v1266_v58, %v4100_v63  ;;  %v1301_v52 = vadd.f32 %v1292_v27, %v1281_v53  ;;  %v2902_v63 = vld [vmem:[%s5575_s9 + $0x18] ss:$8 sm:$0x3] }
 0x8e2   :  { %v4219_v51 = vperm.slane %v2902_v63, 1 }
 0x8e3   :  { %v1274_v17 = vmul.f32 %v1270_v59, %v60_v54 }
 0x8e5   :  { %v1278_v22 = vadd.f32 %v1274_v17, %v61_v43 }
 0x8e7   :  { %v1282_v24 = vmul.f32 %v1278_v22, %v4112_v39  ;;  %v4207_v39 = vperm.slane %v2902_v63, 0 }
 0x8e9   :  { %v1302_v26 = vadd.f32 %v1294_v25, %v1282_v24 }
 0x8eb   :  { %v1304_v40 = vpack.c.bf16 %v1302_v26, %v1301_v52 }
 0x8ef   :  { %3171 = vmatmul.msk.bf16.gmra.mxu2 %vm157_vm0, %v1304_v40  ;;  %3173 = vmatmul.msk.bf16.gmra.mxu3 %vm157_vm0, %v1304_v40 }
 0x962   :  { %v1373_v44 = vpop.f32.mrf.mxu2  ;;  %v1392_v35 = vpop.f32.mrf.mxu3 }
 0x963   :  { %v4212_v46 = vadd.f32 %v1373_v44, %v4207_v39  ;;  %v4222_v61 = vadd.f32 %v1392_v35, %v4219_v51 }
 0x965   :  { %5631 = vst [vmem:[#allocation12_spill] sm:$0xff] %v4212_v46  ;;  %v4216_v47 = vmul.f32 %v4209_v56, %v4212_v46  ;;  %v4235_v28 = vmul.f32 %v4224_v23, %v4222_v61 }
 0x966   :  { %5633 = vst [vmem:[#allocation14_spill] sm:$0xff] %v4222_v61 }
 0x967   :  { %5632 = vst [vmem:[#allocation13_spill] sm:$0xff] %v4216_v47  ;;  %v1418_v48 = vand.u32 2139095040, %v4216_v47  ;;  %v5580_v57 = vand.u32 2147483647, %v4216_v47  ;;  %v1573_v12 = vand.u32 2139095040, %v4235_v28 }
 0x968   :  { %5634 = vst [vmem:[#allocation15_spill] sm:$0xff] %v4235_v28 }
 0x969   :  { %v1419_v50 = vshrl.u32 %v1418_v48, 23  ;;  %v1422_v8 = vand.u32 8388607, %v5580_v57  ;;  %v1574_v22 = vshrl.u32 %v1573_v12, 23 }
 0x96a   :  { %v1375_v63 = vpop.f32.mrf.mxu2  ;;  %v1394_v57 = vpop.f32.mrf.mxu3 }
 0x96b   :  { %v3174_v20 = vadd.s32 4294967169, %v1419_v50  ;;  %v1423_v15 = vor.u32 8388608, %v1422_v8  ;;  %v3177_v27 = vadd.s32 4294967169, %v1574_v22 }
 0x96d   :  { %v1425_v45 = vadd.s32 1, %v3174_v20  ;;  %v4284_v53 = vshll.u32 %v1423_v15, 8  ;;  %v1580_v44 = vadd.s32 1, %v3177_v27  ;;  %v4288_v20 = vadd.f32 %v1375_v63, %v4207_v39 }
 0x96f   :  { %vm1426_vm13 = vcmp.gt.s32.totalorder %v1425_v45, 0  ;;  %v1464_v52 = vand.u32 65535, %v4284_v53  ;;  %5635 = vst [vmem:[#allocation16_spill] sm:$0xff] %v4288_v20  ;;  %vm1581_vm4 = vcmp.gt.s32.totalorder %v1580_v44, 0 }
 0x970   :  { %v1427_v55 = vsel %vm1426_vm13, %v1425_v45, 0  ;;  %v1465_v45 = vshrl.u32 %v4284_v53, 16 }
 0x971   :  { %v1429_v54 = vand.u32 31, %v1427_v55  ;;  %v4229_v30 = vshrl.u32 %v1427_v55, 5 }
 0x973   :  { %v4227_v32 = vsub.s32 32, %v1429_v54  ;;  %v1432_v34 = vshll.u32 %v5598_v31, %v1429_v54  ;;  %v1435_v43 = vshll.u32 %v5589_v37, %v1429_v54  ;;  %v1438_v62 = vshll.u32 %v5587_v3, %v1429_v54 }
 0x974   :  { %v1441_v42 = vshll.u32 %v5585_v0, %v1429_v54  ;;  %v1444_v36 = vshll.u32 %v5583_v33, %v1429_v54  ;;  %vm1450_vm14 = vcmp.lt.s32.totalorder %v4229_v30, 4  ;;  %vm1447_vm15 = vcmp.lt.s32.totalorder %v4229_v30, 1 }
 0x975   :  { %v1433_v1 = vshrl.u32 %v5589_v37, %v4227_v32  ;;  %v1436_v60 = vshrl.u32 %v5587_v3, %v4227_v32  ;;  %v1439_v2 = vshrl.u32 %v5585_v0, %v4227_v32  ;;  %v1442_v5 = vshrl.u32 %v5583_v33, %v4227_v32 }
 0x976   :  { %v1445_v7 = vshrl.u32 %v5581_v6, %v4227_v32  ;;  %vm1449_vm3 = vcmp.lt.s32.totalorder %v4229_v30, 3  ;;  %vm1448_vm1 = vcmp.lt.s32.totalorder %v4229_v30, 2 }
 0x977   :  { %v4252_v9 = vor.u32 %v1433_v1, %v1432_v34  ;;  %v4254_v10 = vor.u32 %v1436_v60, %v1435_v43  ;;  %v4256_v49 = vor.u32 %v1439_v2, %v1438_v62  ;;  %v1443_v38 = vor.u32 %v1442_v5, %v1441_v42 }
 0x978   :  { %v1446_v11 = vor.u32 %v1445_v7, %v1444_v36  ;;  %v4295_v60 = vmul.f32 %v4209_v56, %v4288_v20  ;;  %v1582_v2 = vsel %vm1581_vm4, %v1580_v44, 0  ;;  %v5592_v7 = vmov 0  }
 0x979   :  { %v1456_v13 = vsel %vm1450_vm14, %v1443_v38, 920167782  ;;  %v1455_v16 = vsel %vm1447_vm15, %v4252_v9, %v4254_v10  ;;  %v1459_v59 = vsel %vm1447_vm15, %v4254_v10, %v4256_v49  ;;  %v4313_v44 = vshrl.u32 %v1582_v2, 5 }
 0x97a   :  { %v1460_v14 = vsel %vm1450_vm14, %v1446_v11, 1326507024  ;;  %v1457_v58 = vsel %vm1449_vm3, %v4256_v49, %v1456_v13  ;;  %v1728_v11 = vand.u32 2139095040, %v4295_v60 }
 0x97b   :  { %v1461_v17 = vsel %vm1449_vm3, %v1443_v38, %v1460_v14  ;;  %v1458_v19 = vsel %vm1448_vm1, %v1455_v16, %v1457_v58  ;;  %v1584_v38 = vand.u32 31, %v1582_v2  ;;  %v5578_v16 = vand.u32 2147483647, %v4235_v28 }
 0x97c   :  { %v1462_v24 = vsel %vm1448_vm1, %v1459_v59, %v1461_v17  ;;  %v1489_v25 = vshrl.u32 %v1458_v19, 16  ;;  %v1488_v48 = vand.u32 65535, %v1458_v19  ;;  %v1729_v19 = vshrl.u32 %v1728_v11, 23 }
 0x97d   :  { %v1467_v26 = vshrl.u32 %v1462_v24, 16  ;;  %v1466_v50 = vand.u32 65535, %v1462_v24  ;;  %v4306_v17 = vsub.s32 32, %v1584_v38  ;;  %v1599_v2 = vshll.u32 %v5583_v33, %v1584_v38 }
 0x97e   :  { %v1491_v40 = vmul.u32 %v1489_v25, %v1464_v52  ;;  %v1490_v54 = vmul.u32 %v1488_v48, %v1464_v52  ;;  %v4291_v34 = vmul.u32 %v1488_v48, %v1465_v45  ;;  %v1493_v13 = vmul.u32 %v1489_v25, %v1465_v45 }
 0x97f   :  { %v1469_v41 = vmul.u32 %v1467_v26, %v1464_v52  ;;  %v1468_v43 = vmul.u32 %v1466_v50, %v1464_v52  ;;  %v1470_v1 = vmul.u32 %v1466_v50, %v1465_v45  ;;  %v1471_v14 = vmul.u32 %v1467_v26, %v1465_v45 }
 0x980   :  { %v1494_v35 = vshll.u32 %v1491_v40, 16  ;;  %v1496_v5 = vshll.u32 %v4291_v34, 16  ;;  %v1577_v25 = vand.u32 8388607, %v5578_v16  ;;  %v1597_v26 = vshrl.u32 %v5583_v33, %v4306_v17 }
 0x981   :  { %v1472_v55 = vshll.u32 %v1469_v41, 16  ;;  %v1474_v36 = vshll.u32 %v1470_v1, 16  ;;  %v3180_v52 = vadd.s32 4294967169, %v1729_v19  ;;  %v1495_v63 = vshrl.u32 %v1491_v40, 16 }
 0x982   :  { %vm1498_vm2 = vc.u32 %v1490_v54, %v1494_v35  ;;  %v4297_v62 = vadd.s32 %v1494_v35, %v1490_v54  ;;  %v1587_v48 = vshll.u32 %v5598_v31, %v1584_v38  ;;  %v1600_v50 = vshrl.u32 %v5581_v6, %v4306_v17 }
 0x983   :  { %vm1476_vm5 = vc.u32 %v1468_v43, %v1472_v55  ;;  %v1478_v42 = vadd.s32 %v1472_v55, %v1468_v43  ;;  %v1499_v8 = vsel %vm1498_vm2, 1, %v5592_v7  ;;  %v1473_v45 = vshrl.u32 %v1469_v41, 16 }
 0x984   :  { %v1477_v12 = vsel %vm1476_vm5, 1, %v5592_v7  ;;  %vm1502_vm6 = vc.u32 %v4297_v62, %v1496_v5  ;;  %v1501_v15 = vadd.s32 %v1499_v8, %v1493_v13  ;;  %v1588_v35 = vshrl.u32 %v5589_v37, %v4306_v17 }
 0x985   :  { %vm1480_vm7 = vc.u32 %v1478_v42, %v1474_v36  ;;  %v1479_v58 = vadd.s32 %v1477_v12, %v1471_v14  ;;  %v1503_v59 = vsel %vm1502_vm6, 1, %v5592_v7  ;;  %v1596_v55 = vshll.u32 %v5585_v0, %v1584_v38 }
 0x986   :  { %v1481_v22 = vsel %vm1480_vm7, 1, %v5592_v7  ;;  %v1505_v24 = vadd.s32 %v1503_v59, %v1501_v15  ;;  %v1735_v54 = vadd.s32 1, %v3180_v52  ;;  %v1591_v42 = vshrl.u32 %v5587_v3, %v4306_v17 }
 0x987   :  { %v1483_v27 = vadd.s32 %v1481_v22, %v1479_v58  ;;  %v1594_v40 = vshrl.u32 %v5585_v0, %v4306_v17  ;;  %v1590_v8 = vshll.u32 %v5589_v37, %v1584_v38  ;;  %v1598_v11 = vor.u32 %v1597_v26, %v1596_v55 }
 0x988   :  { %v1506_v43 = vadd.s32 %v1505_v24, %v1495_v63  ;;  %vm1736_vm8 = vcmp.gt.s32.totalorder %v1735_v54, 0  ;;  %v1497_v41 = vshrl.u32 %v4291_v34, 16  ;;  %v1593_v12 = vshll.u32 %v5587_v3, %v1584_v38 }
 0x989   :  { %v1484_v36 = vadd.s32 %v1483_v27, %v1473_v45  ;;  %v1601_v13 = vor.u32 %v1600_v50, %v1599_v2  ;;  %v1737_v14 = vsel %vm1736_vm8, %v1735_v54, 0  ;;  %v1475_v15 = vshrl.u32 %v1470_v1, 16 }
 0x98a   :  { %v4329_v58 = vor.u32 %v1588_v35, %v1587_v48  ;;  %v1739_v59 = vand.u32 31, %v1737_v14  ;;  %v1507_v19 = vadd.s32 %v1506_v43, %v1497_v41  ;;  %v4331_v22 = vor.u32 %v1591_v42, %v1590_v8 }
 0x98b   :  { %v4333_v24 = vor.u32 %v1594_v40, %v1593_v12  ;;  %vm1605_vm9 = vcmp.lt.s32.totalorder %v4313_v44, 4  ;;  %v1431_v27 = vshrl.u32 %v5598_v31, %v4227_v32  ;;  %v1452_v34 = vsel %vm1450_vm14, %v4256_v49, 2102212464 }
 0x98c   :  { %v4341_v38 = vadd.s32 %v1484_v36, %v1475_v15  ;;  %v1611_v1 = vsel %vm1605_vm9, %v1598_v11, 920167782  ;;  %v1578_v26 = vor.u32 8388608, %v1577_v25  ;;  %v1615_v52 = vsel %vm1605_vm9, %v1601_v13, 1326507024 }
 0x98d   :  { %v4347_v63 = vsub.s32 32, %v1739_v59  ;;  %v1451_v48 = vsel %vm1447_vm15, %v1431_v27, %v4252_v9  ;;  %v4353_v32 = vadd.s32 %v4297_v62, %v1496_v5  ;;  %vm1602_vm10 = vcmp.lt.s32.totalorder %v4313_v44, 1 }
 0x98e   :  { %vm1604_vm11 = vcmp.lt.s32.totalorder %v4313_v44, 3  ;;  %v1453_v49 = vsel %vm1449_vm3, %v4254_v10, %v1452_v34  ;;  %v1511_v25 = vadd.s32 1, %v1507_v19  ;;  %v1610_v50 = vsel %vm1602_vm10, %v4329_v58, %v4331_v22 }
 0x98f   :  { %v1612_v9 = vsel %vm1604_vm11, %v4333_v24, %v1611_v1  ;;  %vm1510_vm12 = vc.u32 %v4341_v38, %v4353_v32  ;;  %v1614_v62 = vsel %vm1602_vm10, %v4331_v22, %v4333_v24  ;;  %v1616_v10 = vsel %vm1604_vm11, %v1598_v11, %v1615_v52 }
 0x990   :  { %vm1603_vm13 = vcmp.lt.s32.totalorder %v4313_v44, 2  ;;  %v4376_v5 = vshll.u32 %v1578_v26, 8  ;;  %v1752_v45 = vshrl.u32 %v5583_v33, %v4347_v63  ;;  %v1454_v35 = vsel %vm1448_vm1, %v1451_v48, %v1453_v49 }
 0x991   :  { %v4384_v55 = vsel %vm1603_vm13, %v1610_v50, %v1612_v9  ;;  %v5579_v54 = vand.u32 2147483647, %v4295_v60  ;;  %v1755_v43 = vshrl.u32 %v5581_v6, %v4347_v63  ;;  %v1512_v42 = vsel %vm1510_vm12, %v1511_v25, %v1507_v19 }
 0x992   :  { %v4391_v40 = vsel %vm1603_vm13, %v1614_v62, %v1616_v10  ;;  %v4393_v2 = vshrl.u32 %v1737_v14, 5  ;;  %v1751_v36 = vshll.u32 %v5585_v0, %v1739_v59  ;;  %v1743_v30 = vshrl.u32 %v5589_v37, %v4347_v63 }
 0x993   :  { %v1746_v8 = vshrl.u32 %v5587_v3, %v4347_v63  ;;  %v1749_v11 = vshrl.u32 %v5585_v0, %v4347_v63  ;;  %v1754_v41 = vshll.u32 %v5583_v33, %v1739_v59  ;;  %v1508_v12 = vmul.u32 %v4284_v53, %v1454_v35 }
 0x994   :  { %v1644_v13 = vshrl.u32 %v4384_v55, 16  ;;  %v1753_v15 = vor.u32 %v1752_v45, %v1751_v36  ;;  %v1742_v14 = vshll.u32 %v5598_v31, %v1739_v59  ;;  %v1745_v19 = vshll.u32 %v5589_v37, %v1739_v59 }
 0x995   :  { %v1748_v27 = vshll.u32 %v5587_v3, %v1739_v59  ;;  %v1756_v34 = vor.u32 %v1755_v43, %v1754_v41  ;;  %v1513_v1 = vadd.s32 %v1512_v42, %v1508_v12  ;;  %v1619_v26 = vand.u32 65535, %v4376_v5 }
 0x996   :  { %v1622_v52 = vshrl.u32 %v4391_v40, 16  ;;  %v1732_v48 = vand.u32 8388607, %v5579_v54  ;;  %v4412_v49 = vor.u32 %v1743_v30, %v1742_v14  ;;  %v4414_v53 = vor.u32 %v1746_v8, %v1745_v19 }
 0x997   :  { %v4416_v25 = vor.u32 %v1749_v11, %v1748_v27  ;;  %vm1760_vm14 = vcmp.lt.s32.totalorder %v4393_v2, 4  ;;  %v4421_v50 = vmul.u32 %v1644_v13, %v1619_v26  ;;  %v1643_v10 = vand.u32 65535, %v4384_v55 }
 0x998   :  { %v1766_v59 = vsel %vm1760_vm14, %v1753_v15, 920167782  ;;  %v1770_v9 = vsel %vm1760_vm14, %v1756_v34, 1326507024  ;;  %v4425_v62 = vmul.u32 %v1622_v52, %v1619_v26  ;;  %vm1757_vm15 = vcmp.lt.s32.totalorder %v4393_v2, 1 }
 0x999   :  { %vm1759_vm3 = vcmp.lt.s32.totalorder %v4393_v2, 3  ;;  %v1514_v45 = vadd.s32 536870912, %v1513_v1  ;;  %v1733_v35 = vor.u32 8388608, %v1732_v48  ;;  %v1765_v43 = vsel %vm1757_vm15, %v4412_v49, %v4414_v53 }
 0x99a   :  { %v1767_v42 = vsel %vm1759_vm3, %v4416_v25, %v1766_v59  ;;  %v1621_v36 = vand.u32 65535, %v4391_v40  ;;  %v1769_v55 = vsel %vm1757_vm15, %v4414_v53, %v4416_v25  ;;  %v1771_v30 = vsel %vm1759_vm3, %v1753_v15, %v1770_v9 }
 0x99b   :  { %v1620_v8 = vshrl.u32 %v4376_v5, 16  ;;  %v1649_v11 = vshll.u32 %v4421_v50, 16  ;;  %vm1758_vm1 = vcmp.lt.s32.totalorder %v4393_v2, 2  ;;  %v1627_v41 = vshll.u32 %v4425_v62, 16 }
 0x99c   :  { %v1645_v12 = vmul.u32 %v1643_v10, %v1619_v26  ;;  %v1768_v40 = vsel %vm1758_vm1, %v1765_v43, %v1767_v42  ;;  %v4450_v14 = vshrl.u32 %v1514_v45, 30  ;;  %v4456_v27 = vsel %vm1758_vm1, %v1769_v55, %v1771_v30 }
 0x99d   :  { %v4452_v19 = vmul.u32 %v1643_v10, %v1620_v8  ;;  %v4458_v15 = vshll.u32 %v1733_v35, 8  ;;  %v1623_v34 = vmul.u32 %v1621_v36, %v1619_v26  ;;  %v4460_v48 = vmul.u32 %v1621_v36, %v1620_v8 }
 0x99e   :  { %vm1653_vm4 = vc.u32 %v1645_v12, %v1649_v11  ;;  %v4462_v59 = vadd.s32 %v1649_v11, %v1645_v12  ;;  %v1799_v9 = vshrl.u32 %v1768_v40, 16  ;;  %v1777_v45 = vshrl.u32 %v4456_v27, 16 }
 0x99f   :  { %vm1631_vm2 = vc.u32 %v1623_v34, %v1627_v41  ;;  %v1633_v16 = vadd.s32 %v1627_v41, %v1623_v34  ;;  %v1516_v10 = vshll.u32 %v4450_v14, 30  ;;  %v5591_v43 = vshll.u32 %v4452_v19, 16 }
 0x9a0   :  { %v1774_v42 = vand.u32 65535, %v4458_v15  ;;  %v1629_v35 = vshll.u32 %v4460_v48, 16  ;;  %v1654_v26 = vsel %vm1653_vm4, 1, %v5592_v7  ;;  %v1632_v36 = vsel %vm1631_vm2, 1, %v5592_v7 }
 0x9a1   :  { %v1648_v55 = vmul.u32 %v1644_v13, %v1620_v8  ;;  %vm1657_vm5 = vc.u32 %v4462_v59, %v5591_v43  ;;  %v1626_v11 = vmul.u32 %v1622_v52, %v1620_v8  ;;  %v4478_v12 = vsub.s32 %v1513_v1, %v1516_v10 }
 0x9a2   :  { %v4474_v30 = vmul.u32 %v1799_v9, %v1774_v42  ;;  %vm1635_vm6 = vc.u32 %v1633_v16, %v1629_v35  ;;  %v4476_v41 = vmul.u32 %v1777_v45, %v1774_v42  ;;  %v1798_v54 = vand.u32 65535, %v1768_v40 }
 0x9a3   :  { %v1656_v34 = vadd.s32 %v1654_v26, %v1648_v55  ;;  %v1634_v6 = vadd.s32 %v1632_v36, %v1626_v11  ;;  %v1658_v33 = vsel %vm1657_vm5, 1, %v5592_v7  ;;  %v1776_v13 = vand.u32 65535, %v4456_v27 }
 0x9a4   :  { %v1636_v0 = vsel %vm1635_vm6, 1, %v5592_v7  ;;  %v1775_v3 = vshrl.u32 %v4458_v15, 16  ;;  %v1804_v37 = vshll.u32 %v4474_v30, 16  ;;  %v1782_v16 = vshll.u32 %v4476_v41, 16 }
 0x9a5   :  { %v4487_v52 = vadd.f32 %v1394_v57, %v4219_v51  ;;  %v1519_v1 = vsub.s32 0, %v4478_v12  ;;  %v1660_v8 = vadd.s32 %v1658_v33, %v1656_v34  ;;  %v1800_v40 = vmul.u32 %v1798_v54, %v1774_v42 }
 0x9a6   :  { %v4490_v10 = vmul.u32 %v1798_v54, %v1775_v3  ;;  %vm1518_vm7 = vcmp.lt.s32.totalorder %v4478_v12, 0  ;;  %v1638_v27 = vadd.s32 %v1636_v0, %v1634_v6  ;;  %v1778_v35 = vmul.u32 %v1776_v13, %v1774_v42 }
 0x9a7   :  { %5636 = vst [vmem:[#allocation17_spill] sm:$0xff] %v4487_v52  ;;  %v4493_v26 = vmul.u32 %v1776_v13, %v1775_v3  ;;  %v1650_v36 = vshrl.u32 %v4421_v50, 16  ;;  %vm1808_vm8 = vc.u32 %v1800_v40, %v1804_v37  ;;  %v4496_v55 = vadd.s32 %v1804_v37, %v1800_v40 }
 0x9a8   :  { %v1628_v57 = vshrl.u32 %v4425_v62, 16  ;;  %vm1786_vm12 = vc.u32 %v1778_v35, %v1782_v16  ;;  %v1788_v11 = vadd.s32 %v1782_v16, %v1778_v35  ;;  %v4501_v33 = vmul.f32 %v4224_v23, %v4487_v52 }
 0x9a9   :  { %v1520_v54 = vsel %vm1518_vm7, %v1519_v1, %v4478_v12  ;;  %v1661_v34 = vadd.s32 %v1660_v8, %v1650_v36  ;;  %v1806_v0 = vshll.u32 %v4490_v10, 16  ;;  %v1652_v42 = vshrl.u32 %v4452_v19, 16 }
 0x9aa   :  { %5637 = vst [vmem:[#allocation18_spill] sm:$0xff] %v4501_v33  ;;  %v1639_v6 = vadd.s32 %v1638_v27, %v1628_v57  ;;  %v1784_v50 = vshll.u32 %v4493_v26, 16  ;;  %v1809_v37 = vsel %vm1808_vm8, 1, %v5592_v7  ;;  %v1787_v62 = vsel %vm1786_vm12, 1, %v5592_v7 }
 0x9ab   :  { %v1803_v13 = vmul.u32 %v1799_v9, %v1775_v3  ;;  %vm1812_vm4 = vc.u32 %v4496_v55, %v1806_v0  ;;  %v1883_v16 = vand.u32 2139095040, %v4501_v33  ;;  %v1521_v40 = vclz %v1520_v54 }
 0x9ac   :  { %v1630_v1 = vshrl.u32 %v4460_v48, 16  ;;  %v1781_v8 = vmul.u32 %v1777_v45, %v1775_v3  ;;  %vm1790_vm2 = vc.u32 %v1788_v11, %v1784_v50  ;;  %v1607_v27 = vsel %vm1605_vm9, %v4333_v24, 2102212464 }
 0x9ad   :  { %v1662_v35 = vadd.s32 %v1661_v34, %v1652_v42  ;;  %v1811_v36 = vadd.s32 %v1809_v37, %v1803_v13  ;;  %v1884_v57 = vshrl.u32 %v1883_v16, 23  ;;  %v1586_v43 = vshrl.u32 %v5598_v31, %v4306_v17 }
 0x9ae   :  { %v4517_v9 = vadd.s32 %v1639_v6, %v1630_v1  ;;  %v1789_v7 = vadd.s32 %v1787_v62, %v1781_v8  ;;  %v1813_v18 = vsel %vm1812_vm4, 1, %v5638_v29  ;;  %v1791_v54 = vsel %vm1790_vm2, 1, %v5638_v29 }
 0x9af   :  { %v3183_v48 = vadd.s32 4294967169, %v1884_v57  ;;  %v3175_v3 = vadd.s32 4294967294, %v1521_v40  ;;  %v1606_v45 = vsel %vm1602_vm10, %v1586_v43, %v4329_v58  ;;  %v1608_v24 = vsel %vm1604_vm11, %v4331_v22, %v1607_v27  ;;  %v1378_v43 = vpop.f32.mrf.mxu2 }
 0x9b0   :  { %v5639_v11 = vshll.u32 %v4452_v19, 16  ;;  %v1666_v34 = vadd.s32 1, %v1662_v35  ;;  %v1815_v6 = vadd.s32 %v1813_v18, %v1811_v36  ;;  %v1793_v50 = vadd.s32 %v1791_v54, %v1789_v7 }
 0x9b1   :  { %v1890_v42 = vadd.s32 1, %v3183_v48  ;;  %v1609_v37 = vsel %vm1603_vm13, %v1606_v45, %v1608_v24  ;;  %v1805_v58 = vshrl.u32 %v4474_v30, 16  ;;  %vm3176_vm5 = vcmp.lt.s32.totalorder %v3175_v3, 0 }
 0x9b2   :  { %v4530_v17 = vadd.s32 %v4462_v59, %v5639_v11  ;;  %v1783_v22 = vshrl.u32 %v4476_v41, 16  ;;  %v1663_v18 = vmul.u32 %v4376_v5, %v1609_v37  ;;  %v4539_v40 = vsel %vm3176_vm5, 0, %v3175_v3 }
 0x9b3   :  { %vm1891_vm10 = vcmp.gt.s32.totalorder %v1890_v42, 0  ;;  %v1816_v62 = vadd.s32 %v1815_v6, %v1805_v58  ;;  %v1807_v7 = vshrl.u32 %v4490_v10, 16  ;;  %v4543_v44 = vadd.f32 %v1378_v43, %v4207_v39 }
 0x9b4   :  { %vm1665_vm9 = vc.u32 %v4517_v9, %v4530_v17  ;;  %v1892_v19 = vsel %vm1891_vm10, %v1890_v42, 0  ;;  %v1794_v16 = vadd.s32 %v1793_v50, %v1783_v22  ;;  %v1762_v41 = vsel %vm1760_vm14, %v4416_v25, 2102212464 }
 0x9b5   :  { %v1667_v59 = vsel %vm1665_vm9, %v1666_v34, %v1662_v35  ;;  %v1894_v13 = vand.u32 31, %v1892_v19  ;;  %5640 = vst [vmem:[#allocation19_spill] sm:$0xff] %v4543_v44  ;;  %v1785_v1 = vshrl.u32 %v4493_v26, 16  ;;  %v1741_v5 = vshrl.u32 %v5598_v31, %v4347_v63 }
 0x9b6   :  { %v4545_v30 = vadd.s32 %v1667_v59, %v1663_v18  ;;  %v1817_v27 = vadd.s32 %v1816_v62, %v1807_v7  ;;  %v5596_v35 = vand.u32 2147483647, %v4501_v33  ;;  %v1529_v36 = vsub.s32 4294967266, %v4539_v40 }
 0x9b7   :  { %v4551_v8 = vsub.s32 32, %v1894_v13  ;;  %v4556_v10 = vadd.s32 %v1794_v16, %v1785_v1  ;;  %v1761_v57 = vsel %vm1757_vm15, %v1741_v5, %v4412_v49  ;;  %v1763_v25 = vsel %vm1759_vm3, %v4414_v53, %v1762_v41 }
 0x9b8   :  { %v4567_v26 = vmul.f32 %v4209_v56, %v4543_v44  ;;  %v1669_v63 = vadd.s32 536870912, %v4545_v30  ;;  %v4571_v54 = vadd.s32 %v4496_v55, %v1806_v0  ;;  %v5642_v48 = vmov 2475754826  }
 0x9b9   :  { %v1898_v3 = vshrl.u32 %v5642_v48, %v4551_v8  ;;  %v5643_v45 = vmov 2131351028   ;;  %v1821_v49 = vadd.s32 1, %v1817_v27  ;;  %v1887_v11 = vand.u32 8388607, %v5596_v35 }
 0x9ba   :  { %5641 = vst [vmem:[#allocation20_spill] sm:$0xff] %v4567_v26  ;;  %v1901_v24 = vshrl.u32 %v5643_v45, %v4551_v8  ;;  %v5644_v53 = vmov 2102212464   ;;  %v5645_v6 = vmov 920167782   ;;  %v1764_v55 = vsel %vm1758_vm1, %v1761_v57, %v1763_v25 }
 0x9bb   :  { %v1904_v34 = vshrl.u32 %v5644_v53, %v4551_v8  ;;  %v1907_v42 = vshrl.u32 %v5645_v6, %v4551_v8  ;;  %vm1820_vm11 = vc.u32 %v4556_v10, %v4571_v54  ;;  %v1897_v0 = vshll.u32 %v5598_v31, %v1894_v13 }
 0x9bc   :  { %v1900_v50 = vshll.u32 %v5642_v48, %v1894_v13  ;;  %v4589_v37 = vshrl.u32 %v1892_v19, 5  ;;  %v1903_v58 = vshll.u32 %v5643_v45, %v1894_v13  ;;  %v1906_v22 = vshll.u32 %v5644_v53, %v1894_v13 }
 0x9bd   :  { %v2038_v43 = vand.u32 2139095040, %v4567_v26  ;;  %v4594_v59 = vor.u32 %v1898_v3, %v1897_v0  ;;  %v1909_v2 = vshll.u32 %v5645_v6, %v1894_v13  ;;  %v5646_v18 = vmov 1326507024  }
 0x9be   :  { %v4596_v62 = vor.u32 %v1901_v24, %v1900_v50  ;;  %v1910_v16 = vshrl.u32 %v5646_v18, %v4551_v8  ;;  %v1822_v7 = vsel %vm1820_vm11, %v1821_v49, %v1817_v27  ;;  %v1888_v41 = vor.u32 8388608, %v1887_v11 }
 0x9bf   :  { %v4601_v1 = vor.u32 %v1904_v34, %v1903_v58  ;;  %v1908_v19 = vor.u32 %v1907_v42, %v1906_v22  ;;  %v1818_v5 = vmul.u32 %v4458_v15, %v1764_v55  ;;  %v1525_v25 = vsub.s32 32, %v4539_v40 }
 0x9c0   :  { %v1911_v57 = vor.u32 %v1910_v16, %v1909_v2  ;;  %v1530_v35 = vadd.s32 127, %v1529_v36  ;;  %vm1912_vm13 = vcmp.lt.s32.totalorder %v4589_v37, 1  ;;  %v2039_v3 = vshrl.u32 %v2038_v43, 23 }
 0x9c1   :  { %v4606_v24 = vshrl.u32 %v1669_v63, 30  ;;  %v1823_v13 = vadd.s32 %v1822_v7, %v1818_v5  ;;  %vm1915_vm14 = vcmp.lt.s32.totalorder %v4589_v37, 4  ;;  %v1920_v27 = vsel %vm1912_vm13, %v4594_v59, %v4596_v62 }
 0x9c2   :  { %vm1914_vm15 = vcmp.lt.s32.totalorder %v4589_v37, 3  ;;  %v1921_v15 = vsel %vm1915_vm14, %v1908_v19, 920167782  ;;  %v1924_v36 = vsel %vm1912_vm13, %v4596_v62, %v4601_v1  ;;  %v4620_v63 = vshll.u32 %v1888_v41, 8 }
 0x9c3   :  { %5647 = vst [vmem:[#allocation21_spill] sm:$0xff] %v4606_v24  ;;  %v1509_v49 = vadd.s32 %v4353_v32, %v4341_v38  ;;  %vm1913_vm3 = vcmp.lt.s32.totalorder %v4589_v37, 2  ;;  %v1922_v11 = vsel %vm1914_vm15, %v4601_v1, %v1921_v15  ;;  %v1925_v34 = vsel %vm1915_vm14, %v1911_v57, 1326507024 }
 0x9c4   :  { %v1531_v42 = vshll.u32 %v1530_v35, 23  ;;  %v1923_v55 = vsel %vm1913_vm3, %v1920_v27, %v1922_v11  ;;  %v1926_v0 = vsel %vm1914_vm15, %v1908_v19, %v1925_v34  ;;  %v3186_v50 = vadd.s32 4294967169, %v2039_v3 }
 0x9c5   :  { %v1527_v58 = vshrl.u32 %v1509_v49, %v1525_v25  ;;  %v1824_v22 = vadd.s32 536870912, %v1823_v13  ;;  %v1927_v38 = vsel %vm1913_vm3, %v1924_v36, %v1926_v0  ;;  %v1671_v32 = vshll.u32 %v4606_v24, 30 }
 0x9c6   :  { %v1929_v43 = vand.u32 65535, %v4620_v63  ;;  %v1932_v2 = vshrl.u32 %v1927_v38, 16  ;;  %v1954_v16 = vshrl.u32 %v1923_v55, 16  ;;  %v1526_v35 = vshll.u32 %v4478_v12, %v4539_v40 }
 0x9c7   :  { %v1532_v7 = vor.u32 4788187, %v1531_v42  ;;  %v2045_v5 = vadd.s32 1, %v3186_v50  ;;  %v4642_v57 = vshrl.u32 %v1824_v22, 30  ;;  %v1953_v25 = vand.u32 65535, %v1923_v55 }
 0x9c8   :  { %v4640_v41 = vmul.u32 %v1932_v2, %v1929_v43  ;;  %v1528_v19 = vor.u32 %v1527_v58, %v1526_v35  ;;  %v4644_v3 = vmul.u32 %v1954_v16, %v1929_v43  ;;  %v4647_v27 = vsub.s32 %v4545_v30, %v1671_v32 }
 0x9c9   :  { %5648 = vst [vmem:[#allocation22_spill] sm:$0xff] %v4642_v57  ;;  %v1931_v15 = vand.u32 65535, %v1927_v38  ;;  %v1930_v36 = vshrl.u32 %v4620_v63, 16  ;;  %v1533_v11 = vand.u32 2147483647, %v1532_v7  ;;  %vm2046_vm1 = vcmp.gt.s32.totalorder %v2045_v5, 0 }
 0x9ca   :  { %v1959_v49 = vshll.u32 %v4644_v3, 16  ;;  %v1937_v12 = vshll.u32 %v4640_v41, 16  ;;  %v1535_v40 = vcvt.s32.f32 %v1528_v19  ;;  %v1826_v34 = vshll.u32 %v4642_v57, 30 }
 0x9cb   :  { %v1955_v42 = vmul.u32 %v1953_v25, %v1929_v43  ;;  %v4653_v0 = vmul.u32 %v1953_v25, %v1930_v36  ;;  %v1674_v55 = vsub.s32 0, %v4647_v27  ;;  %v1933_v50 = vmul.u32 %v1931_v15, %v1929_v43 }
 0x9cc   :  { %v4656_v30 = vmul.u32 %v1931_v15, %v1930_v36  ;;  %v2047_v58 = vsel %vm2046_vm1, %v2045_v5, 0  ;;  %vm1673_vm6 = vcmp.lt.s32.totalorder %v4647_v27, 0  ;;  %v1536_v38 = vmul.f32 %v1535_v40, %v1533_v11 }
 0x9cd   :  { %vm1963_vm7 = vc.u32 %v1955_v42, %v1959_v49  ;;  %v4659_v22 = vadd.s32 %v1959_v49, %v1955_v42  ;;  %v1943_v32 = vadd.s32 %v1937_v12, %v1933_v50  ;;  %v4661_v35 = vsub.s32 %v1823_v13, %v1826_v34 }
 0x9ce   :  { %vm1941_vm8 = vc.u32 %v1933_v50, %v1937_v12  ;;  %v5597_v7 = vshll.u32 %v4653_v0, 16  ;;  %v2049_v19 = vand.u32 31, %v2047_v58  ;;  %vm1417_vm12 = vcmp.lt.s32.totalorder %v4216_v47, 0 }
 0x9cf   :  { %v1675_v43 = vsel %vm1673_vm6, %v1674_v55, %v4647_v27  ;;  %v1939_v25 = vshll.u32 %v4656_v30, 16  ;;  %v1964_v5 = vsel %vm1963_vm7, 1, %v5638_v29  ;;  %v1958_v15 = vmul.u32 %v1954_v16, %v1930_v36 }
 0x9d0   :  { %vm1967_vm4 = vc.u32 %v4659_v22, %v5597_v7  ;;  %v4672_v49 = vsub.s32 32, %v2049_v19  ;;  %v1537_v11 = vxor.u32 2147483648, %v1536_v38  ;;  %v1539_v12 = vsub.s32 4, %v4450_v14 }
 0x9d1   :  { %v1942_v40 = vsel %vm1941_vm8, 1, %v5638_v29  ;;  %vm1945_vm2 = vc.u32 %v1943_v32, %v1939_v25  ;;  %v1676_v34 = vclz %v1675_v43  ;;  %v1829_v42 = vsub.s32 0, %v4661_v35 }
 0x9d2   :  { %v1936_v55 = vmul.u32 %v1932_v2, %v1930_v36  ;;  %v1966_v50 = vadd.s32 %v1964_v5, %v1958_v15  ;;  %vm1828_vm9 = vcmp.lt.s32.totalorder %v4661_v35, 0  ;;  %v1968_v16 = vsel %vm1967_vm4, 1, %v5638_v29 }
 0x9d3   :  { %v2053_v7 = vshrl.u32 %v5642_v48, %v4672_v49  ;;  %v2056_v31 = vshrl.u32 %v5643_v45, %v4672_v49  ;;  %v5649_v13 = vand.u32 2147483647, %v4216_v47  ;;  %v1946_v2 = vsel %vm1945_vm2, 1, %v5638_v29 }
 0x9d4   :  { %v1944_v32 = vadd.s32 %v1942_v40, %v1936_v55  ;;  %v5652_v36 = vand.u32 2147483647, %v4567_v26  ;;  %v2059_v25 = vshrl.u32 %v5644_v53, %v4672_v49  ;;  %v5653_v5 = vmov 683565275  }
 0x9d5   :  { %vm4685_vm10 = vcmp.le.f32.partialorder %v5649_v13, 0.7853982  ;;  %v2052_v15 = vshll.u32 %v5653_v5, %v2049_v19  ;;  %v2055_v4 = vshll.u32 %v5642_v48, %v2049_v19  ;;  %v2061_v61 = vshll.u32 %v5644_v53, %v2049_v19 }
 0x9d6   :  { %v2042_v43 = vand.u32 8388607, %v5652_v36  ;;  %v2062_v13 = vshrl.u32 %v5645_v6, %v4672_v49  ;;  %v1830_v52 = vsel %vm1828_vm9, %v1829_v42, %v4661_v35  ;;  %v1970_v40 = vadd.s32 %v1968_v16, %v1966_v50 }
 0x9d7   :  { %v4700_v55 = vshrl.u32 %v2047_v58, 5  ;;  %v2058_v44 = vshll.u32 %v5643_v45, %v2049_v19  ;;  %v4703_v36 = vor.u32 %v2053_v7, %v2052_v15  ;;  %v4705_v20 = vor.u32 %v2056_v31, %v2055_v4 }
 0x9d8   :  { %v2063_v46 = vor.u32 %v2062_v13, %v2061_v61  ;;  %v2065_v26 = vshrl.u32 %v5646_v18, %v4672_v49  ;;  %v1538_v33 = vsel %vm1417_vm12, %v1537_v11, %v1536_v38  ;;  %v1948_v57 = vadd.s32 %v1946_v2, %v1944_v32 }
 0x9d9   :  { %v4711_v24 = vor.u32 %v2059_v25, %v2058_v44  ;;  %v2064_v42 = vshll.u32 %v5645_v6, %v2049_v19  ;;  %v3178_v58 = vadd.s32 4294967294, %v1676_v34  ;;  %v1831_v50 = vclz %v1830_v52 }
 0x9da   :  { %v1960_v16 = vshrl.u32 %v4644_v3, 16  ;;  %v2043_v7 = vor.u32 8388608, %v2042_v43  ;;  %v1938_v4 = vshrl.u32 %v4640_v41, 16  ;;  %vm2067_vm5 = vcmp.lt.s32.totalorder %v4700_v55, 1 }
 0x9db   :  { %v2066_v31 = vor.u32 %v2065_v26, %v2064_v42  ;;  %vm2070_vm11 = vcmp.lt.s32.totalorder %v4700_v55, 4  ;;  %vm2069_vm1 = vcmp.lt.s32.totalorder %v4700_v55, 3  ;;  %v2075_v44 = vsel %vm2067_vm5, %v4703_v36, %v4705_v20 }
 0x9dc   :  { %v1971_v61 = vadd.s32 %v1970_v40, %v1960_v16  ;;  %v2076_v52 = vsel %vm2070_vm11, %v2063_v46, 920167782  ;;  %v4728_v41 = vsel %vm1417_vm12, %v1539_v12, %v4450_v14  ;;  %v1949_v26 = vadd.s32 %v1948_v57, %v1938_v4 }
 0x9dd   :  { %vm2068_vm6 = vcmp.lt.s32.totalorder %v4700_v55, 2  ;;  %v2077_v3 = vsel %vm2069_vm1, %v4711_v24, %v2076_v52  ;;  %v4737_v38 = vsel %vm4685_vm10, %v4216_v47, %v1538_v33  ;;  %v1962_v19 = vshrl.u32 %v4653_v0, 16 }
 0x9de   :  { %v2078_v11 = vsel %vm2068_vm6, %v2075_v44, %v2077_v3  ;;  %v2079_v14 = vsel %vm2067_vm5, %v4705_v20, %v4711_v24  ;;  %vm3179_vm7 = vcmp.lt.s32.totalorder %v3178_v58, 0  ;;  %v1940_v57 = vshrl.u32 %v4656_v30, 16 }
 0x9df   :  { %v2080_v12 = vsel %vm2070_vm11, %v2066_v31, 1326507024  ;;  %v4749_v34 = vshll.u32 %v2043_v7, 8  ;;  %v3181_v32 = vadd.s32 4294967294, %v1831_v50  ;;  %v1972_v2 = vadd.s32 %v1971_v61, %v1962_v19 }
 0x9e0   :  { %v2081_v43 = vsel %vm2069_vm1, %v2063_v46, %v2080_v12  ;;  %v4758_v25 = vadd.s32 %v4530_v17, %v4517_v9  ;;  %v4760_v15 = vadd.s32 %v1949_v26, %v1940_v57  ;;  %v2109_v13 = vshrl.u32 %v2078_v11, 16 }
 0x9e1   :  { %v2082_v30 = vsel %vm2068_vm6, %v2079_v14, %v2081_v43  ;;  %v4766_v40 = vmul.f32 %v4737_v38, %v4737_v38  ;;  %v4768_v42 = vsel %vm3179_vm7, 0, %v3178_v58  ;;  %v1896_v50 = vshrl.u32 %v5653_v5, %v4551_v8 }
 0x9e2   :  { %5654 = vst [vmem:[#allocation23_spill] sm:$0xff] %v4760_v15  ;;  %v1917_v46 = vsel %vm1915_vm14, %v4601_v1, 2102212464  ;;  %v5655_v9 = vshll.u32 %v4653_v0, 16  ;;  %v2084_v16 = vand.u32 65535, %v4749_v34  ;;  %v2086_v7 = vand.u32 65535, %v2082_v30 }
 0x9e3   :  { %v2087_v4 = vshrl.u32 %v2082_v30, 16  ;;  %vm3182_vm8 = vcmp.lt.s32.totalorder %v3181_v32, 0  ;;  %v1916_v58 = vsel %vm1912_vm13, %v1896_v50, %v4594_v59  ;;  %v1976_v31 = vadd.s32 1, %v1972_v2 }
 0x9e4   :  { %v4778_v17 = vadd.s32 %v4659_v22, %v5655_v9  ;;  %v2085_v8 = vshrl.u32 %v4749_v34, 16  ;;  %v1918_v1 = vsel %vm1914_vm15, %v4596_v62, %v1917_v46  ;;  %v2111_v22 = vmul.u32 %v2109_v13, %v2084_v16 }
 0x9e5   :  { %v2089_v0 = vmul.u32 %v2087_v4, %v2084_v16  ;;  %v1544_v61 = vmul.f32 -0.001358992, %v4766_v40  ;;  %v1551_v44 = vmul.f32 -0.00019511016, %v4766_v40  ;;  %v2108_v26 = vand.u32 65535, %v2078_v11 }
 0x9e6   :  { %5656 = vst [vmem:[#allocation24_spill] sm:$0xff] %v4778_v17  ;;  %vm1975_vm14 = vc.u32 %v4760_v15, %v4778_v17  ;;  %v2090_v52 = vmul.u32 %v2086_v7, %v2085_v8  ;;  %v1680_v59 = vsub.s32 32, %v4768_v42  ;;  %v1684_v3 = vsub.s32 4294967266, %v4768_v42 }
 0x9e7   :  { %v2088_v19 = vmul.u32 %v2086_v7, %v2084_v16  ;;  %v2092_v14 = vshll.u32 %v2089_v0, 16  ;;  %v4797_v57 = vsel %vm3182_vm8, 0, %v3181_v32  ;;  %v1919_v12 = vsel %vm1913_vm3, %v1916_v58, %v1918_v1 }
 0x9e8   :  { %v1977_v43 = vsel %vm1975_vm14, %v1976_v31, %v1972_v2  ;;  %v2091_v30 = vmul.u32 %v2087_v4, %v2085_v8  ;;  %v2114_v11 = vshll.u32 %v2111_v22, 16  ;;  %v2094_v46 = vshll.u32 %v2090_v52, 16  ;;  %v1397_v2 = vpop.f32.mrf.mxu3 }
 0x9e9   :  { %vm2096_vm13 = vc.u32 %v2088_v19, %v2092_v14  ;;  %v2098_v50 = vadd.s32 %v2092_v14, %v2088_v19  ;;  %v2110_v33 = vmul.u32 %v2108_v26, %v2084_v16  ;;  %v2112_v7 = vmul.u32 %v2108_v26, %v2085_v8 }
 0x9ea   :  { %v2097_v9 = vsel %vm2096_vm13, 1, %v5638_v29  ;;  %v1552_v17 = vadd.f32 0.008332121, %v1551_v44  ;;  %v1685_v15 = vadd.s32 127, %v1684_v3  ;;  %v1973_v62 = vmul.u32 %v4620_v63, %v1919_v12 }
 0x9eb   :  { %v2099_v47 = vadd.s32 %v2097_v9, %v2091_v30  ;;  %v1839_v32 = vsub.s32 4294967266, %v4797_v57  ;;  %vm2100_vm15 = vc.u32 %v2098_v50, %v2094_v46  ;;  %v2113_v37 = vmul.u32 %v2109_v13, %v2085_v8 }
 0x9ec   :  { %vm2118_vm3 = vc.u32 %v2110_v33, %v2114_v11  ;;  %v4804_v4 = vadd.s32 %v1977_v43, %v1973_v62  ;;  %v2093_v58 = vshrl.u32 %v2089_v0, 16  ;;  %v2101_v31 = vsel %vm2100_vm15, 1, %v5638_v29 }
 0x9ed   :  { %v2119_v1 = vsel %vm2118_vm3, 1, %v5638_v29  ;;  %v2103_v16 = vadd.s32 %v2101_v31, %v2099_v47  ;;  %v2116_v26 = vshll.u32 %v2112_v7, 16  ;;  %v2120_v44 = vadd.s32 %v2114_v11, %v2110_v33 }
 0x9ee   :  { %v2121_v3 = vadd.s32 %v2119_v1, %v2113_v37  ;;  %v1545_v19 = vadd.f32 0.041655596, %v1544_v61  ;;  %v1553_v63 = vmul.f32 %v1552_v17, %v4766_v40  ;;  %v1686_v14 = vshll.u32 %v1685_v15, 23 }
 0x9ef   :  { %v4810_v12 = vadd.f32 %v1397_v2, %v4219_v51  ;;  %v1840_v13 = vadd.s32 127, %v1839_v32  ;;  %v2072_v8 = vsel %vm2070_vm11, %v4711_v24, 2102212464  ;;  %v2104_v0 = vadd.s32 %v2103_v16, %v2093_v58 }
 0x9f0   :  { %vm2122_vm12 = vc.u32 %v2120_v44, %v2116_v26  ;;  %v2051_v47 = vshrl.u32 %v5653_v5, %v4672_v49  ;;  %v2095_v62 = vshrl.u32 %v2090_v52, 16  ;;  %v1835_v15 = vsub.s32 32, %v4797_v57 }
 0x9f1   :  { %5657 = vst [vmem:[#allocation25_spill] sm:$0xff] %v4810_v12  ;;  %v2123_v33 = vsel %vm2122_vm12, 1, %v5638_v29  ;;  %v4820_v17 = vmul.f32 %v4224_v23, %v4810_v12  ;;  %v1979_v61 = vadd.s32 536870912, %v4804_v4  ;;  %v2115_v43 = vshrl.u32 %v2111_v22, 16 }
 0x9f2   :  { %v2125_v30 = vadd.s32 %v2123_v33, %v2121_v3  ;;  %v2071_v24 = vsel %vm2067_vm5, %v2051_v47, %v4703_v36  ;;  %v2073_v49 = vsel %vm2069_vm1, %v4705_v20, %v2072_v8  ;;  %v4830_v52 = vadd.s32 %v2104_v0, %v2095_v62  ;;  %v1380_v47 = vpop.f32.mrf.mxu2 }
 0x9f3   :  { %v2193_v50 = vand.u32 2139095040, %v4820_v17  ;;  %v1554_v11 = vadd.f32 -0.16666654, %v1553_v63  ;;  %v1682_v46 = vshrl.u32 %v4758_v25, %v1680_v59  ;;  %v2117_v9 = vshrl.u32 %v2112_v7, 16 }
 0x9f4   :  { %v2126_v32 = vadd.s32 %v2125_v30, %v2115_v43  ;;  %v1819_v22 = vadd.s32 %v4571_v54, %v4556_v10  ;;  %v1841_v37 = vshll.u32 %v1840_v13, 23  ;;  %v4836_v2 = vadd.s32 %v2120_v44, %v2116_v26 }
 0x9f5   :  { %v2194_v36 = vshrl.u32 %v2193_v50, 23  ;;  %v1546_v58 = vmul.f32 %v1545_v19, %v4766_v40  ;;  %v1687_v31 = vor.u32 4788187, %v1686_v14  ;;  %v2074_v20 = vsel %vm2068_vm6, %v2071_v24, %v2073_v49 }
 0x9f6   :  { %v2127_v1 = vadd.s32 %v2126_v32, %v2117_v9  ;;  %v1837_v16 = vshrl.u32 %v1819_v22, %v1835_v15  ;;  %v4841_v3 = vshrl.u32 %v1979_v61, 30  ;;  %vm2130_vm4 = vc.u32 %v4830_v52, %v4836_v2 }
 0x9f7   :  { %v3189_v25 = vadd.s32 4294967169, %v2194_v36  ;;  %v1555_v10 = vmul.f32 %v1554_v11, %v4766_v40  ;;  %v5658_v54 = vshll.u32 %v4647_v27, %v4768_v42  ;;  %v1836_v26 = vshll.u32 %v4661_v35, %v4797_v57 }
 0x9f8   :  { %v2131_v7 = vadd.s32 1, %v2127_v1  ;;  %v1842_v55 = vor.u32 4788187, %v1841_v37  ;;  %v2128_v44 = vmul.u32 %v4749_v34, %v2074_v20  ;;  %v1547_v63 = vadd.f32 -0.4999988, %v1546_v58 }
 0x9f9   :  { %v1683_v59 = vor.u32 %v1682_v46, %v5658_v54  ;;  %v2200_v19 = vadd.s32 1, %v3189_v25  ;;  %v5659_v14 = vsel %vm4685_vm10, 0, %v4728_v41  ;;  %v1688_v8 = vand.u32 2147483647, %v1687_v31 }
 0x9fa   :  { %v1559_v13 = vadd.s32 3, %v5659_v14  ;;  %v2132_v0 = vsel %vm2130_vm4, %v2131_v7, %v2127_v1  ;;  %v1838_v62 = vor.u32 %v1837_v16, %v1836_v26  ;;  %v1981_v27 = vshll.u32 %v4841_v3, 30 }
 0x9fb   :  { %v2133_v42 = vadd.s32 %v2132_v0, %v2128_v44  ;;  %vm2201_vm2 = vcmp.gt.s32.totalorder %v2200_v19, 0  ;;  %v1556_v33 = vadd.f32 1.0, %v1555_v10  ;;  %v1690_v57 = vcvt.s32.f32 %v1683_v59 }
 0x9fc   :  { %v2202_v35 = vsel %vm2201_vm2, %v2200_v19, 0  ;;  %v1843_v15 = vand.u32 2147483647, %v1842_v55  ;;  %v4858_v61 = vadd.f32 %v1380_v47, %v4207_v39  ;;  %v1548_v21 = vmul.f32 %v1547_v63, %v4766_v40 }
 0x9fd   :  { %v2134_v34 = vadd.s32 536870912, %v2133_v42  ;;  %v4861_v41 = vand.u32 3, %v1559_v13  ;;  %v2204_v43 = vand.u32 31, %v2202_v35  ;;  %v1691_v30 = vmul.f32 %v1690_v57, %v1688_v8 }
 0x9fe   :  { %5660 = vst [vmem:[#allocation26_spill] sm:$0xff] %v4858_v61  ;;  %v1845_v24 = vcvt.s32.f32 %v1838_v62  ;;  %v4864_v49 = vsub.s32 %v4804_v4, %v1981_v27  ;;  %v1557_v11 = vmul.f32 %v1556_v33, %v4737_v38  ;;  %v5618_v39 = vand.u32 2147483647, %v4820_v17 }
 0x9ff   :  { %v4866_v50 = vshrl.u32 %v2134_v34, 30  ;;  %v4869_v46 = vsub.s32 32, %v2204_v43  ;;  %v4874_v40 = vmul.f32 %v4209_v56, %v4858_v61  ;;  %vm1562_vm9 = vcmp.eq.s32.totalorder %v4861_v41, 0 }
 0xa00   :  { %v1846_v9 = vmul.f32 %v1845_v24, %v1843_v15  ;;  %vm1572_vm10 = vcmp.lt.s32.totalorder %v4235_v28, 0  ;;  %vm1727_vm5 = vcmp.lt.s32.totalorder %v4295_v60, 0  ;;  %v1549_v4 = vadd.f32 1.0, %v1548_v21 }
 0xa01   :  { %v1692_v32 = vxor.u32 2147483648, %v1691_v30  ;;  %v1984_v22 = vsub.s32 0, %v4864_v49  ;;  %v2136_v38 = vshll.u32 %v4866_v50, 30  ;;  %v1563_v37 = vxor.u32 2147483648, %v1557_v11 }
 0xa02   :  { %v5661_v36 = vand.u32 2147483647, %v4295_v60  ;;  %vm1983_vm1 = vcmp.lt.s32.totalorder %v4864_v49, 0  ;;  %v2208_v56 = vshrl.u32 %v5642_v48, %v4869_v46  ;;  %v2211_v31 = vshrl.u32 %v5643_v45, %v4869_v46 }
 0xa03   :  { %v1847_v20 = vxor.u32 2147483648, %v1846_v9  ;;  %v2197_v1 = vand.u32 8388607, %v5618_v39  ;;  %v2214_v16 = vshrl.u32 %v5644_v53, %v4869_v46  ;;  %v2348_v25 = vand.u32 2139095040, %v4874_v40 }
 0xa04   :  { %vm4883_vm11 = vcmp.le.f32.partialorder %v5661_v36, 0.7853982  ;;  %vm1565_vm6 = vcmp.eq.s32.totalorder %v4861_v41, 2  ;;  %v5664_v10 = vand.u32 2147483647, %v4235_v28  ;;  %v2207_v59 = vshll.u32 %v5653_v5, %v2204_v43 }
 0xa05   :  { %v2210_v7 = vshll.u32 %v5642_v48, %v2204_v43  ;;  %v2216_v26 = vshll.u32 %v5644_v53, %v2204_v43  ;;  %v2217_v55 = vshrl.u32 %v5645_v6, %v4869_v46  ;;  %vm1561_vm8 = vcmp.lt.s32.totalorder %v4861_v41, 2 }
 0xa06   :  { %vm4900_vm7 = vcmp.le.f32.partialorder %v5664_v10, 0.7853982  ;;  %v1985_v44 = vsel %vm1983_vm1, %v1984_v22, %v4864_v49  ;;  %v4911_v19 = vsub.s32 %v2133_v42, %v2136_v38  ;;  %v4913_v63 = vshrl.u32 %v2202_v35, 5  ;;  %v5667_v38 = vld [vmem:[#allocation21_spill] sm:$0xff] }
 0xa07   :  { %v2213_v14 = vshll.u32 %v5643_v45, %v2204_v43  ;;  %v4916_v13 = vor.u32 %v2208_v56, %v2207_v59  ;;  %v4918_v8 = vor.u32 %v2211_v31, %v2210_v7  ;;  %v2218_v0 = vor.u32 %v2217_v55, %v2216_v26  ;;  %v2904_v7 = vld [vmem:[%s5575_s9 + $0x1a] ss:$8 sm:$0x3] }
 0xa08   :  { %v2220_v47 = vshrl.u32 %v5646_v18, %v4869_v46  ;;  %v1566_v62 = vxor.u32 2147483648, %v1549_v4  ;;  %v1693_v27 = vsel %vm1572_vm10, %v1692_v32, %v1691_v30  ;;  %v2198_v33 = vor.u32 8388608, %v2197_v1 }
 0xa09   :  { %v4924_v57 = vor.u32 %v2214_v16, %v2213_v14  ;;  %v1848_v42 = vsel %vm1727_vm5, %v1847_v20, %v1846_v9  ;;  %v1986_v35 = vclz %v1985_v44  ;;  %v2219_v15 = vshll.u32 %v5645_v6, %v2204_v43 }
 0xa0a   :  { %v2349_v34 = vshrl.u32 %v2348_v25, 23  ;;  %v1564_v21 = vsel %vm1562_vm9, %v1549_v4, %v1563_v37  ;;  %v2139_v24 = vsub.s32 0, %v4911_v19  ;;  %vm2222_vm14 = vcmp.lt.s32.totalorder %v4913_v63, 1 }
 0xa0b   :  { %vm2225_vm13 = vcmp.lt.s32.totalorder %v4913_v63, 4  ;;  %v2221_v30 = vor.u32 %v2220_v47, %v2219_v15  ;;  %vm2224_vm15 = vcmp.lt.s32.totalorder %v4913_v63, 3  ;;  %v2230_v9 = vsel %vm2222_vm14, %v4916_v13, %v4918_v8  ;;  %v5669_v15 = vld [vmem:[#allocation13_spill] sm:$0xff] }
 0xa0c   :  { %v2231_v43 = vsel %vm2225_vm13, %v2218_v0, 920167782  ;;  %v4944_v4 = vsel %vm4883_vm11, %v4295_v60, %v1848_v42  ;;  %vm2138_vm3 = vcmp.lt.s32.totalorder %v4911_v19, 0  ;;  %v4950_v22 = vshll.u32 %v2198_v33, 8 }
 0xa0d   :  { %v2232_v32 = vsel %vm2224_vm15, %v4924_v57, %v2231_v43  ;;  %v1694_v37 = vsub.s32 4, %v5667_v38  ;;  %v3184_v36 = vadd.s32 4294967294, %v1986_v35  ;;  %vm2223_vm12 = vcmp.lt.s32.totalorder %v4913_v63, 2 }
 0xa0e   :  { %v3192_v56 = vadd.s32 4294967169, %v2349_v34  ;;  %v1567_v31 = vsel %vm1565_vm6, %v1566_v62, %v1557_v11  ;;  %v4959_v20 = vsel %vm4900_vm7, %v4235_v28, %v1693_v27  ;;  %v2233_v1 = vsel %vm2223_vm12, %v2230_v9, %v2232_v32 }
 0xa0f   :  { %5668 = vst [vmem:[#allocation21_spill] sm:$0xff] %v4959_v20  ;;  %v2234_v16 = vsel %vm2222_vm14, %v4918_v8, %v4924_v57  ;;  %v1568_v25 = vsel %vm1561_vm8, %v1564_v21, %v1567_v31  ;;  %v4971_v10 = vmul.f32 %v4944_v4, %v4944_v4  ;;  %v2140_v11 = vsel %vm2138_vm3, %v2139_v24, %v4911_v19 }
 0xa10   :  { %v2235_v59 = vsel %vm2225_vm13, %v2221_v30, 1326507024  ;;  %v2239_v55 = vand.u32 65535, %v4950_v22  ;;  %v2263_v41 = vand.u32 65535, %v2233_v1  ;;  %v2264_v44 = vshrl.u32 %v2233_v1, 16 }
 0xa11   :  { %v2236_v26 = vsel %vm2224_vm15, %v2218_v0, %v2235_v59  ;;  %vm3185_vm4 = vcmp.lt.s32.totalorder %v3184_v36, 0  ;;  %v2240_v47 = vshrl.u32 %v4950_v22, 16  ;;  %v2355_v62 = vadd.s32 1, %v3192_v56 }
 0xa12   :  { %v2237_v14 = vsel %vm2223_vm12, %v2234_v16, %v2236_v26  ;;  %v2141_v27 = vclz %v2140_v11  ;;  %v2266_v35 = vmul.u32 %v2264_v44, %v2239_v55  ;;  %vm1558_vm2 = vweird.f32 %v5669_v15 }
 0xa13   :  { %v2241_v33 = vand.u32 65535, %v2237_v14  ;;  %v2242_v42 = vshrl.u32 %v2237_v14, 16  ;;  %v4986_v34 = vperm.slane %v2904_v7, 0  ;;  %v4991_v0 = vsel %vm1572_vm10, %v1694_v37, %v5667_v38 }
 0xa14   :  { %v2267_v21 = vmul.u32 %v2263_v41, %v2240_v47  ;;  %v4993_v24 = vsel %vm1558_vm2, nan, %v1568_v25  ;;  %v4997_v30 = vmul.f32 %v4959_v20, %v4959_v20  ;;  %v1861_v32 = vmul.f32 -0.00019511016, %v4971_v10  ;;  %v5675_v20 = vld [vmem:[#allocation20_spill] sm:$0xff] }
 0xa15   :  { %v2244_v9 = vmul.u32 %v2242_v42, %v2239_v55  ;;  %v2245_v43 = vmul.u32 %v2241_v33, %v2240_v47  ;;  %v5001_v56 = vsel %vm3185_vm4, 0, %v3184_v36  ;;  %v2269_v31 = vshll.u32 %v2266_v35, 16 }
 0xa16   :  { %vm2356_vm9 = vcmp.gt.s32.totalorder %v2355_v62, 0  ;;  %v3187_v1 = vadd.s32 4294967294, %v2141_v27  ;;  %v2243_v16 = vmul.u32 %v2241_v33, %v2239_v55  ;;  %v2265_v37 = vmul.u32 %v2263_v41, %v2239_v55 }
 0xa17   :  { %v2247_v38 = vshll.u32 %v2244_v9, 16  ;;  %v2246_v11 = vmul.u32 %v2242_v42, %v2240_v47  ;;  %v2249_v25 = vshll.u32 %v2245_v43, 16  ;;  %v2268_v59 = vmul.u32 %v2264_v44, %v2240_v47 }
 0xa18   :  { %v2271_v7 = vshll.u32 %v2267_v21, 16  ;;  %vm2273_vm1 = vc.u32 %v2265_v37, %v2269_v31  ;;  %v2275_v14 = vadd.s32 %v2269_v31, %v2265_v37  ;;  %v2227_v15 = vsel %vm2225_vm13, %v4924_v57, 2102212464 }
 0xa19   :  { %vm2251_vm10 = vc.u32 %v2243_v16, %v2247_v38  ;;  %v2253_v26 = vadd.s32 %v2247_v38, %v2243_v16  ;;  %v2274_v39 = vsel %vm2273_vm1, 1, %v5638_v29  ;;  %v2357_v27 = vsel %vm2356_vm9, %v2355_v62, 0 }
 0xa1a   :  { %v2252_v36 = vsel %vm2251_vm10, 1, %v5638_v29  ;;  %v2276_v55 = vadd.s32 %v2274_v39, %v2268_v59  ;;  %vm2277_vm8 = vc.u32 %v2275_v14, %v2271_v7  ;;  %vm3188_vm3 = vcmp.lt.s32.totalorder %v3187_v1, 0 }
 0xa1b   :  { %v2254_v33 = vadd.s32 %v2252_v36, %v2246_v11  ;;  %vm2255_vm6 = vc.u32 %v2253_v26, %v2249_v25  ;;  %v2206_v41 = vshrl.u32 %v5653_v5, %v4869_v46  ;;  %v2278_v47 = vsel %vm2277_vm8, 1, %v5638_v29  ;;  %v5670_v26 = vld [vmem:[#allocation22_spill] sm:$0xff] }
 0xa1c   :  { %v2256_v44 = vsel %vm2255_vm6, 1, %v5638_v29  ;;  %v2248_v42 = vshrl.u32 %v2244_v9, 16  ;;  %v2270_v31 = vshrl.u32 %v2266_v35, 16  ;;  %v2280_v16 = vadd.s32 %v2278_v47, %v2276_v55 }
 0xa1d   :  { %v2258_v57 = vadd.s32 %v2256_v44, %v2254_v33  ;;  %v1994_v38 = vsub.s32 4294967266, %v5001_v56  ;;  %v2226_v62 = vsel %vm2222_vm14, %v2206_v41, %v4916_v13  ;;  %v2228_v39 = vsel %vm2224_vm15, %v4918_v8, %v2227_v15  ;;  %v5671_v41 = vld [vmem:[#allocation23_spill] sm:$0xff]  ;;  %v5672_v44 = vld [vmem:[#allocation24_spill] sm:$0xff] }
 0xa1e   :  { %v2359_v37 = vand.u32 31, %v2357_v27  ;;  %v2250_v46 = vshrl.u32 %v2245_v43, 16  ;;  %v2272_v25 = vshrl.u32 %v2267_v21, 16  ;;  %v2281_v59 = vadd.s32 %v2280_v16, %v2270_v31 }
 0xa1f   :  { %v2259_v11 = vadd.s32 %v2258_v57, %v2248_v42  ;;  %v1849_v9 = vsub.s32 4, %v5670_v26  ;;  %v5022_v35 = vsel %vm3188_vm3, 0, %v3187_v1  ;;  %v5619_v36 = vand.u32 2147483647, %v4874_v40 }
 0xa20   :  { %v5025_v33 = vsub.s32 32, %v2359_v37  ;;  %v2229_v13 = vsel %vm2223_vm12, %v2226_v62, %v2228_v39  ;;  %v5031_v8 = vadd.s32 %v2275_v14, %v2271_v7  ;;  %v2282_v43 = vadd.s32 %v2281_v59, %v2272_v25 }
 0xa21   :  { %v5029_v55 = vadd.s32 %v2259_v11, %v2250_v46  ;;  %v1854_v21 = vmul.f32 -0.001358992, %v4971_v10  ;;  %v1862_v15 = vadd.f32 0.008332121, %v1861_v32  ;;  %v1974_v47 = vadd.s32 %v5672_v44, %v5671_v41 }
 0xa22   :  { %v1990_v1 = vsub.s32 32, %v5001_v56  ;;  %v1995_v42 = vadd.s32 127, %v1994_v38  ;;  %v2149_v57 = vsub.s32 4294967266, %v5022_v35  ;;  %v2286_v63 = vadd.s32 1, %v2282_v43 }
 0xa23   :  { %vm2285_vm14 = vc.u32 %v5029_v55, %v5031_v8  ;;  %v2283_v31 = vmul.u32 %v4950_v22, %v2229_v13  ;;  %v2352_v7 = vand.u32 8388607, %v5619_v36  ;;  %v2366_v32 = vshrl.u32 %v5643_v45, %v5025_v33 }
 0xa24   :  { %v2369_v14 = vshrl.u32 %v5644_v53, %v5025_v33  ;;  %v2287_v16 = vsel %vm2285_vm14, %v2286_v63, %v2282_v43  ;;  %v5047_v62 = vshrl.u32 %v2357_v27, 5  ;;  %v2371_v38 = vshll.u32 %v5644_v53, %v2359_v37 }
 0xa25   :  { %v2372_v39 = vshrl.u32 %v5645_v6, %v5025_v33  ;;  %v2288_v46 = vadd.s32 %v2287_v16, %v2283_v31  ;;  %v2363_v22 = vshrl.u32 %v5642_v48, %v5025_v33  ;;  %v2365_v11 = vshll.u32 %v5642_v48, %v2359_v37 }
 0xa26   :  { %v2368_v25 = vshll.u32 %v5643_v45, %v2359_v37  ;;  %v2150_v59 = vadd.s32 127, %v2149_v57  ;;  %v2374_v41 = vshll.u32 %v5645_v6, %v2359_v37  ;;  %v2375_v27 = vshrl.u32 %v5646_v18, %v5025_v33 }
 0xa27   :  { %v2373_v13 = vor.u32 %v2372_v39, %v2371_v38  ;;  %v2289_v43 = vadd.s32 536870912, %v2288_v46  ;;  %v2362_v44 = vshll.u32 %v5653_v5, %v2359_v37  ;;  %v5060_v63 = vor.u32 %v2366_v32, %v2365_v11 }
 0xa28   :  { %v5062_v31 = vor.u32 %v2369_v14, %v2368_v25  ;;  %v1855_v16 = vadd.f32 0.041655596, %v1854_v21  ;;  %v1863_v36 = vmul.f32 %v1862_v15, %v4971_v10  ;;  %v2353_v12 = vor.u32 8388608, %v2352_v7 }
 0xa29   :  { %v2376_v28 = vor.u32 %v2375_v27, %v2374_v41  ;;  %v1992_v61 = vshrl.u32 %v1974_v47, %v1990_v1  ;;  %v1996_v57 = vshll.u32 %v1995_v42, 23  ;;  %v5065_v38 = vor.u32 %v2363_v22, %v2362_v44 }
 0xa2a   :  { %vm2380_vm13 = vcmp.lt.s32.totalorder %v5047_v62, 4  ;;  %v2145_v39 = vsub.s32 32, %v5022_v35  ;;  %vm2377_vm15 = vcmp.lt.s32.totalorder %v5047_v62, 1  ;;  %v2151_v32 = vshll.u32 %v2150_v59, 23 }
 0xa2b   :  { %v2386_v37 = vsel %vm2380_vm13, %v2373_v13, 920167782  ;;  %v2390_v21 = vsel %vm2380_vm13, %v2376_v28, 1326507024  ;;  %v5074_v15 = vshrl.u32 %v2289_v43, 30  ;;  %vm2379_vm12 = vcmp.lt.s32.totalorder %v5047_v62, 3 }
 0xa2c   :  { %v2389_v47 = vsel %vm2377_vm15, %v5060_v63, %v5062_v31  ;;  %v1991_v1 = vshll.u32 %v4864_v49, %v5001_v56  ;;  %v2129_v42 = vadd.s32 %v4836_v2, %v4830_v52  ;;  %v2391_v7 = vsel %vm2379_vm12, %v2373_v13, %v2390_v21 }
 0xa2d   :  { %5673 = vst [vmem:[#allocation13_spill] sm:$0xff] %v5074_v15  ;;  %v5087_v28 = vshll.u32 %v2353_v12, 8  ;;  %v1997_v14 = vor.u32 4788187, %v1996_v57  ;;  %vm2378_vm4 = vcmp.lt.s32.totalorder %v5047_v62, 2  ;;  %v2385_v22 = vsel %vm2377_vm15, %v5065_v38, %v5060_v63 }
 0xa2e   :  { %v2387_v49 = vsel %vm2379_vm12, %v5062_v31, %v2386_v37  ;;  %v1850_v52 = vsel %vm1727_vm5, %v1849_v9, %v5670_v26  ;;  %v1864_v2 = vadd.f32 -0.16666654, %v1863_v36  ;;  %v2147_v56 = vshrl.u32 %v2129_v42, %v2145_v39 }
 0xa2f   :  { %v2392_v12 = vsel %vm2378_vm4, %v2389_v47, %v2391_v7  ;;  %v1993_v11 = vor.u32 %v1992_v61, %v1991_v1  ;;  %v2146_v25 = vshll.u32 %v4911_v19, %v5022_v35  ;;  %v2152_v59 = vor.u32 4788187, %v2151_v32 }
 0xa30   :  { %v2291_v13 = vshll.u32 %v5074_v15, 30  ;;  %v2388_v41 = vsel %vm2378_vm4, %v2385_v22, %v2387_v49  ;;  %v2394_v27 = vand.u32 65535, %v5087_v28  ;;  %v2396_v43 = vand.u32 65535, %v2392_v12 }
 0xa31   :  { %v2397_v44 = vshrl.u32 %v2392_v12, 16  ;;  %v5110_v26 = vmul.f32 %v4986_v34, %v4993_v24  ;;  %v1856_v9 = vmul.f32 %v1855_v16, %v4971_v10  ;;  %v1998_v61 = vand.u32 2147483647, %v1997_v14 }
 0xa32   :  { %v2395_v36 = vshrl.u32 %v5087_v28, 16  ;;  %v1852_v19 = vsel %vm4883_vm11, 0, %v1850_v52  ;;  %v1865_v35 = vmul.f32 %v1864_v2, %v4971_v10  ;;  %v2148_v57 = vor.u32 %v2147_v56, %v2146_v25 }
 0xa33   :  { %v2399_v39 = vmul.u32 %v2397_v44, %v2394_v27  ;;  %v2000_v37 = vcvt.s32.f32 %v1993_v11  ;;  %v2418_v32 = vand.u32 65535, %v2388_v41  ;;  %v2419_v47 = vshrl.u32 %v2388_v41, 16 }
 0xa34   :  { %v2400_v21 = vmul.u32 %v2396_v43, %v2395_v36  ;;  %v2153_v1 = vand.u32 2147483647, %v2152_v59  ;;  %v5117_v42 = vsub.s32 %v2288_v46, %v2291_v13  ;;  %v2398_v7 = vmul.u32 %v2396_v43, %v2394_v27  ;;  %v5674_v46 = vld [vmem:[#allocation18_spill] sm:$0xff] }
 0xa35   :  { %v2402_v22 = vshll.u32 %v2399_v39, 16  ;;  %v5120_v16 = vmul.f32 -0.00019511016, %v4997_v30  ;;  %v1857_v14 = vadd.f32 -0.4999988, %v1856_v9  ;;  %v1869_v49 = vadd.s32 3, %v1852_v19 }
 0xa36   :  { %v2001_v58 = vmul.f32 %v2000_v37, %v1998_v61  ;;  %v2155_v52 = vcvt.s32.f32 %v2148_v57  ;;  %v2401_v12 = vmul.u32 %v2397_v44, %v2395_v36  ;;  %v2404_v56 = vshll.u32 %v2400_v21, 16  ;;  %v1399_v61 = vpop.f32.mrf.mxu3 }
 0xa37   :  { %vm2406_vm5 = vc.u32 %v2398_v7, %v2402_v22  ;;  %v2408_v2 = vadd.s32 %v2402_v22, %v2398_v7  ;;  %v2421_v25 = vmul.u32 %v2419_v47, %v2394_v27  ;;  %v2422_v41 = vmul.u32 %v2418_v32, %v2395_v36 }
 0xa38   :  { %v2407_v11 = vsel %vm2406_vm5, 1, %v5638_v29  ;;  %v1866_v59 = vadd.f32 1.0, %v1865_v35  ;;  %vm1882_vm11 = vcmp.lt.s32.totalorder %v5674_v46, 0  ;;  %v2156_v13 = vmul.f32 %v2155_v52, %v2153_v1  ;;  %v5442_v1 = vld [vmem:[%s5570_s4 + $0xa8] sm:$0xff] }
 0xa39   :  { %v2294_v43 = vsub.s32 0, %v5117_v42  ;;  %v2409_v15 = vadd.s32 %v2407_v11, %v2401_v12  ;;  %vm2037_vm2 = vcmp.lt.s32.totalorder %v5675_v20, 0  ;;  %vm2293_vm9 = vcmp.lt.s32.totalorder %v5117_v42, 0 }
 0xa3a   :  { %vm2410_vm10 = vc.u32 %v2408_v2, %v2404_v56  ;;  %v2420_v44 = vmul.u32 %v2418_v32, %v2394_v27  ;;  %v2424_v9 = vshll.u32 %v2421_v25, 16  ;;  %v2002_v19 = vxor.u32 2147483648, %v2001_v58 }
 0xa3b   :  { %v2403_v57 = vshrl.u32 %v2399_v39, 16  ;;  %v2411_v37 = vsel %vm2410_vm10, 1, %v5638_v29  ;;  %v2423_v7 = vmul.u32 %v2419_v47, %v2395_v36  ;;  %v5676_v35 = vand.u32 2147483647, %v5674_v46 }
 0xa3c   :  { %v2413_v22 = vadd.s32 %v2411_v37, %v2409_v15  ;;  %v2426_v52 = vshll.u32 %v2422_v41, 16  ;;  %vm2428_vm6 = vc.u32 %v2420_v44, %v2424_v9  ;;  %v2430_v12 = vadd.s32 %v2424_v9, %v2420_v44 }
 0xa3d   :  { %vm5130_vm1 = vcmp.le.f32.partialorder %v5676_v35, 0.7853982  ;;  %v2157_v11 = vxor.u32 2147483648, %v2156_v13  ;;  %v2295_v27 = vsel %vm2293_vm9, %v2294_v43, %v5117_v42  ;;  %v2429_v32 = vsel %vm2428_vm6, 1, %v5638_v29 }
 0xa3e   :  { %v5137_v39 = vadd.f32 %v1399_v61, %v4219_v51  ;;  %v2382_v36 = vsel %vm2380_vm13, %v5062_v31, 2102212464  ;;  %v2414_v47 = vadd.s32 %v2413_v22, %v2403_v57  ;;  %v2431_v2 = vadd.s32 %v2429_v32, %v2423_v7 }
 0xa3f   :  { %vm2432_vm8 = vc.u32 %v2430_v12, %v2426_v52  ;;  %v2361_v15 = vshrl.u32 %v5653_v5, %v5025_v33  ;;  %v2405_v56 = vshrl.u32 %v2400_v21, 16  ;;  %v1858_v51 = vmul.f32 %v1857_v14, %v4971_v10 }
 0xa40   :  { %v2433_v44 = vsel %vm2432_vm8, 1, %v5638_v29  ;;  %v5147_v43 = vmul.f32 %v4224_v23, %v5137_v39  ;;  %v2296_v9 = vclz %v2295_v27  ;;  %v2425_v61 = vshrl.u32 %v2421_v25, 16 }
 0xa41   :  { %v2435_v37 = vadd.s32 %v2433_v44, %v2431_v2  ;;  %v2381_v31 = vsel %vm2377_vm15, %v2361_v15, %v5065_v38  ;;  %v2383_v33 = vsel %vm2379_vm12, %v5060_v63, %v2382_v36  ;;  %v5156_v21 = vadd.s32 %v2414_v47, %v2405_v56 }
 0xa42   :  { %v2503_v57 = vand.u32 2139095040, %v5147_v43  ;;  %v1867_v23 = vmul.f32 %v1866_v59, %v4944_v4  ;;  %v2003_v10 = vsel %vm1882_vm11, %v2002_v19, %v2001_v58  ;;  %v2427_v14 = vshrl.u32 %v2422_v41, 16 }
 0xa43   :  { %v2436_v25 = vadd.s32 %v2435_v37, %v2425_v61  ;;  %v5679_v7 = vand.u32 2147483647, %v5675_v20  ;;  %v2158_v63 = vsel %vm2037_vm2, %v2157_v11, %v2156_v13  ;;  %v5170_v38 = vadd.s32 %v2430_v12, %v2426_v52 }
 0xa44   :  { %v2504_v22 = vshrl.u32 %v2503_v57, 23  ;;  %v1859_v27 = vadd.f32 1.0, %v1858_v51  ;;  %v3190_v32 = vadd.s32 4294967294, %v2296_v9  ;;  %v2384_v4 = vsel %vm2378_vm4, %v2381_v31, %v2383_v33 }
 0xa45   :  { %vm5164_vm3 = vcmp.le.f32.partialorder %v5679_v7, 0.7853982  ;;  %v2437_v58 = vadd.s32 %v2436_v25, %v2427_v14  ;;  %v1870_v41 = vand.u32 3, %v1869_v49  ;;  %v5177_v59 = vsel %vm5130_vm1, %v5674_v46, %v2003_v10 }
 0xa46   :  { %vm2440_vm14 = vc.u32 %v5156_v21, %v5170_v38  ;;  %v3195_v19 = vadd.s32 4294967169, %v2504_v22  ;;  %v1699_v13 = vmul.f32 -0.001358992, %v4997_v30  ;;  %v1873_v52 = vxor.u32 2147483648, %v1867_v23 }
 0xa47   :  { %v5185_v12 = vsel %vm5164_vm3, %v5675_v20, %v2158_v63  ;;  %v2441_v62 = vadd.s32 1, %v2437_v58  ;;  %v1697_v49 = vsel %vm4900_vm7, 0, %v4991_v0  ;;  %v1707_v11 = vadd.f32 0.008332121, %v5120_v16 }
 0xa48   :  { %v2438_v36 = vmul.u32 %v5087_v28, %v2384_v4  ;;  %v2510_v47 = vadd.s32 1, %v3195_v19  ;;  %v1876_v2 = vxor.u32 2147483648, %v1859_v27  ;;  %v5194_v15 = vmul.f32 %v5177_v59, %v5177_v59 }
 0xa49   :  { %vm3191_vm13 = vcmp.lt.s32.totalorder %v3190_v32, 0  ;;  %v2442_v56 = vsel %vm2440_vm14, %v2441_v62, %v2437_v58  ;;  %vm1872_vm15 = vcmp.eq.s32.totalorder %v1870_v41, 0  ;;  %v5198_v44 = vmul.f32 %v5185_v12, %v5185_v12 }
 0xa4a   :  { %v2443_v51 = vadd.s32 %v2442_v56, %v2438_v36  ;;  %vm2511_vm12 = vcmp.gt.s32.totalorder %v2510_v47, 0  ;;  %v2668_v54 = vmul.f32 %v5110_v26, %v4993_v24  ;;  %v1700_v0 = vadd.f32 0.041655596, %v1699_v13  ;;  %v5682_v26 = vld [vmem:[#allocation12_spill] sm:$0xff] }
 0xa4b   :  { %v1874_v28 = vsel %vm1872_vm15, %v1859_v27, %v1873_v52  ;;  %v2512_v16 = vsel %vm2511_vm12, %v2510_v47, 0  ;;  %v1708_v9 = vmul.f32 %v1707_v11, %v4997_v30  ;;  %vm1875_vm7 = vcmp.eq.s32.totalorder %v1870_v41, 2 }
 0xa4c   :  { %v5203_v61 = vsel %vm3191_vm13, 0, %v3190_v32  ;;  %v2444_v37 = vadd.s32 536870912, %v2443_v51  ;;  %vm1871_vm4 = vcmp.lt.s32.totalorder %v1870_v41, 2  ;;  %v1877_v31 = vsel %vm1875_vm7, %v1876_v2, %v1867_v23 }
 0xa4d   :  { %v2016_v33 = vmul.f32 -0.00019511016, %v5194_v15  ;;  %v2514_v57 = vand.u32 31, %v2512_v16  ;;  %vm1868_vm5 = vweird.f32 %v4295_v60  ;;  %v1878_v10 = vsel %vm1871_vm4, %v1874_v28, %v1877_v31 }
 0xa4e   :  { %v2171_v14 = vmul.f32 -0.00019511016, %v5198_v44  ;;  %v5208_v24 = vshrl.u32 %v2444_v37, 30  ;;  %v5211_v25 = vadd.f32 %v2668_v54, %v5682_v26  ;;  %v5213_v7 = vadd.s32 3, %v1697_v49 }
 0xa4f   :  { %v2304_v63 = vsub.s32 4294967266, %v5203_v61  ;;  %v5216_v22 = vsub.s32 32, %v2514_v57  ;;  %v5219_v23 = vmul.f32 %v1700_v0, %v4997_v30  ;;  %v5221_v27 = vadd.f32 -0.16666654, %v1708_v9 }
 0xa50   :  { %v2446_v60 = vshll.u32 %v5208_v24, 30  ;;  %v5626_v32 = vand.u32 2147483647, %v5147_v43  ;;  %v5225_v4 = vsel %vm1868_vm5, nan, %v1878_v10  ;;  %v5228_v41 = vadd.f32 0.008332121, %v2016_v33 }
 0xa51   :  { %v2159_v19 = vsub.s32 4, %v4866_v50  ;;  %v2164_v13 = vmul.f32 -0.001358992, %v5198_v44  ;;  %v2172_v52 = vadd.f32 0.008332121, %v2171_v14  ;;  %v2284_v62 = vadd.s32 %v5031_v8, %v5029_v55 }
 0xa52   :  { %v2447_v49 = vsub.s32 %v2443_v51, %v2446_v60  ;;  %v2300_v11 = vsub.s32 32, %v5203_v61  ;;  %v2305_v36 = vadd.s32 127, %v2304_v63  ;;  %v2518_v47 = vshrl.u32 %v5642_v48, %v5216_v22 }
 0xa53   :  { %v2521_v2 = vshrl.u32 %v5643_v45, %v5216_v22  ;;  %v2507_v54 = vand.u32 8388607, %v5626_v32  ;;  %v2524_v0 = vshrl.u32 %v5644_v53, %v5216_v22  ;;  %v2517_v55 = vshll.u32 %v5653_v5, %v2514_v57 }
 0xa54   :  { %vm2448_vm9 = vcmp.lt.s32.totalorder %v2447_v49, 0  ;;  %v2449_v56 = vsub.s32 0, %v2447_v49  ;;  %v2520_v8 = vshll.u32 %v5642_v48, %v2514_v57  ;;  %v2526_v51 = vshll.u32 %v5644_v53, %v2514_v57 }
 0xa55   :  { %v2527_v28 = vshrl.u32 %v5645_v6, %v5216_v22  ;;  %v5248_v37 = vshrl.u32 %v2512_v16, 5  ;;  %v2523_v31 = vshll.u32 %v5643_v45, %v2514_v57  ;;  %v2530_v33 = vshrl.u32 %v5646_v18, %v5216_v22 }
 0xa56   :  { %v2450_v9 = vsel %vm2448_vm9, %v2449_v56, %v2447_v49  ;;  %v5253_v14 = vor.u32 %v2518_v47, %v2517_v55  ;;  %v5255_v26 = vor.u32 %v2521_v2, %v2520_v8  ;;  %v5260_v48 = vsel %vm2037_vm2, %v2159_v19, %v4866_v50 }
 0xa57   :  { %v2451_v10 = vclz %v2450_v9  ;;  %v2528_v63 = vor.u32 %v2527_v28, %v2526_v51  ;;  %v2508_v53 = vor.u32 8388608, %v2507_v54  ;;  %v5262_v60 = vor.u32 %v2524_v0, %v2523_v31 }
 0xa58   :  { %v2529_v16 = vshll.u32 %v5645_v6, %v2514_v57  ;;  %v2165_v45 = vadd.f32 0.041655596, %v2164_v13  ;;  %v2173_v56 = vmul.f32 %v2172_v52, %v5198_v44  ;;  %v2302_v18 = vshrl.u32 %v2284_v62, %v2300_v11 }
 0xa59   :  { %v3193_v9 = vadd.s32 4294967294, %v2451_v10  ;;  %v2306_v47 = vshll.u32 %v2305_v36, 23  ;;  %vm2532_vm10 = vcmp.lt.s32.totalorder %v5248_v37, 1  ;;  %vm2535_vm6 = vcmp.lt.s32.totalorder %v5248_v37, 4 }
 0xa5a   :  { %v2531_v55 = vor.u32 %v2530_v33, %v2529_v16  ;;  %vm2534_vm2 = vcmp.lt.s32.totalorder %v5248_v37, 3  ;;  %v2540_v50 = vsel %vm2532_vm10, %v5253_v14, %v5255_v26  ;;  %v2541_v6 = vsel %vm2535_vm6, %v2528_v63, 920167782 }
 0xa5b   :  { %vm3194_vm8 = vcmp.lt.s32.totalorder %v3193_v9, 0  ;;  %v2301_v57 = vshll.u32 %v5117_v42, %v5203_v61  ;;  %v2542_v13 = vsel %vm2534_vm2, %v5262_v60, %v2541_v6  ;;  %v5280_v52 = vshll.u32 %v2508_v53, 8 }
 0xa5c   :  { %v2454_v19 = vsel %vm3194_vm8, 0, %v3193_v9  ;;  %v2439_v62 = vadd.s32 %v5170_v38, %v5156_v21  ;;  %vm2533_vm14 = vcmp.lt.s32.totalorder %v5248_v37, 2  ;;  %v5287_v54 = vor.u32 4788187, %v2306_v47 }
 0xa5d   :  { %v2455_v11 = vsub.s32 32, %v2454_v19  ;;  %v2459_v36 = vsub.s32 4294967266, %v2454_v19  ;;  %v5285_v2 = vor.u32 %v2302_v18, %v2301_v57  ;;  %v2543_v42 = vsel %vm2533_vm14, %v2540_v50, %v2542_v13  ;;  %v3327_v57 = vld [vmem:[%s5570_s4 + $0x58] sm:$0xff] }
 0xa5e   :  { %v2544_v61 = vsel %vm2532_vm10, %v5255_v26, %v5262_v60  ;;  %v2456_v0 = vshll.u32 %v2447_v49, %v2454_v19  ;;  %v2545_v21 = vsel %vm2535_vm6, %v2531_v55, 1326507024  ;;  %v2549_v28 = vand.u32 65535, %v5280_v52 }
 0xa5f   :  { %v2457_v8 = vshrl.u32 %v2439_v62, %v2455_v11  ;;  %v2460_v51 = vadd.s32 127, %v2459_v36  ;;  %v2546_v38 = vsel %vm2534_vm2, %v2528_v63, %v2545_v21  ;;  %v2573_v31 = vand.u32 65535, %v2543_v42 }
 0xa60   :  { %v2574_v33 = vshrl.u32 %v2543_v42, 16  ;;  %v2547_v16 = vsel %vm2533_vm14, %v2544_v61, %v2546_v38  ;;  %v2550_v18 = vshrl.u32 %v5280_v52, 16  ;;  %v5304_v49 = vmul.f32 %v2165_v45, %v5198_v44 }
 0xa61   :  { %v2458_v10 = vor.u32 %v2457_v8, %v2456_v0  ;;  %v2461_v53 = vshll.u32 %v2460_v51, 23  ;;  %vm2347_vm13 = vcmp.lt.s32.totalorder %v4874_v40, 0  ;;  %v2551_v9 = vand.u32 65535, %v2547_v16 }
 0xa62   :  { %v2552_v47 = vshrl.u32 %v2547_v16, 16  ;;  %v2576_v55 = vmul.u32 %v2574_v33, %v2549_v28  ;;  %v2174_v63 = vadd.f32 -0.16666654, %v2173_v56  ;;  %v2310_v50 = vcvt.s32.f32 %v5285_v2  ;;  %v3331_v2 = vld [vmem:[%s5570_s4 + $0x78] sm:$0xff] }
 0xa63   :  { %v5683_v6 = vand.u32 2147483647, %v4874_v40  ;;  %v2462_v19 = vor.u32 4788187, %v2461_v53  ;;  %v2577_v13 = vmul.u32 %v2573_v31, %v2550_v18  ;;  %v2308_v62 = vand.u32 2147483647, %v5287_v54  ;;  %2816 = vmatpush.bf16.msrb.mxu0 %v3331_v2 }
 0xa64   :  { %v2469_v45 = vsub.s32 4, %v5208_v24  ;;  %v2554_v11 = vmul.u32 %v2552_v47, %v2549_v28  ;;  %v2555_v36 = vmul.u32 %v2551_v9, %v2550_v18  ;;  %v2465_v61 = vcvt.s32.f32 %v2458_v10 }
 0xa65   :  { %vm5310_vm15 = vcmp.le.f32.partialorder %v5683_v6, 0.7853982  ;;  %v2463_v42 = vand.u32 2147483647, %v2462_v19  ;;  %v2575_v0 = vmul.u32 %v2573_v31, %v2549_v28  ;;  %v2579_v56 = vshll.u32 %v2576_v55, 16 }
 0xa66   :  { %v2553_v8 = vmul.u32 %v2551_v9, %v2549_v28  ;;  %v2556_v51 = vmul.u32 %v2552_v47, %v2550_v18  ;;  %v2557_v21 = vshll.u32 %v2554_v11, 16  ;;  %v2578_v38 = vmul.u32 %v2574_v33, %v2550_v18  ;;  %v3330_v33 = vld [vmem:[%s5570_s4 + $0x70] sm:$0xff] }
 0xa67   :  { %v2466_v53 = vmul.f32 %v2465_v61, %v2463_v42  ;;  %v2559_v16 = vshll.u32 %v2555_v36, 16  ;;  %v2581_v6 = vshll.u32 %v2577_v13, 16  ;;  %vm2583_vm12 = vc.u32 %v2575_v0, %v2579_v56  ;;  %2817 = vmatpush.bf16.msrb.mxu0 %v3330_v33 }
 0xa68   :  { %vm2561_vm7 = vc.u32 %v2553_v8, %v2557_v21  ;;  %v2563_v54 = vadd.s32 %v2557_v21, %v2553_v8  ;;  %v2584_v19 = vsel %vm2583_vm12, 1, %v5638_v29  ;;  %v2585_v10 = vadd.s32 %v2579_v56, %v2575_v0 }
 0xa69   :  { %v2467_v31 = vxor.u32 2147483648, %v2466_v53  ;;  %v2516_v32 = vshrl.u32 %v5653_v5, %v5216_v22  ;;  %v2562_v58 = vsel %vm2561_vm7, 1, %v5638_v29  ;;  %v2586_v28 = vadd.s32 %v2584_v19, %v2578_v38 }
 0xa6a   :  { %v2537_v18 = vsel %vm2535_vm6, %v5262_v60, 2102212464  ;;  %v2564_v9 = vadd.s32 %v2562_v58, %v2556_v51  ;;  %vm2565_vm4 = vc.u32 %v2563_v54, %v2559_v16  ;;  %vm2587_vm5 = vc.u32 %v2585_v10, %v2581_v6 }
 0xa6b   :  { %v2468_v47 = vsel %vm2347_vm13, %v2467_v31, %v2466_v53  ;;  %v2566_v42 = vsel %vm2565_vm4, 1, %v5638_v29  ;;  %v2580_v5 = vshrl.u32 %v2576_v55, 16  ;;  %v2588_v22 = vsel %vm2587_vm5, 1, %v5638_v29  ;;  %v3329_v55 = vld [vmem:[%s5570_s4 + $0x68] sm:$0xff] }
 0xa6c   :  { %v5336_v61 = vsel %vm5310_vm15, %v4874_v40, %v2468_v47  ;;  %v2558_v0 = vshrl.u32 %v2554_v11, 16  ;;  %v2568_v56 = vadd.s32 %v2566_v42, %v2564_v9  ;;  %v2590_v60 = vadd.s32 %v2588_v22, %v2586_v28  ;;  %2818 = vmatpush.bf16.msrb.mxu0 %v3329_v55 }
 0xa6d   :  { %v2311_v58 = vmul.f32 %v2310_v50, %v2308_v62  ;;  %v2473_v2 = vmul.f32 %v5336_v61, %v5336_v61  ;;  %v2536_v8 = vsel %vm2532_vm10, %v2516_v32, %v5253_v14  ;;  %v2538_v29 = vsel %vm2534_vm2, %v5255_v26, %v2537_v18 }
 0xa6e   :  { %v2560_v51 = vshrl.u32 %v2555_v36, 16  ;;  %v2569_v11 = vadd.s32 %v2568_v56, %v2558_v0  ;;  %v2582_v21 = vshrl.u32 %v2577_v13, 16  ;;  %v2591_v38 = vadd.s32 %v2590_v60, %v2580_v5 }
 0xa6f   :  { %v2175_v50 = vmul.f32 %v2174_v63, %v5198_v44  ;;  %v2470_v62 = vsel %vm2347_vm13, %v2469_v45, %v5208_v24  ;;  %v2474_v53 = vmul.f32 -0.001358992, %v2473_v2  ;;  %v2481_v32 = vmul.f32 -0.00019511016, %v2473_v2  ;;  %v3328_v45 = vld [vmem:[%s5570_s4 + $0x60] sm:$0xff] }
 0xa70   :  { %v2539_v14 = vsel %vm2533_vm14, %v2536_v8, %v2538_v29  ;;  %v5355_v26 = vadd.s32 %v2569_v11, %v2560_v51  ;;  %v5357_v16 = vadd.s32 %v2585_v10, %v2581_v6  ;;  %v2592_v36 = vadd.s32 %v2591_v38, %v2582_v21  ;;  %2819 = vmatpush.bf16.msrb.mxu0 %v3328_v45 }
 0xa71   :  { %v2662_v13 = vmul.f32 %v4986_v34, %v5225_v4  ;;  %v2162_v63 = vsel %vm5164_vm3, 0, %v5260_v48  ;;  %v2475_v54 = vadd.f32 0.041655596, %v2474_v53  ;;  %v2482_v24 = vadd.f32 0.008332121, %v2481_v32 }
 0xa72   :  { %v2167_v37 = vadd.f32 -0.4999988, %v5304_v49  ;;  %v2312_v19 = vxor.u32 2147483648, %v2311_v58  ;;  %vm2595_vm9 = vc.u32 %v5355_v26, %v5357_v16  ;;  %v2596_v6 = vadd.s32 1, %v2592_v36 }
 0xa73   :  { %v2472_v10 = vsel %vm5310_vm15, 0, %v2470_v62  ;;  %v2476_v31 = vmul.f32 %v2475_v54, %v2473_v2  ;;  %v2483_v28 = vmul.f32 %v2482_v24, %v2473_v2  ;;  %v2593_v35 = vmul.u32 %v5280_v52, %v2539_v14  ;;  %v5383_v52 = vld [vmem:[%s5570_s4 + $0xb8] sm:$0xff] }
 0xa74   :  { %v2009_v48 = vmul.f32 -0.001358992, %v5194_v15  ;;  %v2176_v33 = vadd.f32 1.0, %v2175_v50  ;;  %vm2192_vm3 = vcmp.lt.s32.totalorder %v4820_v17, 0  ;;  %v2597_v18 = vsel %vm2595_vm9, %v2596_v6, %v2592_v36  ;;  %2820 = vmatpush.bf16.msrb.mxu0 %v3327_v57  ;;  %3340 = vmatpush.bf16.msra.mxu1 %v5383_v52 }
 0xa75   :  { %v2018_v49 = vmul.f32 %v5228_v41, %v5194_v15  ;;  %v2477_v9 = vadd.f32 -0.4999988, %v2476_v31  ;;  %v2484_v47 = vadd.f32 -0.16666654, %v2483_v28  ;;  %v2598_v42 = vadd.s32 %v2597_v18, %v2593_v35  ;;  %v3325_v31 = vld [vmem:[%s5570_s4 + $0x48] sm:$0xff] }
 0xa76   :  { %v2168_v5 = vmul.f32 %v2167_v37, %v5198_v44  ;;  %v2179_v22 = vadd.s32 3, %v2162_v63  ;;  %v2313_v0 = vsel %vm2192_vm3, %v2312_v19, %v2311_v58  ;;  %v2489_v56 = vadd.s32 3, %v2472_v10  ;;  %v5690_v19 = vld [vmem:[#allocation16_spill] sm:$0xff] }
 0xa77   :  { %v5686_v41 = vsub.s32 4, %v4841_v3  ;;  %v2478_v8 = vmul.f32 %v2477_v9, %v2473_v2  ;;  %v2485_v29 = vmul.f32 %v2484_v47, %v2473_v2  ;;  %v2599_v55 = vadd.s32 536870912, %v2598_v42 }
 0xa78   :  { %v2670_v44 = vmul.f32 %v2662_v13, %v5225_v4  ;;  %v2010_v51 = vadd.f32 0.041655596, %v2009_v48  ;;  %v2177_v11 = vmul.f32 %v2176_v33, %v5185_v12  ;;  %v5687_v58 = vand.u32 2147483647, %v4820_v17  ;;  %v3326_v4 = vld [vmem:[%s5570_s4 + $0x50] sm:$0xff] }
 0xa79   :  { %v5393_v60 = vsel %vm1882_vm11, %v5686_v41, %v4841_v3  ;;  %v2479_v2 = vadd.f32 1.0, %v2478_v8  ;;  %v2486_v38 = vadd.f32 1.0, %v2485_v29  ;;  %v5409_v50 = vshrl.u32 %v2599_v55, 30  ;;  %v5417_v12 = vld [vmem:[%s5570_s4 + $0xb0] sm:$0xff]  ;;  %2821 = vmatpush.bf16.msrb.mxu0 %v3326_v4 }
 0xa7a   :  { %vm5400_vm10 = vcmp.le.f32.partialorder %v5687_v58, 0.7853982  ;;  %v2019_v62 = vadd.f32 -0.16666654, %v2018_v49  ;;  %v2169_v53 = vadd.f32 1.0, %v2168_v5  ;;  %v2180_v32 = vand.u32 3, %v2179_v22  ;;  %3341 = vmatpush.bf16.msra.mxu1 %v5417_v12 }
 0xa7b   :  { %v5407_v3 = vsel %vm5400_vm10, %v4820_v17, %v2313_v0  ;;  %v2490_v14 = vand.u32 3, %v2489_v56  ;;  %v1702_v36 = vadd.f32 -0.4999988, %v5219_v23  ;;  %v1710_v13 = vmul.f32 %v5221_v27, %v4997_v30  ;;  %v3324_v5 = vld [vmem:[%s5570_s4 + $0x40] sm:$0xff] }
 0xa7c   :  { %v2487_v63 = vmul.f32 %v2486_v38, %v5336_v61  ;;  %v2601_v54 = vshll.u32 %v5409_v50, 30  ;;  %v2007_v24 = vsel %vm5130_vm1, 0, %v5393_v60  ;;  %v2183_v45 = vxor.u32 2147483648, %v2177_v11  ;;  %v5456_v22 = vld [vmem:[%s5570_s4 + $0xa0] sm:$0xff] }
 0xa7d   :  { %v5430_v37 = vmul.f32 %v5407_v3, %v5407_v3  ;;  %v2496_v23 = vxor.u32 2147483648, %v2479_v2  ;;  %v2678_v6 = vadd.f32 %v2670_v44, %v5690_v19  ;;  %v2011_v27 = vmul.f32 %v2010_v51, %v5194_v15  ;;  %2822 = vmatpush.bf16.msrb.mxu0 %v3325_v31 }
 0xa7e   :  { %v2493_v61 = vxor.u32 2147483648, %v2487_v63  ;;  %v5434_v10 = vsub.s32 %v2598_v42, %v2601_v54  ;;  %v2020_v28 = vmul.f32 %v2019_v62, %v5194_v15  ;;  %vm2182_vm11 = vcmp.eq.s32.totalorder %v2180_v32, 0  ;;  %3342 = vmatpush.bf16.msra.mxu1 %v5442_v1 }
 0xa7f   :  { %v2186_v35 = vxor.u32 2147483648, %v2169_v53  ;;  %vm2492_vm1 = vcmp.eq.s32.totalorder %v2490_v14, 0  ;;  %vm2495_vm6 = vcmp.eq.s32.totalorder %v2490_v14, 2  ;;  %v2184_v18 = vsel %vm2182_vm11, %v2169_v53, %v2183_v45 }
 0xa80   :  { %v2494_v48 = vsel %vm2492_vm1, %v2479_v2, %v2493_v61  ;;  %vm2603_vm8 = vcmp.lt.s32.totalorder %v5434_v10, 0  ;;  %v2604_v33 = vsub.s32 0, %v5434_v10  ;;  %v2326_v49 = vmul.f32 -0.00019511016, %v5430_v37 }
 0xa81   :  { %vm2491_vm2 = vcmp.lt.s32.totalorder %v2490_v14, 2  ;;  %v2497_v9 = vsel %vm2495_vm6, %v2496_v23, %v2487_v63  ;;  %v2012_v47 = vadd.f32 -0.4999988, %v2011_v27  ;;  %vm2185_vm14 = vcmp.eq.s32.totalorder %v2180_v32, 2  ;;  %2823 = vmatpush.bf16.msrb.mxu0 %v3324_v5 }
 0xa82   :  { %v2498_v42 = vsel %vm2491_vm2, %v2494_v48, %v2497_v9  ;;  %v2605_v57 = vsel %vm2603_vm8, %v2604_v33, %v5434_v10  ;;  %v2684_v0 = vpack.c.bf16 %v2678_v6, %v5211_v25  ;;  %vm2181_vm13 = vcmp.lt.s32.totalorder %v2180_v32, 2  ;;  %3343 = vmatpush.bf16.msra.mxu1 %v5456_v22 }
 0xa83   :  { %v2187_v56 = vsel %vm2185_vm14, %v2186_v35, %v2177_v11  ;;  %v2606_v41 = vclz %v2605_v57  ;;  %v1711_v60 = vadd.f32 1.0, %v1710_v13  ;;  %v2021_v8 = vadd.f32 1.0, %v2020_v28  ;;  %v5468_v11 = vld [vmem:[%s5570_s4 + $0x98] sm:$0xff]  ;;  %v5692_v28 = vld [vmem:[#allocation13_spill] sm:$0xff] }
 0xa84   :  { %v2188_v29 = vsel %vm2181_vm13, %v2184_v18, %v2187_v56  ;;  %vm2488_vm15 = vweird.f32 %v4874_v40  ;;  %v2327_v55 = vadd.f32 0.008332121, %v2326_v49  ;;  %v1703_v58 = vmul.f32 %v1702_v36, %v4997_v30  ;;  %2824 = vmatmul.bf16.vlgmr.msrb.gmra.mxu0 %v2684_v0  ;;  %v3333_v35 = vld [vmem:[%s5570_s4 + $0x88] sm:$0xff]  ;;  %v5694_v56 = vld [vmem:[#allocation19_spill] sm:$0xff] }
 0xa85   :  { %v2499_v44 = vsel %vm2488_vm15, nan, %v2498_v42  ;;  %v3196_v51 = vadd.s32 4294967294, %v2606_v41  ;;  %2835 = vmatpush.bf16.msra.mxu0 %v5383_v52  ;;  %v2013_v25 = vmul.f32 %v2012_v47, %v5194_v15  ;;  %v2024_v2 = vadd.s32 3, %v2007_v24  ;;  %v5691_v52 = vld [vmem:[#allocation21_spill] sm:$0xff] }
 0xa86   :  { %vm2178_vm12 = vweird.f32 %v5675_v20  ;;  %v5471_v40 = vand.u32 3, %v5213_v7  ;;  %v2319_v4 = vmul.f32 -0.001358992, %v5430_v37  ;;  %v1712_v30 = vmul.f32 %v1711_v60, %v5691_v52  ;;  %3344 = vmatpush.bf16.msra.mxu1 %v5468_v11  ;;  %v3429_v52 = vld [vmem:[%s5575_s9 + $0x1a] ss:$8 sm:$0x3] }
 0xa87   :  { %v2189_v38 = vsel %vm2178_vm12, nan, %v2188_v29  ;;  %vm3197_vm7 = vcmp.lt.s32.totalorder %v3196_v51, 0  ;;  %v2022_v15 = vmul.f32 %v2021_v8, %v5177_v59  ;;  %v2666_v62 = vmul.f32 %v4986_v34, %v2499_v44  ;;  %v5486_v59 = vld [vmem:[%s5570_s4 + $0x90] sm:$0xff]  ;;  %v3332_v8 = vld [vmem:[%s5570_s4 + $0x80] sm:$0xff] }
 0xa88   :  { %v2609_v20 = vsel %vm3197_vm7, 0, %v3196_v51  ;;  %v2328_v53 = vmul.f32 %v2327_v55, %v5430_v37  ;;  %v2594_v7 = vadd.s32 %v5357_v16, %v5355_v26  ;;  %v1704_v36 = vadd.f32 1.0, %v1703_v58 }
 0xa89   :  { %v2610_v32 = vsub.s32 32, %v2609_v20  ;;  %v2614_v14 = vsub.s32 4294967266, %v2609_v20  ;;  %2836 = vmatpush.bf16.msra.mxu0 %v5417_v12  ;;  %v2014_v13 = vadd.f32 1.0, %v2013_v25  ;;  %v2025_v63 = vand.u32 3, %v2024_v2 }
 0xa8a   :  { %v2664_v54 = vmul.f32 %v4986_v34, %v2189_v38  ;;  %v2320_v24 = vadd.f32 0.041655596, %v2319_v4  ;;  %v2611_v45 = vshll.u32 %v5434_v10, %v2609_v20  ;;  %v1718_v26 = vxor.u32 2147483648, %v1712_v30  ;;  %3345 = vmatpush.bf16.msra.mxu1 %v5486_v59  ;;  %v5695_v4 = vld [vmem:[#allocation15_spill] sm:$0xff] }
 0xa8b   :  { %v2612_v23 = vshrl.u32 %v2594_v7, %v2610_v32  ;;  %v2615_v19 = vadd.s32 127, %v2614_v14  ;;  %v2028_v16 = vxor.u32 2147483648, %v2022_v15  ;;  %v2674_v6 = vmul.f32 %v2666_v62, %v2499_v44 }
 0xa8c   :  { %vm1716_vm4 = vcmp.lt.s32.totalorder %v5471_v40, 2  ;;  %v2329_v12 = vadd.f32 -0.16666654, %v2328_v53  ;;  %vm1717_vm5 = vcmp.eq.s32.totalorder %v5471_v40, 0  ;;  %v2031_v61 = vxor.u32 2147483648, %v2014_v13 }
 0xa8d   :  { %v2613_v27 = vor.u32 %v2612_v23, %v2611_v45  ;;  %v2616_v34 = vshll.u32 %v2615_v19, 23  ;;  %2837 = vmatpush.bf16.msra.mxu0 %v5442_v1  ;;  %v2672_v31 = vmul.f32 %v2664_v54, %v2189_v38  ;;  %v2314_v10 = vsub.s32 4, %v5692_v28  ;;  %v5693_v1 = vld [vmem:[#allocation26_spill] sm:$0xff] }
 0xa8e   :  { %v1721_v48 = vxor.u32 2147483648, %v1704_v36  ;;  %vm2027_vm9 = vcmp.eq.s32.totalorder %v2025_v63, 0  ;;  %v2321_v33 = vmul.f32 %v2320_v24, %v5430_v37  ;;  %v1719_v49 = vsel %vm1717_vm5, %v1704_v36, %v1718_v26  ;;  %3346 = vmatpush.bf16.msra.mxu1 %v3333_v35 }
 0xa8f   :  { %v2617_v18 = vor.u32 4788187, %v2616_v34  ;;  %vm1720_vm11 = vcmp.eq.s32.totalorder %v5471_v40, 2  ;;  %v2029_v9 = vsel %vm2027_vm9, %v2014_v13, %v2028_v16  ;;  %v2682_v47 = vadd.f32 %v2674_v6, %v5693_v1  ;;  %v5699_v34 = vld [vmem:[#allocation17_spill] sm:$0xff] }
 0xa90   :  { %vm2030_vm1 = vcmp.eq.s32.totalorder %v2025_v63, 2  ;;  %v2330_v42 = vmul.f32 %v2329_v12, %v5430_v37  ;;  %v2620_v5 = vcvt.s32.f32 %v2613_v27  ;;  %vm2026_vm6 = vcmp.lt.s32.totalorder %v2025_v63, 2 }
 0xa91   :  { %v2618_v57 = vand.u32 2147483647, %v2617_v18  ;;  %2838 = vmatpush.bf16.msra.mxu0 %v5456_v22  ;;  %v2032_v0 = vsel %vm2030_vm1, %v2031_v61, %v2022_v15  ;;  %v2680_v41 = vadd.f32 %v2672_v31, %v5694_v56  ;;  %v2315_v60 = vsel %vm2192_vm3, %v2314_v10, %v5692_v28 }
 0xa92   :  { %v1722_v29 = vsel %vm1720_vm11, %v1721_v48, %v1712_v30  ;;  %v2033_v55 = vsel %vm2026_vm6, %v2029_v9, %v2032_v0  ;;  %v2322_v44 = vadd.f32 -0.4999988, %v2321_v33  ;;  %3347 = vmatpush.bf16.msra.mxu1 %v3332_v8  ;;  %vm2023_vm8 = vweird.f32 %v5674_v46 }
 0xa93   :  { %v2621_v51 = vmul.f32 %v2620_v5, %v2618_v57  ;;  %v1723_v58 = vsel %vm1716_vm4, %v1719_v49, %v1722_v29  ;;  %v2686_v22 = vpack.c.bf16 %v2682_v47, %v2680_v41  ;;  %v2317_v25 = vsel %vm5400_vm10, 0, %v2315_v60 }
 0xa94   :  { %v2331_v2 = vadd.f32 1.0, %v2330_v42  ;;  %vm1713_vm3 = vweird.f32 %v5695_v4  ;;  %v5519_v30 = vperm.slane %v3429_v52, 1  ;;  %v2034_v40 = vsel %vm2023_vm8, nan, %v2033_v55 }
 0xa95   :  { %v2622_v38 = vxor.u32 2147483648, %v2621_v51  ;;  %2839 = vmatpush.bf16.msra.mxu0 %v5468_v11  ;;  %vm2502_vm2 = vcmp.lt.s32.totalorder %v5147_v43, 0  ;;  %v1724_v15 = vsel %vm1713_vm3, nan, %v1723_v58  ;;  %v2323_v46 = vmul.f32 %v2322_v44, %v5430_v37 }
 0xa96   :  { %v5696_v21 = vand.u32 2147483647, %v5147_v43  ;;  %2829 = vmatmul.bf16.gmra.mxu0 %v2686_v22  ;;  %v2334_v20 = vadd.s32 3, %v2317_v25  ;;  %v2624_v53 = vsub.s32 4, %v5409_v50  ;;  %v2663_v32 = vmul.f32 %v5519_v30, %v2034_v40  ;;  %v5701_v22 = vld [vmem:[#allocation25_spill] sm:$0xff] }
 0xa97   :  { %v2623_v11 = vsel %vm2502_vm2, %v2622_v38, %v2621_v51  ;;  %v2332_v37 = vmul.f32 %v2331_v2, %v5407_v3  ;;  %v2661_v36 = vmul.f32 %v5519_v30, %v1724_v15  ;;  %v2324_v13 = vadd.f32 1.0, %v2323_v46 }
 0xa98   :  { %vm5525_vm10 = vcmp.le.f32.partialorder %v5696_v21, 0.7853982  ;;  %v2335_v24 = vand.u32 3, %v2334_v20  ;;  %v2625_v45 = vsel %vm2502_vm2, %v2624_v53, %v5409_v50  ;;  %v2671_v23 = vmul.f32 %v2663_v32, %v2034_v40  ;;  %v5700_v50 = vld [vmem:[#allocation14_spill] sm:$0xff]  ;;  %v5702_v20 = vld [vmem:[#allocation8_spill] sm:$0xff] }
 0xa99   :  { %v2626_v7 = vsel %vm5525_vm10, %v5147_v43, %v2623_v11  ;;  %2840 = vmatpush.bf16.msra.mxu0 %v5486_v59  ;;  %v2338_v19 = vxor.u32 2147483648, %v2332_v37  ;;  %v2669_v6 = vmul.f32 %v2661_v36, %v1724_v15  ;;  %v2341_v3 = vxor.u32 2147483648, %v2324_v13  ;;  %v2859_v11 = vpop.permute.xlu0 %2858 }
 0xa9a   :  { %v2628_v14 = vmul.f32 %v2626_v7, %v2626_v7  ;;  %v2627_v59 = vsel %vm5525_vm10, 0, %v2625_v45  ;;  %vm2337_vm14 = vcmp.eq.s32.totalorder %v2335_v24, 0  ;;  %v2679_v61 = vadd.f32 %v2671_v23, %v5699_v34  ;;  %v2863_v45 = vpop.permute.xlu2 %2862 }
 0xa9b   :  { %v2339_v31 = vsel %vm2337_vm14, %v2324_v13, %v2338_v19  ;;  %v2677_v48 = vadd.f32 %v2669_v6, %v5700_v50  ;;  %vm2340_vm13 = vcmp.eq.s32.totalorder %v2335_v24, 2  ;;  %v2644_v33 = vadd.s32 3, %v2627_v59  ;;  %v5703_v13 = vld [vmem:[#allocation9_spill] sm:$0xff]  ;;  %v5704_v19 = vld [vmem:[#allocation10_spill] sm:$0xff] }
 0xa9c   :  { %v2629_v63 = vmul.f32 -0.001358992, %v2628_v14  ;;  %v2636_v54 = vmul.f32 -0.00019511016, %v2628_v14  ;;  %vm2336_vm15 = vcmp.lt.s32.totalorder %v2335_v24, 2  ;;  %vm2333_vm12 = vweird.f32 %v4820_v17 }
 0xa9d   :  { %2841 = vmatpush.bf16.msra.mxu0 %v3333_v35  ;;  %v2342_v35 = vsel %vm2340_vm13, %v2341_v3, %v2332_v37  ;;  %v2685_v1 = vpack.c.bf16 %v2679_v61, %v2677_v48  ;;  %v2645_v57 = vand.u32 3, %v2644_v33  ;;  %vm2643_vm9 = vweird.f32 %v5147_v43  ;;  %v64_v43 = vld [vmem:[%s5575_s9 + $0x6] ss:$0 sm:$0xff]  ;;  %v2861_v37 = vpop.permute.xlu1 %2860  ;;  %s3497_s9 = smov [#allocation5]  }
 0xa9e   :  { %v2630_v26 = vadd.f32 0.041655596, %v2629_v63  ;;  %v2637_v16 = vadd.f32 0.008332121, %v2636_v54  ;;  %v2343_v9 = vsel %vm2336_vm15, %v2339_v31, %v2342_v35  ;;  %s2886_s18 = sshll.u32 %s3497_s9, 4  ;;  %s2887_s18 = int_to_ptr.vmem [resolvable:$true] %s2886_s18 }
 0xa9f   :  { %v2344_v5 = vsel %vm2333_vm12, nan, %v2343_v9  ;;  %vm2647_vm7 = vcmp.eq.s32.totalorder %v2645_v57, 0  ;;  %vm2650_vm4 = vcmp.eq.s32.totalorder %v2645_v57, 2  ;;  %vm2646_vm5 = vcmp.lt.s32.totalorder %v2645_v57, 2 }
 0xaa0   :  { %v2631_v12 = vmul.f32 %v2630_v26, %v2628_v14  ;;  %v2638_v27 = vmul.f32 %v2637_v16, %v2628_v14  ;;  %v2665_v60 = vmul.f32 %v5519_v30, %v2344_v5 }
 0xaa1   :  { %2842 = vmatpush.bf16.msra.mxu0 %v3332_v8  ;;  %v2865_v59 = vpop.permute.xlu0 %2864 }
 0xaa2   :  { %v2632_v28 = vadd.f32 -0.4999988, %v2631_v12  ;;  %v2639_v10 = vadd.f32 -0.16666654, %v2638_v27  ;;  %v2673_v51 = vmul.f32 %v2665_v60, %v2344_v5  ;;  %v5705_v27 = vld [vmem:[#allocation11_spill] sm:$0xff] }
 0xaa4   :  { %v2633_v18 = vmul.f32 %v2632_v28, %v2628_v14  ;;  %v2640_v49 = vmul.f32 %v2639_v10, %v2628_v14  ;;  %v2681_v25 = vadd.f32 %v2673_v51, %v5701_v22 }
 0xaa6   :  { %v2634_v47 = vadd.f32 1.0, %v2633_v18  ;;  %v2641_v42 = vadd.f32 1.0, %v2640_v49  ;;  %2843 = vmatmul.bf16.vlgmr.msra.gmra.mxu0 %v2685_v1 }
 0xaa8   :  { %v2642_v0 = vmul.f32 %v2641_v42, %v2626_v7  ;;  %v2651_v56 = vxor.u32 2147483648, %v2634_v47 }
 0xaaa   :  { %v2648_v41 = vxor.u32 2147483648, %v2642_v0  ;;  %v2652_v29 = vsel %vm2650_vm4, %v2651_v56, %v2642_v0 }
 0xaac   :  { %v2649_v8 = vsel %vm2647_vm7, %v2634_v47, %v2648_v41 }
 0xaad   :  { %v2653_v55 = vsel %vm2646_vm5, %v2649_v8, %v2652_v29 }
 0xaae   :  { %v2654_v44 = vsel %vm2643_vm9, nan, %v2653_v55 }
 0xaaf   :  { %v2667_v17 = vmul.f32 %v5519_v30, %v2654_v44 }
 0xab1   :  { %v2675_v58 = vmul.f32 %v2667_v17, %v2654_v44 }
 0xab3   :  { %v2683_v2 = vadd.f32 %v2675_v58, %v5137_v39 }
 0xab5   :  { %v2687_v38 = vpack.c.bf16 %v2683_v2, %v2681_v25 }
 0xab7   :  { %2848 = vmatmul.bf16.vlgmr.msra.gmra.mxu1 %v2687_v38 }
 0xb01   :  { %v2825_v4 = vpop.f32.mrf.mxu0 }
 0xb02   :  { %v2826_v46 = vadd.f32 %v2825_v4, %v64_v43 }
 0xb09   :  { %v2827_v52 = vpop.f32.mrf.mxu0 }
 0xb0a   :  { %v2828_v7 = vadd.f32 %v2827_v52, %v64_v43 }
 0xb13   :  { %v2830_v40 = vpop.f32.mrf.mxu0 }
 0xb14   :  { %v2831_v36 = vadd.f32 %v2830_v40, %v64_v43 }
 0xb1b   :  { %v2832_v15 = vpop.f32.mrf.mxu0 }
 0xb1c   :  { %v2833_v16 = vadd.f32 %v2832_v15, %v64_v43 }
 0xb23   :  { %v2844_v21 = vpop.f32.mrf.mxu0 }
 0xb24   :  { %v2845_v62 = vadd.f32 %v2844_v21, %v2826_v46 }
 0xb26   :  { %v2870_v30 = vmul.f32 %v2859_v11, %v2845_v62 }
 0xb28   :  { %v2874_v53 = vadd.f32 %v2870_v30, %v5702_v20 }
 0xb2a   :  { %2878 = vst.msk [vmem:[#allocation5] sm:$0xff] %vm157_vm0, %v2874_v53 }
 0xb2b   :  { %v2846_v39 = vpop.f32.mrf.mxu0 }
 0xb2c   :  { %v2847_v32 = vadd.f32 %v2846_v39, %v2828_v7 }
 0xb2e   :  { %v2871_v14 = vmul.f32 %v2861_v37, %v2847_v32 }
 0xb30   :  { %v2875_v63 = vadd.f32 %v2871_v14, %v5703_v13 }
 0xb32   :  { %2879 = vst.msk [vmem:[#allocation5 + $0x8] sm:$0xff] %vm157_vm0, %v2875_v63 }
 0xb34   :  { %v2849_v54 = vpop.f32.mrf.mxu1 }
 0xb35   :  { %v2850_v24 = vadd.f32 %v2849_v54, %v2831_v36 }
 0xb37   :  { %v2872_v23 = vmul.f32 %v2863_v45, %v2850_v24 }
 0xb39   :  { %v2876_v26 = vadd.f32 %v2872_v23, %v5704_v19 }
 0xb3b   :  { %2880 = vst.msk [vmem:[#allocation5 + $0x10] sm:$0xff] %vm157_vm0, %v2876_v26 }
 0xb3c   :  { %v2851_v6 = vpop.f32.mrf.mxu1 }
 0xb3d   :  { %v2852_v3 = vadd.f32 %v2851_v6, %v2833_v16 }
 0xb3f   :  { %v2873_v12 = vmul.f32 %v2865_v59, %v2852_v3 }
 0xb41   :  { %v2877_v34 = vadd.f32 %v2873_v12, %v5705_v27 }
 0xb43   :  { %2881 = vst.msk [vmem:[#allocation5 + $0x18] sm:$0xff] %vm157_vm0, %v2877_v34 }
 0xb44   :  { %2894 = dma.vmem_to_hbm [thread:$0]  %s2887_s18, 512, %s2889_s19, [#allocation4], %s3498_s6, %s3498_s6, %s3499_s20  }
 0xb45   :  { %3480 = dma.done.wait [#allocation4], 512  }
 0xb46   :  { %3481 = vsyncadd [#allocation4], 4294966784 }
 0xb47   :  { %2899 = vsyncpa [#allocation3], 1 }
 0xb48   :  { %2900 = vsyncpa [#allocation4], 1 }

</bundles_post_ra>
